<compile_context>
chip_gen: v7x
topology: tpu7x:2x2x1
jax: 0.10.0
libtpu: 0.0.40
codegen_flags: <defaults>
</compile_context>

<pallas_src>
import jax
import jax.numpy as jnp
from jax.experimental import pallas as pl
from jax.experimental.pallas import tpu as pltpu

# --- small, TPU-friendly stand-ins for (768, 768, proj_dim) ---
BATCH = 16
SEQ = 512
HIDDEN = 128      # stands in for 768
PROJ_HID = 128    # stands in for 768
PROJ_DIM = 128    # proj_dim_size
VOCAB = 64


def _default_vmem_limit():
    """Generation-aware VMEM budget: ~3/4 of physical capacity.

    v5e/v6e (128 MiB) -> ~96 MiB, v7x (64 MiB) -> ~48 MiB.  Falls back to a
    conservative v7x-safe 48 MiB if the query is unavailable.
    """
    fallback = 64 * 1024 * 1024
    try:
        info = pltpu.get_tpu_info()
        cap = getattr(info, "vmem_capacity_bytes", fallback) or fallback
    except Exception:
        cap = fallback
    return int(cap) * 3 // 4


def _auto_tile_s(tile_b, S, H, vmem_limit_bytes):
    """Largest sequence tile whose double-buffered bf16 emb block fits ~1/4 of
    the VMEM budget (rest left for mask blocks, accumulators, pipeline slack)."""
    if S <= 128:
        return S
    budget = vmem_limit_bytes // 4
    tile_s = S
    while (tile_s > 128
           and (2 * tile_b * tile_s * H * 2) > budget
           and S % (tile_s // 2) == 0):
        tile_s //= 2
    return tile_s


# --------------------------------------------------------------------------
# Kernel 1: streaming masked mean-pooling (HBM-roofline part)
# --------------------------------------------------------------------------
def mean_pool_kernel(valid_k_ref, emb_ref, mask_ref, pooled_ref,
                     sum_emb_ref, sum_mask_ref):
    i = pl.program_id(0)          # batch tile
    k = pl.program_id(1)          # sequence tile (reduction axis)

    @pl.when(k == 0)
    def _init():
        sum_emb_ref[...] = jnp.zeros_like(sum_emb_ref)
        sum_mask_ref[...] = jnp.zeros_like(sum_mask_ref)

    # Padding skip: only accumulate up to the last sequence block that holds a
    # valid token for this batch tile.  Beyond it the (clamped) index_map keeps
    # re-referencing the same resident block, so no new HBM DMA is issued and
    # the guard below skips the (would-be-duplicate) compute.
    @pl.when(k <= valid_k_ref[i])
    def _accumulate():
        emb = emb_ref[...].astype(jnp.float32)      # (TB, TS, H), streamed bf16
        mask = mask_ref[...]                        # (TB, TS), f32 0/1
        # VPU multiply + reduce is hidden under the emb DMA at roofline.  If a
        # bundle dump ever shows XLU/VALU as the binding slot, replace with a
        # batched dot_general contracting mask (TB,1,TS) against emb (TB,TS,H).
        sum_emb_ref[...] += jnp.sum(emb * mask[:, :, None], axis=1)        # (TB, H)
        sum_mask_ref[...] += jnp.sum(mask, axis=1, keepdims=True)          # (TB, 1)

    @pl.when(k == pl.num_programs(1) - 1)
    def _finalize():
        denom = jnp.maximum(sum_mask_ref[...], 1e-9)
        pooled_ref[...] = sum_emb_ref[...] / denom                         # (TB, H)


def masked_mean_pool(token_embeddings, attention_mask, *, tile_b=None,
                     tile_s=None, vmem_limit_bytes=None):
    B, S, H = token_embeddings.shape
    if vmem_limit_bytes is None:
        vmem_limit_bytes = _default_vmem_limit()

    if tile_b is None:
        tile_b = min(B, 128)
        # Keep nb >= 2 so the "parallel" batch axis can occupy both v7x TCs.
        if B // tile_b < 2 and B >= 16:
            tile_b = B // 2
    if tile_s is None:
        tile_s = _auto_tile_s(tile_b, S, H, vmem_limit_bytes)

    assert B % tile_b == 0 and S % tile_s == 0, "shapes must tile evenly"
    assert (tile_b % 8 == 0 or tile_b == B) and (tile_s % 128 == 0 or tile_s == S)

    nb = B // tile_b
    nk = S // tile_s

    # Stream the big embedding tensor in bf16 (halves HBM bytes); keep the
    # mask in f32 (0/1 values; <2% of total traffic, layout-safe).
    emb_bf16 = token_embeddings.astype(jnp.bfloat16)
    mask_f32 = attention_mask.astype(jnp.float32)

    # Per-batch-tile last sequence block containing any valid token (plain JAX
    # glue, scalar-prefetched into SMEM).
    block_has = mask_f32.reshape(B, nk, tile_s).sum(axis=-1) > 0          # (B, nk)
    idx = jnp.arange(nk, dtype=jnp.int32)
    last_valid_row = jnp.max(jnp.where(block_has, idx[None, :], 0), axis=-1)
    valid_k = jnp.max(last_valid_row.reshape(nb, tile_b), axis=-1).astype(jnp.int32)

    def emb_map(i, k, vk_ref):
        return (i, jnp.minimum(k, vk_ref[i]), 0)

    def mask_map(i, k, vk_ref):
        return (i, jnp.minimum(k, vk_ref[i]))

    flops = 2 * B * S * H
    bytes_accessed = emb_bf16.size * 2 + mask_f32.size * 4 + B * H * 4

    return pl.pallas_call(
        mean_pool_kernel,
        out_shape=jax.ShapeDtypeStruct((B, H), jnp.float32),
        grid_spec=pltpu.PrefetchScalarGridSpec(
            num_scalar_prefetch=1,
            grid=(nb, nk),                              # reduction (seq) axis last
            in_specs=[
                pl.BlockSpec((tile_b, tile_s, H), emb_map),
                pl.BlockSpec((tile_b, tile_s), mask_map),
            ],
            out_specs=pl.BlockSpec((tile_b, H), lambda i, k, vk: (i, 0)),
            scratch_shapes=[
                pltpu.VMEM((tile_b, H), jnp.float32),   # sum_emb accumulator
                pltpu.VMEM((tile_b, 1), jnp.float32),   # sum_mask accumulator
            ],
        ),
        compiler_params=pltpu.CompilerParams(
            dimension_semantics=("parallel", "arbitrary"),
            vmem_limit_bytes=vmem_limit_bytes,
        ),
        cost_estimate=pl.CostEstimate(
            flops=flops, transcendentals=0, bytes_accessed=bytes_accessed),
    )(valid_k, emb_bf16, mask_f32)


# --------------------------------------------------------------------------
# Kernel 2: Projector (Linear -> ReLU -> Linear) on the pooled (B, H) output.
# Separate call: full-batch M on the MXU, weights not resident during the
# streaming loop (VMEM headroom on v7x).
# --------------------------------------------------------------------------
def projector_kernel(pooled_ref, w1_ref, b1_ref, w2_ref, b2_ref, out_ref):
    h = jnp.dot(pooled_ref[...], w1_ref[...],
                preferred_element_type=jnp.float32) + b1_ref[...]
    h = jnp.maximum(h, 0.0)
    out_ref[...] = jnp.dot(h, w2_ref[...],
                           preferred_element_type=jnp.float32) + b2_ref[...]


def projector_forward(pooled, w1, b1, w2, b2, *, tile_b=None,
                      vmem_limit_bytes=None):
    B, H = pooled.shape
    Ph = w1.shape[1]
    Pd = w2.shape[1]
    if vmem_limit_bytes is None:
        vmem_limit_bytes = _default_vmem_limit()
    if tile_b is None:
        tile_b = min(B, 256)
    assert B % tile_b == 0

    flops = 2 * B * (H * Ph + Ph * Pd)
    bytes_accessed = (B * H + w1.size + b1.size + w2.size + b2.size + B * Pd) * 4

    return pl.pallas_call(
        projector_kernel,
        out_shape=jax.ShapeDtypeStruct((B, Pd), jnp.float32),
        grid_spec=pltpu.PrefetchScalarGridSpec(
            num_scalar_prefetch=0,
            grid=(B // tile_b,),
            in_specs=[
                pl.BlockSpec((tile_b, H), lambda i: (i, 0)),
                pl.BlockSpec((H, Ph), lambda i: (0, 0)),
                pl.BlockSpec((1, Ph), lambda i: (0, 0)),
                pl.BlockSpec((Ph, Pd), lambda i: (0, 0)),
                pl.BlockSpec((1, Pd), lambda i: (0, 0)),
            ],
            out_specs=pl.BlockSpec((tile_b, Pd), lambda i: (i, 0)),
        ),
        compiler_params=pltpu.CompilerParams(
            dimension_semantics=("parallel",),
            vmem_limit_bytes=vmem_limit_bytes,
        ),
        cost_estimate=pl.CostEstimate(
            flops=flops, transcendentals=0, bytes_accessed=bytes_accessed),
    )(pooled, w1, b1, w2, b2)


def text_encoder_forward(token_embeddings, attention_mask, w1, b1, w2, b2,
                         *, tile_b=None, tile_s=None, vmem_limit_bytes=None):
    if vmem_limit_bytes is None:
        vmem_limit_bytes = _default_vmem_limit()
    pooled = masked_mean_pool(token_embeddings, attention_mask,
                              tile_b=tile_b, tile_s=tile_s,
                              vmem_limit_bytes=vmem_limit_bytes)
    return projector_forward(pooled, w1, b1, w2, b2,
                             vmem_limit_bytes=vmem_limit_bytes)


def reference_forward(token_embeddings, attention_mask, w1, b1, w2, b2):
    mask_exp = attention_mask[:, :, None].astype(jnp.float32)
    sum_emb = jnp.sum(token_embeddings * mask_exp, axis=1)
    sum_mask = jnp.clip(jnp.sum(mask_exp, axis=1), 1e-9, None)
    pooled = sum_emb / sum_mask
    h = jnp.maximum(pooled @ w1 + b1, 0.0)
    return h @ w2 + b2


if __name__ == "__main__":
    key = jax.random.PRNGKey(0)
    k_emb, k_ids, k_len, k_w1, k_b1, k_w2, k_b2 = jax.random.split(key, 7)

    # Synthetic deterministic "BERT" backbone: embedding-table lookup (JAX glue)
    embed_table = jax.random.normal(k_emb, (VOCAB, HIDDEN), jnp.float32) * 0.02
    input_ids = jax.random.randint(k_ids, (BATCH, SEQ), 0, VOCAB)
    token_embeddings = embed_table[input_ids]                  # (B, S, H)

    # attention mask with trailing padding zeros (like tokenized text)
    lengths = jax.random.randint(k_len, (BATCH,), 1, SEQ + 1)
    attention_mask = (jnp.arange(SEQ)[None, :] < lengths[:, None]).astype(
        jnp.float32)

    # Projector parameters (deterministic init)
    w1 = jax.random.normal(k_w1, (HIDDEN, PROJ_HID), jnp.float32) * 0.05
    b1 = jax.random.normal(k_b1, (1, PROJ_HID), jnp.float32) * 0.01
    w2 = jax.random.normal(k_w2, (PROJ_HID, PROJ_DIM), jnp.float32) * 0.05
    b2 = jax.random.normal(k_b2, (1, PROJ_DIM), jnp.float32) * 0.01

    # 1) Auto-sized tiles (at these toy shapes: full-sequence tile, nk=1).
    u_auto = text_encoder_forward(token_embeddings, attention_mask,
                                  w1, b1, w2, b2)
    # 2) Explicit small tiles: exercises the multi-step reduction and the
    #    scalar-prefetch padding-skip path (nk=4).
    u_tiled = text_encoder_forward(token_embeddings, attention_mask,
                                   w1, b1, w2, b2, tile_b=8, tile_s=128)
    u_auto, u_tiled = jax.block_until_ready((u_auto, u_tiled))

    # Reference uses the same bf16-quantized embeddings (the kernel streams
    # bf16) with f32 accumulation downstream.
    emb_q = token_embeddings.astype(jnp.bfloat16).astype(jnp.float32)
    u_ref = reference_forward(emb_q, attention_mask, w1, b1, w2, b2)

    assert u_auto.shape == (BATCH, PROJ_DIM)
    assert jnp.allclose(u_auto, u_ref, atol=1e-3, rtol=1e-3), (
        float(jnp.max(jnp.abs(u_auto - u_ref))))
    assert jnp.allclose(u_tiled, u_ref, atol=1e-3, rtol=1e-3), (
        float(jnp.max(jnp.abs(u_tiled - u_ref))))
    print("KERNEL_OK")
</pallas_src>

<mosaic_0001>
module attributes {stable_mosaic.version = 11 : i64} {
  func.func @mean_pool_kernel(%arg0: i32, %arg1: i32, %arg2: memref<2xi32, #tpu.memory_space<smem>>, %arg3: memref<8x512x128xbf16, #tpu.memory_space<vmem>>, %arg4: memref<8x512xf32, #tpu.memory_space<vmem>>, %arg5: memref<8x128xf32, #tpu.memory_space<vmem>>, %arg6: memref<8x128xf32, #tpu.memory_space<vmem>>, %arg7: memref<8x1xf32, #tpu.memory_space<vmem>>) attributes {dimension_semantics = [#tpu.dimension_semantics<parallel>, #tpu.dimension_semantics<arbitrary>], iteration_bounds = array<i64: 2, 1>, scalar_prefetch = 1 : i64, scratch_operands = 2 : i64, tpu.core_type = #tpu.core_type<tc>, window_params = [{transform_indices = @transform_0, window_bounds = array<i64: 8, 512, 128>}, {transform_indices = @transform_1, window_bounds = array<i64: 8, 512>}, {transform_indices = @transform_2, window_bounds = array<i64: 8, 128>}]} {
    %c0_i32 = arith.constant 0 : i32
    %0 = arith.cmpi eq, %arg1, %c0_i32 : i32
    %1 = arith.extui %0 : i1 to i32
    %c0_i32_0 = arith.constant 0 : i32
    %2 = arith.cmpi ne, %1, %c0_i32_0 : i32
    scf.if %2 {
      %cst = arith.constant 0.000000e+00 : f32
      %11 = vector.broadcast %cst : f32 to vector<8x128xf32>
      %c0 = arith.constant 0 : index
      %c0_4 = arith.constant 0 : index
      %12 = vector.load %arg6[%c0, %c0_4] : memref<8x128xf32, #tpu.memory_space<vmem>>, vector<8x128xf32>
      tpu.vector_store %arg6[%c0, %c0_4], %11 {strides = array<i32>} : memref<8x128xf32, #tpu.memory_space<vmem>>, vector<8x128xf32>,
      %cst_5 = arith.constant 0.000000e+00 : f32
      %13 = vector.broadcast %cst_5 : f32 to vector<8x1xf32>
      %c0_6 = arith.constant 0 : index
      %c0_7 = arith.constant 0 : index
      %14 = vector.load %arg7[%c0_6, %c0_7] : memref<8x1xf32, #tpu.memory_space<vmem>>, vector<8x1xf32>
      tpu.vector_store %arg7[%c0_6, %c0_7], %13 {strides = array<i32>} : memref<8x1xf32, #tpu.memory_space<vmem>>, vector<8x1xf32>,
    } else {
    }
    %3 = arith.index_cast %arg0 : i32 to index
    %4 = memref.load %arg2[%3] : memref<2xi32, #tpu.memory_space<smem>>
    %5 = arith.cmpi sle, %arg1, %4 : i32
    %6 = arith.extui %5 : i1 to i32
    %c0_i32_1 = arith.constant 0 : i32
    %7 = arith.cmpi ne, %6, %c0_i32_1 : i32
    scf.if %7 {
      %c0 = arith.constant 0 : index
      %c0_4 = arith.constant 0 : index
      %c0_5 = arith.constant 0 : index
      %11 = vector.load %arg3[%c0, %c0_4, %c0_5] : memref<8x512x128xbf16, #tpu.memory_space<vmem>>, vector<8x512x128xbf16>
      %12 = arith.extf %11 : vector<8x512x128xbf16> to vector<8x512x128xf32>
      %c0_6 = arith.constant 0 : index
      %c0_7 = arith.constant 0 : index
      %13 = vector.load %arg4[%c0_6, %c0_7] : memref<8x512xf32, #tpu.memory_space<vmem>>, vector<8x512xf32>
      %c0_8 = arith.constant 0 : index
      %c0_9 = arith.constant 0 : index
      %14 = vector.load %arg6[%c0_8, %c0_9] : memref<8x128xf32, #tpu.memory_space<vmem>>, vector<8x128xf32>
      %15 = vector.shape_cast %13 : vector<8x512xf32> to vector<8x512x1xf32>
      %16 = vector.broadcast %15 : vector<8x512x1xf32> to vector<8x512x128xf32>
      %17 = arith.mulf %12, %16 : vector<8x512x128xf32>
      %cst = arith.constant dense<0.000000e+00> : vector<8x128xf32>
      %18 = vector.multi_reduction <add>, %17, %cst [1] : vector<8x512x128xf32> to vector<8x128xf32>
      %19 = arith.addf %14, %18 : vector<8x128xf32>
      %c0_10 = arith.constant 0 : index
      %c0_11 = arith.constant 0 : index
      %20 = vector.load %arg6[%c0_10, %c0_11] : memref<8x128xf32, #tpu.memory_space<vmem>>, vector<8x128xf32>
      tpu.vector_store %arg6[%c0_10, %c0_11], %19 {strides = array<i32>} : memref<8x128xf32, #tpu.memory_space<vmem>>, vector<8x128xf32>,
      %c0_12 = arith.constant 0 : index
      %c0_13 = arith.constant 0 : index
      %21 = vector.load %arg7[%c0_12, %c0_13] : memref<8x1xf32, #tpu.memory_space<vmem>>, vector<8x1xf32>
      %cst_14 = arith.constant dense<0.000000e+00> : vector<8xf32>
      %22 = vector.multi_reduction <add>, %13, %cst_14 [1] : vector<8x512xf32> to vector<8xf32>
      %23 = vector.shape_cast %22 : vector<8xf32> to vector<8x1xf32>
      %24 = arith.addf %21, %23 : vector<8x1xf32>
      %c0_15 = arith.constant 0 : index
      %c0_16 = arith.constant 0 : index
      %25 = vector.load %arg7[%c0_15, %c0_16] : memref<8x1xf32, #tpu.memory_space<vmem>>, vector<8x1xf32>
      tpu.vector_store %arg7[%c0_15, %c0_16], %24 {strides = array<i32>} : memref<8x1xf32, #tpu.memory_space<vmem>>, vector<8x1xf32>,
    } else {
    }
    %c0_i32_2 = arith.constant 0 : i32
    %8 = arith.cmpi eq, %arg1, %c0_i32_2 : i32
    %9 = arith.extui %8 : i1 to i32
    %c0_i32_3 = arith.constant 0 : i32
    %10 = arith.cmpi ne, %9, %c0_i32_3 : i32
    scf.if %10 {
      %c0 = arith.constant 0 : index
      %c0_4 = arith.constant 0 : index
      %11 = vector.load %arg7[%c0, %c0_4] : memref<8x1xf32, #tpu.memory_space<vmem>>, vector<8x1xf32>
      %cst = arith.constant 9.99999971E-10 : f32
      %12 = vector.broadcast %cst : f32 to vector<8x1xf32>
      %13 = arith.maximumf %11, %12 : vector<8x1xf32>
      %c0_5 = arith.constant 0 : index
      %c0_6 = arith.constant 0 : index
      %14 = vector.load %arg6[%c0_5, %c0_6] : memref<8x128xf32, #tpu.memory_space<vmem>>, vector<8x128xf32>
      %15 = vector.broadcast %13 : vector<8x1xf32> to vector<8x128xf32>
      %16 = arith.divf %14, %15 : vector<8x128xf32>
      %c0_7 = arith.constant 0 : index
      %c0_8 = arith.constant 0 : index
      %17 = vector.load %arg5[%c0_7, %c0_8] : memref<8x128xf32, #tpu.memory_space<vmem>>, vector<8x128xf32>
      tpu.vector_store %arg5[%c0_7, %c0_8], %16 {strides = array<i32>} : memref<8x128xf32, #tpu.memory_space<vmem>>, vector<8x128xf32>,
    } else {
    }
    return
  }
  func.func @transform_0(%arg0: i32, %arg1: i32, %arg2: memref<2xi32, #tpu.memory_space<smem>>) -> (i32, i32, i32) {
    %0 = arith.index_cast %arg0 : i32 to index
    %1 = memref.load %arg2[%0] : memref<2xi32, #tpu.memory_space<smem>>
    %2 = arith.minsi %arg1, %1 : i32
    %c0_i32 = arith.constant 0 : i32
    %c0_i32_0 = arith.constant 0 : i32
    return %arg0, %2, %c0_i32 : i32, i32, i32
  }
  func.func @transform_1(%arg0: i32, %arg1: i32, %arg2: memref<2xi32, #tpu.memory_space<smem>>) -> (i32, i32) {
    %0 = arith.index_cast %arg0 : i32 to index
    %1 = memref.load %arg2[%0] : memref<2xi32, #tpu.memory_space<smem>>
    %2 = arith.minsi %arg1, %1 : i32
    %c0_i32 = arith.constant 0 : i32
    return %arg0, %2 : i32, i32
  }
  func.func @transform_2(%arg0: i32, %arg1: i32, %arg2: memref<2xi32, #tpu.memory_space<smem>>) -> (i32, i32) {
    %c0_i32 = arith.constant 0 : i32
    %c0_i32_0 = arith.constant 0 : i32
    return %arg0, %c0_i32 : i32, i32
  }
}

</mosaic_0001>

<bundles_post_ra>
// kernel: tpu_custom_call.1
= control target key start
LH: loop header
LB: loop body
LE: loop exit
PB: predicated region body
PF: predicated region fallthrough
CT: control target
= control target key end

     0   :  { %s9243_s0 = inlined_call_operand.hbm [shape: s32[2], index: 0, kind: input, shape index: {}]   ;;  %s9244_s1 = inlined_call_operand.hbm [shape: bf16[16,512,128], index: 1, kind: input, shape index: {}]   ;;  %s9245_s2 = inlined_call_operand.hbm [shape: f32[16,512], index: 2, kind: input, shape index: {}]   ;;  %s9246_s3 = inlined_call_operand.hbm [shape: f32[16,128], index: 3, kind: output, shape index: {}]  }
   0x1   :  { %9288 = sst [smem:[#allocation273_spill]] %s9244_s1  ;;  %s6122_s14 = scalar_lea.hbm %s9243_s0, 16 }
   0x2   :  { %9289 = sst [smem:[#allocation274_spill]] %s9246_s3  ;;  %p6123_p0 = scmp.ne.s32.totalorder %s9243_s0, %s6122_s14 }
   0x3   :  { %p6126_p1 = scmp.lt.u32.totalorder %s6122_s14, %s9243_s0 }
   0x5   :  { %p6128_p2 = pnand %p6126_p1, %p6123_p0 }
   0x7   :  { %6131 = shalt.err (!%p6128_p2)  }
   0x8   :  { %s6330_s19 = smov [#allocation5]  }
   0x9   :  { %9 = dma.hbm_to_smem %s9243_s0, 16, %s6330_s19, [#allocation4] }
   0xa   :  { %6268 = dma.done.wait [#allocation4], 16 }
   0xb   :  { %6269 = vsyncadd [#allocation4], 4294967280 }
   0xc   :  { %11 = sfence }
   0xd   :  { %12 = vsyncpa [#allocation7], 0 }
   0xe   :  { %14 = vsyncpa [#allocation7 + $0x1], 0 }
   0xf   :  { %15 = vsyncpa [#allocation10], 0 }
  0x10   :  { %17 = vsyncpa [#allocation10 + $0x1], 0 }
  0x11   :  { %18 = vsyncpa [#allocation8], 0 }
  0x12   :  { %20 = vsyncpa [#allocation8 + $0x1], 0  ;;  %s6370_s22 = smov 0   ;;  %s6372_s23 = smov 0  }
  0x13   :  { %s6374_s24 = smov 0   ;;  %s6376_s25 = smov 0  }
  0x14   :  { %s6378_s26 = smov 0   ;;  %s6380_s0 = smov 0  }
  0x15   :  { %s6382_s27 = smov 0   ;;  %s6384_s28 = smov 0  }
  0x16   :  { %s6386_s29 = smov 0   ;;  %s6388_s30 = smov 0  }
  0x17   :  { %s6390_s4 = smov 0   ;;  %s6392_s5 = smov 0  }
  0x18 LB: > { %9290 = sst [smem:[#allocation20_spill]] %s6316_s29  ;;  %s38_s6 = sadd.s32 1, %s6324_s4  ;;  %s6328_s5 = sphi %s6392_s5, %s26_s5   ;;  %s6324_s4 = sphi %s6390_s4, %s10077_s4   ;;  %s6320_s30 = sphi %s6388_s30, %s10076_s30   ;;  %s6316_s29 = sphi %s6386_s29, %s10066_s29   ;;  %s6312_s28 = sphi %s6384_s28, %s10075_s28   ;;  %s6308_s27 = sphi %s6382_s27, %s10074_s27   ;;  %s6304_s0 = sphi %s6380_s0, %s10073_s0   ;;  %s6300_s26 = sphi %s6378_s26, %s10072_s26   ;;  %s6296_s25 = sphi %s6376_s25, %s10071_s25   ;;  %s6292_s24 = sphi %s6374_s24, %s10070_s24   ;;  %s6288_s23 = sphi %s6372_s23, %s10069_s23   ;;  %s6284_s22 = sphi %s6370_s22, %s10068_s22  }
  0x19   : > { %s42_s7 = sld [smem:[#allocation5 + %s6324_s4]]  ;;  %p40_p3 = scmp.ge.s32.totalorder %s38_s6, 2 }
  0x1a   : > { %p60_p4 = scmp.ne.s32.totalorder %s6316_s29, %s6312_s28  ;;  %p9250_p5 = scmp.eq.s32.totalorder %s6328_s5, 0 }
  0x1b   : > { %s10079_s6 = smov (%p40_p3, %s38_s6), 0  ;;  %s53_s8 = sadd.s32 1, %s6316_s29 }
  0x1c   : > { %9291 = sst [smem:[#allocation21_spill]] %s10079_s6  ;;  %p6441_p6 = por %p9250_p5, %p60_p4 }
  0x1d   : > { %s45_s9 = sld [smem:[#allocation5 + %s10079_s6]]  ;;  %s6447_s11 = ssub.s32 %s6324_s4, %s10079_s6 }
  0x1e   : > { %s9247_s12 = sand.u32 1, %s6316_s29   ;;  %p9249_p11 = scmp.lt.s32.totalorder %s6328_s5, 2 }
  0x1f   : > { %p4673_p7 = scmp.gt.s32.totalorder %s42_s7, 0  ;;  %s4679_s13 = sshll.u32 %s9247_s12, 11 }
  0x20   : > { %s5980_s14 = scalar_select %p6441_p6, [#allocation5], [#allocation12] }
  0x21   : > { %s10081_s7 = smov (%p4673_p7, %s42_s7), 0  ;;  %s4700_s17 = sshll.u32 %s6324_s4, 9 }
  0x22   : > { %s5981_s15 = scalar_select %p6441_p6, %s6324_s4, 0 }
  0x23   : > { %p4674_p12 = scmp.gt.s32.totalorder %s45_s9, 0  ;;  %s154_s19 = scalar_lea.vmem [#allocation6], %s4679_s13 }
  0x24   : > { %s167_s20 = sshll.u32 %s154_s19, 4  ;;  %p6468_p0 = pnand %p9249_p11, %p6441_p6  ;;  %s6479_s20 = int_to_ptr.vmem [resolvable:$true] %s167_s20 }
  0x25   : > { %s10083_s9 = smov (%p4674_p12, %s45_s9), 0  ;;  %s10085_s14 = smov (!%p9249_p11, %s5980_s14), [#allocation14] }
  0x26   : > { %s49_s16 = ssub.s32 %s10081_s7, %s10083_s9  ;;  %s10087_s15 = smov (!%p9249_p11, %s5981_s15), 0 }
  0x27   : > { %s50_s18 = sor.u32 %s49_s16, %s6447_s11  ;;  %s155_s7 = sld [smem:[%s10085_s14 + %s10087_s15]] }
  0x28   : > { %p51_p13 = scmp.eq.s32.totalorder %s50_s18, 0  ;;  %p4690_p1 = scmp.ge.s32.totalorder %s6328_s5, 1 }
  0x29   : > { %p199_p2 = scmp.lt.s32.totalorder %s6328_s5, 3  ;;  %s4671_s13 = sadd.s32 4294967295, %s6328_s5  }
  0x2a   : > { %s6475_s12 = scalar_select %p51_p13, %s6316_s29, %s53_s8  }
  0x2b   : > { %p6483_p3 = pnand %p4690_p1, %p199_p2  ;;  %p6490_p6 = scmp.eq.s32.totalorder %s4671_s13, 0 }
  0x2c   : > { %9294 = sst [smem:[#allocation22_spill]] %s6475_s12  ;;  %s9297_s1 = sld [smem:[#allocation273_spill]] }
  0x2d   : > { %s9295_s9 = scalar_select %p6483_p3, 1, 0 }
  0x2e   : > { %p4680_p4 = scmp.gt.s32.totalorder %s155_s7, 0  ;;  %s6500_s12 = sld [smem:[#allocation5 + %s6324_s4]] }
  0x2f   : > { %p6134_p12 = pneg %p6468_p0 }
  0x30   : > { %s10089_s7 = smov (%p4680_p4, %s155_s7), 0 }
  0x31   : > { %s4682_s10 = sshll.u32 %s10089_s7, 6  ;;  %s9298_s7 = sand.u32 1, %s6316_s29  }
  0x32   : > { %s164_s8 = sadd.s32 %s4700_s17, %s4682_s10  ;;  %s6504_s3 = scalar_lea.sflag [#allocation7], %s9298_s7 }
  0x33   : > { %s4684_s16 = sshll.u32 %s164_s8, 6 }
  0x34   : > { %s6497_s19 = scalar_lea.hbm %s9297_s1, %s4684_s16  ;;  %s6137_s16 = scalar_lea.hbm %s9297_s1, 65536 }
  0x35   : > { %s6132_s17 = scalar_lea.hbm %s6497_s19, 32768  ;;  %p6138_p2 = scmp.lt.u32.totalorder %s6497_s19, %s9297_s1 }
  0x36   : > { %p6133_p7 = scmp.ne.s32.totalorder %s6497_s19, %s6132_s17  ;;  %p6139_p4 = scmp.lt.u32.totalorder %s6137_s16, %s6132_s17 }
  0x37   : > { %p6141_p11 = scmp.lt.u32.totalorder %s6132_s17, %s6497_s19 }
  0x38   : > { %p6135_p13 = pnand %p6134_p12, %p6133_p7  ;;  %p6140_p9 = por %p6139_p4, %p6138_p2 }
  0x3a   : > { %p6136_p1 = pneg %p6135_p13  ;;  %p6142_p5 = por %p6141_p11, %p6140_p9 }
  0x3c   : > { %p6143_p10 = pnand %p6142_p5, %p6136_p1 }
  0x3e   : > { %6146 = shalt.err (!%p6143_p10)
}
  0x3f   : > { %s6147_s7 = scalar_lea.vmem %s6479_s20, 32768  ;;  %s6331_s10 = smov [#allocation6]  }
  0x40   : > { %p6148_p7 = scmp.ne.s32.totalorder %s6479_s20, %s6147_s7  ;;  %s6152_s8 = sshll.u32 %s6331_s10, 4  ;;  %s6153_s8 = int_to_ptr.vmem [resolvable:$false] %s6152_s8 }
  0x41   : > { %s6154_s14 = scalar_lea.vmem %s6153_s8, 65536  ;;  %p6155_p3 = scmp.lt.s32.totalorder %s6479_s20, %s6153_s8 }
  0x42   : > { %p6150_p13 = pnand %p6148_p7, %p6134_p12  ;;  %p6156_p2 = scmp.lt.s32.totalorder %s6154_s14, %s6147_s7 }
  0x44   : > { %p6151_p8 = pneg %p6150_p13  ;;  %p6157_p4 = por %p6156_p2, %p6155_p3 }
  0x46   : > { %p6158_p9 = pnand %p6157_p4, %p6151_p8 }
  0x48   : > { %6161 = shalt.err (!%p6158_p9)
}
  0x49   : > { %s6332_s17 = smov 64   ;;  %s6333_s16 = smov 4  }
  0x4a   : > { %5995 = dma.hbm_to_vmem [thread:$0]  (!%p6468_p0), %s6497_s19, 32768, %s6479_s20, %s6504_s3, %s6332_s17, %s6332_s17, %s6333_s16  }
  0x4b   : > { %p9299_p5 = scmp.ne.s32.totalorder %s6312_s28, %s6308_s27  ;;  %s79_s7 = sld [smem:[#allocation5 + %s10079_s6]] }
  0x4c   : > { %s4672_s10 = sadd.s32 4294967294, %s6328_s5   ;;  %p100_p10 = scmp.ne.s32.totalorder %s6300_s26, %s6296_s25 }
  0x4d   : > { %p6537_p8 = por %p6490_p6, %p9299_p5  ;;  %s113_s8 = sadd.s32 1, %s6292_s24 }
  0x4e   : > { %p94_p11 = scmp.ne.s32.totalorder %s6304_s0, %s6300_s26  ;;  %p123_p3 = scmp.ne.s32.totalorder %s6292_s24, %s6288_s23 }
  0x4f   : > { %p4675_p12 = scmp.gt.s32.totalorder %s6500_s12, 0  ;;  %p6553_p0 = por %p100_p10, %p6490_p6 }
  0x50   : > { %p9302_p1 = scmp.eq.s32.totalorder %s6447_s11, 0  ;;  %p124_p13 = scmp.eq.s32.totalorder %s4671_s13, 1 }
  0x51   : > { %s9301_s3 = scalar_select %p6553_p0, 1, 0 }
  0x52   : > { %s6560_s27 = scalar_select %p9302_p1, %s6292_s24, %s113_s8  }
  0x53   : > { %s10091_s12 = smov (%p4675_p12, %s6500_s12), 0  ;;  %p4676_p7 = scmp.gt.s32.totalorder %s79_s7, 0 }
  0x54   : > { %p129_p2 = scmp.ne.s32.totalorder %s6288_s23, %s6284_s22  ;;  %p130_p4 = scmp.eq.s32.totalorder %s4672_s10, 1 }
  0x55   : > { %s10093_s7 = smov (%p4676_p7, %s79_s7), 0  ;;  %p6567_p9 = por %p124_p13, %p123_p3 }
  0x56   : > { %p6571_p6 = por %p130_p4, %p129_p2  ;;  %s83_s21 = ssub.s32 %s10091_s12, %s10093_s7 }
  0x57   : > { %s9303_s25 = scalar_select %p6567_p9, 1, 0 }
  0x58   : > { %s9304_s20 = scalar_select %p6571_p6, 1, 0 }
  0x59   : > { %s87_s18 = sadd.s32 1, %s6304_s0  ;;  %s84_s19 = sor.u32 %s83_s21, %s6447_s11 }
  0x5a   : > { %p9305_p5 = scmp.eq.s32.totalorder %s6328_s5, 0  ;;  %p85_p12 = scmp.eq.s32.totalorder %s84_s19, 0 }
  0x5b   : > { %s177_s13 = sand.u32 1, %s6304_s0   ;;  %p9307_p3 = scmp.lt.s32.totalorder %s6328_s5, 2 }
  0x5c   : > { %p96_p10 = por %p94_p11, %p9305_p5  ;;  %s4685_s12 = sshll.u32 %s177_s13, 5 }
  0x5d   : > { %s6584_s14 = scalar_select %p85_p12, %s6304_s0, %s87_s18  }
  0x5e   : > { %s5983_s17 = scalar_select %p96_p10, [#allocation5], [#allocation13] }
  0x5f   : > { %9306 = sst [smem:[#allocation23_spill]] %s6584_s14  ;;  %p9308_p1 = pmov %p9307_p3 }
  0x60   : > { %s5984_s16 = scalar_select %p96_p10, %s6324_s4, 0 }
  0x61   : > { %s10095_s17 = smov (!%p9307_p3, %s5983_s17), [#allocation15]  ;;  %p9309_p7 = pmov %p9308_p1 }
  0x62   : > { %s10097_s16 = smov (!%p9308_p1, %s5984_s16), 0  ;;  %s4688_s7 = sshll.u32 %s6324_s4, 2 }
  0x63   : > { %p6593_p13 = pnand %p9309_p7, %p96_p10  ;;  %s182_s11 = sld [smem:[%s10095_s17 + %s10097_s16]] }
  0x64   : > { %s181_s8 = scalar_lea.vmem [#allocation9], %s4685_s12  ;;  %s178_s17 = scalar_lea.sflag [#allocation10], %s177_s13 }
  0x65   : > { %s194_s21 = sshll.u32 %s181_s8, 4  ;;  %p6164_p4 = pneg %p6593_p13  ;;  %s6598_s21 = int_to_ptr.vmem [resolvable:$true] %s194_s21 }
  0x69   : > { %p4686_p11 = scmp.gt.s32.totalorder %s182_s11, 0 }
  0x6b   : > { %s10099_s11 = smov (%p4686_p11, %s182_s11), 0 }
  0x6c   : > { %s4687_s18 = sshll.u32 %s10099_s11, 2 }
  0x6d   : > { %s190_s19 = sadd.s32 %s4688_s7, %s4687_s18  ;;  %s6167_s7 = scalar_lea.hbm %s9245_s2, 1024 }
  0x6e   : > { %s4689_s1 = sshll.u32 %s190_s19, 7 }
  0x6f   : > { %s6603_s14 = scalar_lea.hbm %s9245_s2, %s4689_s1 }
  0x70   : > { %s6162_s16 = scalar_lea.hbm %s6603_s14, 512  ;;  %p6168_p12 = scmp.lt.u32.totalorder %s6603_s14, %s9245_s2 }
  0x71   : > { %p6163_p2 = scmp.ne.s32.totalorder %s6603_s14, %s6162_s16  ;;  %p6169_p3 = scmp.lt.u32.totalorder %s6167_s7, %s6162_s16 }
  0x72   : > { %p6171_p7 = scmp.lt.u32.totalorder %s6162_s16, %s6603_s14 }
  0x73   : > { %p6165_p5 = pnand %p6164_p4, %p6163_p2  ;;  %p6170_p1 = por %p6169_p3, %p6168_p12 }
  0x75   : > { %p6166_p10 = pneg %p6165_p5  ;;  %p6172_p11 = por %p6171_p7, %p6170_p1 }
  0x77   : > { %p6173_p6 = pnand %p6172_p11, %p6166_p10 }
  0x79   : > { %6176 = shalt.err (!%p6173_p6)
}
  0x7a   : > { %s6177_s6 = scalar_lea.vmem %s6598_s21, 512  ;;  %s6334_s13 = smov [#allocation9]  }
  0x7b   : > { %p6178_p2 = scmp.ne.s32.totalorder %s6598_s21, %s6177_s6  ;;  %s6182_s8 = sshll.u32 %s6334_s13, 4  ;;  %s6183_s8 = int_to_ptr.vmem [resolvable:$false] %s6182_s8 }
  0x7c   : > { %s6184_s18 = scalar_lea.vmem %s6183_s8, 1024  ;;  %p6185_p0 = scmp.lt.s32.totalorder %s6598_s21, %s6183_s8 }
  0x7d   : > { %p6180_p5 = pnand %p6178_p2, %p6164_p4  ;;  %p6186_p12 = scmp.lt.s32.totalorder %s6184_s18, %s6177_s6 }
  0x7f   : > { %p6181_p9 = pneg %p6180_p5  ;;  %p6187_p3 = por %p6186_p12, %p6185_p0 }
  0x81   : > { %p6188_p1 = pnand %p6187_p3, %p6181_p9 }
  0x83   : > { %6191 = shalt.err (!%p6188_p1)
}
  0x84   : > { %6000 = dma.hbm_to_vmem [thread:$0]  (!%p6593_p13), %s6603_s14, 512, %s6598_s21, %s178_s17  }
  0x85   : > { %p9311_p6 = scmp.ne.s32.totalorder %s9295_s9, 0 }
  0x86   : > { %s205_s19 = sand.u32 (!%p9311_p6), 1, %s6312_s28  }
  0x87   : > { %203 = sbr.rel (%p9311_p6) target bundleno = 1536 (0x600), region = 28  ;;  %s4691_s16 = sshll.u32 (!%p9311_p6), %s205_s19, 11 }
  0x88   : > { %s206_s11 = scalar_lea.sflag (!%p9311_p6), [#allocation7], %s205_s19  ;;  %s6633_s12 = scalar_lea.vmem (!%p9311_p6), [#allocation6], %s4691_s16 }
  0x8e   : > { %6271 = dma.done.wait (%p6537_p8), %s206_s11, 32768  }
  0x8f   : > { %6273 = vsyncadd (%p6537_p8), %s206_s11, 4294934528  ;;  %s214_s10 = sand.u32 1, %s6300_s26   ;;  %p9312_p0 = scmp.ne.s32.totalorder %s9301_s3, 0 }
  0x90   : > { %s4692_s7 = sshll.u32 %s214_s10, 5  ;;  %s215_s14 = scalar_lea.sflag [#allocation10], %s214_s10 }
  0x91   : > { %s6640_s21 = scalar_lea.vmem [#allocation9], %s4692_s7 }
  0x92   : > { %6275 = dma.done.wait (%p9312_p0), %s215_s14, 512  }
  0x93   : > { %6277 = vsyncadd (%p9312_p0), %s215_s14, 4294966784  ;;  %s241_s9 = sand.u32 1, %s6288_s23   ;;  %vm258_vm0 = vcmask 7168   ;;  %s260_s17 = sld [smem:[#allocation5 + %s6320_s30]]  ;;  %v6335_v0 = vmov 0.0  }
  0x94   : > { %s6650_s15 = sshll.u32 %s241_s9, 3  ;;  %257 = vst [vmem:[#allocation2] sm:$0xff] %v6335_v0  ;;  %259 = vst.msk [vmem:[#allocation3] sm:$0xff] %vm258_vm0, %v6335_v0 }
  0x95   : > { %s243_s29 = scalar_lea.vmem [#allocation11], %s6650_s15 }
  0x99   : > { %p4695_p8 = scmp.lt.s32.totalorder %s260_s17, 0 }
  0x9b   : > { %264 = sbr.rel (%p4695_p8) target bundleno = 1372 (0x55c), region = 44 }
  0xa2   : > { %v1294_v1 = vlaneseq  ;;  %v6657_v3 = vld [vmem:[%s6640_s21] sm:$0xff]  ;;  %v6662_v6 = vld [vmem:[%s6640_s21 + $0x8] sm:$0xff]  ;;  %v6666_v8 = vld [vmem:[%s6640_s21 + $0x10] sm:$0xff]  ;;  %vm4510_vm1 = vcmask 1041409   ;;  %vm4512_vm2 = vcmask 1042434   ;;  %vm4514_vm3 = vcmask 1043459  }
  0xa3   : > { %v6670_v10 = vld [vmem:[%s6640_s21 + $0x18] sm:$0xff]  ;;  %vm4516_vm4 = vcmask 1044484   ;;  %vm4518_vm5 = vcmask 1045509   ;;  %vm4520_vm6 = vcmask 1046534   ;;  %vm4522_vm7 = vcmask 1047559  }
  0xa4   : > { %v6654_v2 = vshrl.u32 %v1294_v1, 7 }
  0xa6   : > { %v1296_v4 = vsub.s32 0, %v6654_v2  ;;  %v6682_v16 = vsub.s32 1, %v6654_v2 }
  0xa8   : > { %v1297_v5 = vrot.slane %v6657_v3, %v1296_v4  ;;  %v1364_v7 = vrot.slane %v6662_v6, %v1296_v4  ;;  %v1431_v9 = vrot.slane %v6666_v8, %v1296_v4  ;;  %v1498_v11 = vrot.slane %v6670_v10, %v1296_v4 }
  0xa9   : > { %v1565_v19 = vrot.slane %v6657_v3, %v6682_v16  ;;  %v1632_v36 = vrot.slane %v6662_v6, %v6682_v16  ;;  %v1699_v53 = vrot.slane %v6666_v8, %v6682_v16 }
  0xaa   : > { %1307 = vbcast.lane.b32.xlu1 %v1297_v5, 272  ;;  %1299 = vbcast.lane.b32.xlu0 %v1297_v5, 256 }
  0xae   : > { %1311 = vbcast.lane.b32.xlu1 %v1297_v5, 280  ;;  %1303 = vbcast.lane.b32.xlu0 %v1297_v5, 264 }
  0xb2   : > { %1319 = vbcast.lane.b32.xlu1 %v1297_v5, 296  ;;  %1315 = vbcast.lane.b32.xlu0 %v1297_v5, 288 }
  0xb6   : > { %1327 = vbcast.lane.b32.xlu1 %v1297_v5, 312  ;;  %1323 = vbcast.lane.b32.xlu0 %v1297_v5, 304 }
  0xba   : > { %1335 = vbcast.lane.b32.xlu1 %v1297_v5, 328  ;;  %1331 = vbcast.lane.b32.xlu0 %v1297_v5, 320 }
  0xbe   : > { %1343 = vbcast.lane.b32.xlu1 %v1297_v5, 344  ;;  %1339 = vbcast.lane.b32.xlu0 %v1297_v5, 336 }
  0xc2   : > { %1351 = vbcast.lane.b32.xlu1 %v1297_v5, 360  ;;  %1347 = vbcast.lane.b32.xlu0 %v1297_v5, 352 }
  0xc6   : > { %1359 = vbcast.lane.b32.xlu1 %v1297_v5, 376  ;;  %1355 = vbcast.lane.b32.xlu0 %v1297_v5, 368 }
  0xca   : > { %1370 = vbcast.lane.b32.xlu1 %v1364_v7, 264  ;;  %1366 = vbcast.lane.b32.xlu0 %v1364_v7, 256 }
  0xce   : > { %1378 = vbcast.lane.b32.xlu1 %v1364_v7, 280  ;;  %1374 = vbcast.lane.b32.xlu0 %v1364_v7, 272 }
  0xd2   : > { %1386 = vbcast.lane.b32.xlu1 %v1364_v7, 296  ;;  %1382 = vbcast.lane.b32.xlu0 %v1364_v7, 288 }
  0xd6   : > { %1394 = vbcast.lane.b32.xlu1 %v1364_v7, 312  ;;  %1390 = vbcast.lane.b32.xlu0 %v1364_v7, 304 }
  0xda   : > { %1402 = vbcast.lane.b32.xlu1 %v1364_v7, 328  ;;  %1398 = vbcast.lane.b32.xlu0 %v1364_v7, 320 }
  0xde   : > { %1410 = vbcast.lane.b32.xlu1 %v1364_v7, 344  ;;  %1406 = vbcast.lane.b32.xlu0 %v1364_v7, 336 }
  0xe2   : > { %1418 = vbcast.lane.b32.xlu1 %v1364_v7, 360  ;;  %1414 = vbcast.lane.b32.xlu0 %v1364_v7, 352 }
  0xe6   : > { %1426 = vbcast.lane.b32.xlu1 %v1364_v7, 376  ;;  %1422 = vbcast.lane.b32.xlu0 %v1364_v7, 368 }
  0xea   : > { %1437 = vbcast.lane.b32.xlu1 %v1431_v9, 264  ;;  %1433 = vbcast.lane.b32.xlu0 %v1431_v9, 256 }
  0xee   : > { %1445 = vbcast.lane.b32.xlu1 %v1431_v9, 280  ;;  %1441 = vbcast.lane.b32.xlu0 %v1431_v9, 272 }
  0xf2   : > { %1453 = vbcast.lane.b32.xlu1 %v1431_v9, 296  ;;  %1449 = vbcast.lane.b32.xlu0 %v1431_v9, 288 }
  0xf6   : > { %1461 = vbcast.lane.b32.xlu1 %v1431_v9, 312  ;;  %1457 = vbcast.lane.b32.xlu0 %v1431_v9, 304 }
  0xfa   : > { %1469 = vbcast.lane.b32.xlu1 %v1431_v9, 328  ;;  %1465 = vbcast.lane.b32.xlu0 %v1431_v9, 320 }
  0xfe   : > { %1477 = vbcast.lane.b32.xlu1 %v1431_v9, 344  ;;  %1473 = vbcast.lane.b32.xlu0 %v1431_v9, 336 }
 0x102   : > { %1485 = vbcast.lane.b32.xlu1 %v1431_v9, 360  ;;  %1481 = vbcast.lane.b32.xlu0 %v1431_v9, 352 }
 0x106   : > { %1493 = vbcast.lane.b32.xlu1 %v1431_v9, 376  ;;  %1489 = vbcast.lane.b32.xlu0 %v1431_v9, 368 }
 0x10a   : > { %1504 = vbcast.lane.b32.xlu1 %v1498_v11, 264  ;;  %1500 = vbcast.lane.b32.xlu0 %v1498_v11, 256 }
 0x10e   : > { %1512 = vbcast.lane.b32.xlu1 %v1498_v11, 280  ;;  %1508 = vbcast.lane.b32.xlu0 %v1498_v11, 272 }
 0x112   : > { %1520 = vbcast.lane.b32.xlu1 %v1498_v11, 296  ;;  %1516 = vbcast.lane.b32.xlu0 %v1498_v11, 288 }
 0x116   : > { %1528 = vbcast.lane.b32.xlu1 %v1498_v11, 312  ;;  %1524 = vbcast.lane.b32.xlu0 %v1498_v11, 304 }
 0x11a   : > { %1536 = vbcast.lane.b32.xlu1 %v1498_v11, 328  ;;  %1532 = vbcast.lane.b32.xlu0 %v1498_v11, 320 }
 0x11c   : > { %v6673_v12 = vpop.permute.xlu1 %1307  ;;  %v6675_v13 = vpop.permute.xlu0 %1299 }
 0x11e   : > { %1544 = vbcast.lane.b32.xlu1 %v1498_v11, 344  ;;  %1540 = vbcast.lane.b32.xlu0 %v1498_v11, 336 }
 0x120   : > { %v6677_v14 = vpop.permute.xlu1 %1311  ;;  %v6679_v15 = vpop.permute.xlu0 %1303 }
 0x122   : > { %1552 = vbcast.lane.b32.xlu1 %v1498_v11, 360  ;;  %1548 = vbcast.lane.b32.xlu0 %v1498_v11, 352 }
 0x124   : > { %v6684_v17 = vpop.permute.xlu1 %1319  ;;  %v6686_v18 = vpop.permute.xlu0 %1315 }
 0x126   : > { %1560 = vbcast.lane.b32.xlu1 %v1498_v11, 376  ;;  %1556 = vbcast.lane.b32.xlu0 %v1498_v11, 368  ;;  %v1766_v11 = vrot.slane %v6670_v10, %v6682_v16 }
 0x128   : > { %v6690_v20 = vpop.permute.xlu1 %1327  ;;  %v6692_v21 = vpop.permute.xlu0 %1323 }
 0x12a   : > { %1571 = vbcast.lane.b32.xlu1 %v1565_v19, 264  ;;  %1567 = vbcast.lane.b32.xlu0 %v1565_v19, 256 }
 0x12c   : > { %v6694_v22 = vpop.permute.xlu1 %1335  ;;  %v6696_v23 = vpop.permute.xlu0 %1331 }
 0x12e   : > { %1579 = vbcast.lane.b32.xlu1 %v1565_v19, 280  ;;  %1575 = vbcast.lane.b32.xlu0 %v1565_v19, 272 }
 0x130   : > { %v6698_v24 = vpop.permute.xlu1 %1343  ;;  %v6700_v25 = vpop.permute.xlu0 %1339 }
 0x132   : > { %1587 = vbcast.lane.b32.xlu1 %v1565_v19, 296  ;;  %1583 = vbcast.lane.b32.xlu0 %v1565_v19, 288 }
 0x134   : > { %v6702_v26 = vpop.permute.xlu1 %1351  ;;  %v6704_v27 = vpop.permute.xlu0 %1347 }
 0x136   : > { %1595 = vbcast.lane.b32.xlu1 %v1565_v19, 312  ;;  %1591 = vbcast.lane.b32.xlu0 %v1565_v19, 304 }
 0x138   : > { %v6706_v28 = vpop.permute.xlu1 %1359  ;;  %v6708_v29 = vpop.permute.xlu0 %1355 }
 0x13a   : > { %1603 = vbcast.lane.b32.xlu1 %v1565_v19, 328  ;;  %1599 = vbcast.lane.b32.xlu0 %v1565_v19, 320 }
 0x13c   : > { %v6710_v30 = vpop.permute.xlu1 %1370  ;;  %v6712_v31 = vpop.permute.xlu0 %1366 }
 0x13e   : > { %1611 = vbcast.lane.b32.xlu1 %v1565_v19, 344  ;;  %1607 = vbcast.lane.b32.xlu0 %v1565_v19, 336 }
 0x140   : > { %v6714_v32 = vpop.permute.xlu1 %1378  ;;  %v6716_v33 = vpop.permute.xlu0 %1374 }
 0x142   : > { %1619 = vbcast.lane.b32.xlu1 %v1565_v19, 360  ;;  %1615 = vbcast.lane.b32.xlu0 %v1565_v19, 352 }
 0x144   : > { %v6718_v34 = vpop.permute.xlu1 %1386  ;;  %v6720_v35 = vpop.permute.xlu0 %1382 }
 0x146   : > { %1627 = vbcast.lane.b32.xlu1 %v1565_v19, 376  ;;  %1623 = vbcast.lane.b32.xlu0 %v1565_v19, 368 }
 0x148   : > { %v6724_v37 = vpop.permute.xlu1 %1394  ;;  %v6726_v38 = vpop.permute.xlu0 %1390 }
 0x14a   : > { %1638 = vbcast.lane.b32.xlu1 %v1632_v36, 264  ;;  %1634 = vbcast.lane.b32.xlu0 %v1632_v36, 256 }
 0x14c   : > { %v6728_v39 = vpop.permute.xlu1 %1402  ;;  %v6730_v40 = vpop.permute.xlu0 %1398 }
 0x14e   : > { %1646 = vbcast.lane.b32.xlu1 %v1632_v36, 280  ;;  %1642 = vbcast.lane.b32.xlu0 %v1632_v36, 272 }
 0x150   : > { %v6732_v41 = vpop.permute.xlu1 %1410  ;;  %v6734_v42 = vpop.permute.xlu0 %1406 }
 0x152   : > { %1654 = vbcast.lane.b32.xlu1 %v1632_v36, 296  ;;  %1650 = vbcast.lane.b32.xlu0 %v1632_v36, 288 }
 0x154   : > { %v6736_v43 = vpop.permute.xlu1 %1418  ;;  %v6738_v44 = vpop.permute.xlu0 %1414 }
 0x156   : > { %1662 = vbcast.lane.b32.xlu1 %v1632_v36, 312  ;;  %1658 = vbcast.lane.b32.xlu0 %v1632_v36, 304 }
 0x158   : > { %v6740_v45 = vpop.permute.xlu1 %1426  ;;  %v6742_v46 = vpop.permute.xlu0 %1422 }
 0x15a   : > { %1670 = vbcast.lane.b32.xlu1 %v1632_v36, 328  ;;  %1666 = vbcast.lane.b32.xlu0 %v1632_v36, 320 }
 0x15c   : > { %v6744_v47 = vpop.permute.xlu1 %1437  ;;  %v6746_v48 = vpop.permute.xlu0 %1433 }
 0x15e   : > { %1678 = vbcast.lane.b32.xlu1 %v1632_v36, 344  ;;  %1674 = vbcast.lane.b32.xlu0 %v1632_v36, 336 }
 0x160   : > { %v6748_v49 = vpop.permute.xlu1 %1445  ;;  %v6750_v50 = vpop.permute.xlu0 %1441 }
 0x161   : > { %9313 = vst [vmem:[#allocation24_spill] sm:$0xff] %v6748_v49  ;;  %9314 = vst [vmem:[#allocation25_spill] sm:$0xff] %v6750_v50 }
 0x162   : > { %1686 = vbcast.lane.b32.xlu1 %v1632_v36, 360  ;;  %1682 = vbcast.lane.b32.xlu0 %v1632_v36, 352 }
 0x164   : > { %v6752_v51 = vpop.permute.xlu1 %1453  ;;  %v6754_v52 = vpop.permute.xlu0 %1449 }
 0x165   : > { %9315 = vst [vmem:[#allocation26_spill] sm:$0xff] %v6752_v51  ;;  %9316 = vst [vmem:[#allocation27_spill] sm:$0xff] %v6754_v52 }
 0x166   : > { %1694 = vbcast.lane.b32.xlu1 %v1632_v36, 376  ;;  %1690 = vbcast.lane.b32.xlu0 %v1632_v36, 368 }
 0x168   : > { %v6758_v54 = vpop.permute.xlu1 %1461  ;;  %v6760_v55 = vpop.permute.xlu0 %1457 }
 0x169   : > { %9317 = vst [vmem:[#allocation28_spill] sm:$0xff] %v6758_v54  ;;  %9318 = vst [vmem:[#allocation29_spill] sm:$0xff] %v6760_v55 }
 0x16a   : > { %1705 = vbcast.lane.b32.xlu1 %v1699_v53, 264  ;;  %1701 = vbcast.lane.b32.xlu0 %v1699_v53, 256 }
 0x16c   : > { %v6762_v56 = vpop.permute.xlu1 %1469  ;;  %v6764_v57 = vpop.permute.xlu0 %1465 }
 0x16d   : > { %9319 = vst [vmem:[#allocation30_spill] sm:$0xff] %v6762_v56  ;;  %9320 = vst [vmem:[#allocation31_spill] sm:$0xff] %v6764_v57 }
 0x16e   : > { %1713 = vbcast.lane.b32.xlu1 %v1699_v53, 280  ;;  %1709 = vbcast.lane.b32.xlu0 %v1699_v53, 272 }
 0x170   : > { %v6766_v58 = vpop.permute.xlu1 %1477  ;;  %v6768_v59 = vpop.permute.xlu0 %1473 }
 0x171   : > { %9321 = vst [vmem:[#allocation32_spill] sm:$0xff] %v6766_v58  ;;  %9322 = vst [vmem:[#allocation33_spill] sm:$0xff] %v6768_v59 }
 0x172   : > { %1721 = vbcast.lane.b32.xlu1 %v1699_v53, 296  ;;  %1717 = vbcast.lane.b32.xlu0 %v1699_v53, 288 }
 0x174   : > { %v6770_v60 = vpop.permute.xlu1 %1485  ;;  %v6772_v61 = vpop.permute.xlu0 %1481 }
 0x175   : > { %9323 = vst [vmem:[#allocation34_spill] sm:$0xff] %v6770_v60  ;;  %9324 = vst [vmem:[#allocation35_spill] sm:$0xff] %v6772_v61 }
 0x176   : > { %1729 = vbcast.lane.b32.xlu1 %v1699_v53, 312  ;;  %1725 = vbcast.lane.b32.xlu0 %v1699_v53, 304 }
 0x178   : > { %v6774_v62 = vpop.permute.xlu1 %1493  ;;  %v6776_v63 = vpop.permute.xlu0 %1489 }
 0x179   : > { %9325 = vst [vmem:[#allocation36_spill] sm:$0xff] %v6774_v62  ;;  %9326 = vst [vmem:[#allocation37_spill] sm:$0xff] %v6776_v63 }
 0x17a   : > { %1737 = vbcast.lane.b32.xlu1 %v1699_v53, 328  ;;  %1733 = vbcast.lane.b32.xlu0 %v1699_v53, 320 }
 0x17c   : > { %v6778_v0 = vpop.permute.xlu1 %1504  ;;  %v6780_v1 = vpop.permute.xlu0 %1500 }
 0x17d   : > { %9327 = vst [vmem:[#allocation38_spill] sm:$0xff] %v6778_v0  ;;  %9328 = vst [vmem:[#allocation39_spill] sm:$0xff] %v6780_v1 }
 0x17e   : > { %1745 = vbcast.lane.b32.xlu1 %v1699_v53, 344  ;;  %1741 = vbcast.lane.b32.xlu0 %v1699_v53, 336 }
 0x180   : > { %v6782_v4 = vpop.permute.xlu1 %1512  ;;  %v6784_v5 = vpop.permute.xlu0 %1508 }
 0x181   : > { %9329 = vst [vmem:[#allocation40_spill] sm:$0xff] %v6782_v4  ;;  %9330 = vst [vmem:[#allocation41_spill] sm:$0xff] %v6784_v5 }
 0x182   : > { %1753 = vbcast.lane.b32.xlu1 %v1699_v53, 360  ;;  %1749 = vbcast.lane.b32.xlu0 %v1699_v53, 352 }
 0x184   : > { %v6786_v7 = vpop.permute.xlu1 %1520  ;;  %v6788_v9 = vpop.permute.xlu0 %1516 }
 0x185   : > { %9331 = vst [vmem:[#allocation42_spill] sm:$0xff] %v6786_v7  ;;  %9332 = vst [vmem:[#allocation43_spill] sm:$0xff] %v6788_v9 }
 0x186   : > { %1761 = vbcast.lane.b32.xlu1 %v1699_v53, 376  ;;  %1757 = vbcast.lane.b32.xlu0 %v1699_v53, 368 }
 0x188   : > { %v6792_v19 = vpop.permute.xlu1 %1528  ;;  %v6794_v36 = vpop.permute.xlu0 %1524 }
 0x189   : > { %9333 = vst [vmem:[#allocation44_spill] sm:$0xff] %v6792_v19  ;;  %9334 = vst [vmem:[#allocation45_spill] sm:$0xff] %v6794_v36 }
 0x18a   : > { %1772 = vbcast.lane.b32.xlu1 %v1766_v11, 264  ;;  %1768 = vbcast.lane.b32.xlu0 %v1766_v11, 256 }
 0x18c   : > { %v6796_v4 = vpop.permute.xlu1 %1536  ;;  %v6798_v5 = vpop.permute.xlu0 %1532 }
 0x18d   : > { %9335 = vst [vmem:[#allocation46_spill] sm:$0xff] %v6796_v4  ;;  %9336 = vst [vmem:[#allocation47_spill] sm:$0xff] %v6798_v5 }
 0x18e   : > { %1780 = vbcast.lane.b32.xlu1 %v1766_v11, 280  ;;  %1776 = vbcast.lane.b32.xlu0 %v1766_v11, 272 }
 0x190   : > { %v6800_v7 = vpop.permute.xlu1 %1544  ;;  %v6802_v9 = vpop.permute.xlu0 %1540 }
 0x191   : > { %9337 = vst [vmem:[#allocation48_spill] sm:$0xff] %v6800_v7  ;;  %9338 = vst [vmem:[#allocation49_spill] sm:$0xff] %v6802_v9 }
 0x192   : > { %1788 = vbcast.lane.b32.xlu1 %v1766_v11, 296  ;;  %1784 = vbcast.lane.b32.xlu0 %v1766_v11, 288 }
 0x194   : > { %v6804_v53 = vpop.permute.xlu1 %1552  ;;  %v6806_v16 = vpop.permute.xlu0 %1548 }
 0x195   : > { %9339 = vst [vmem:[#allocation50_spill] sm:$0xff] %v6804_v53  ;;  %9340 = vst [vmem:[#allocation51_spill] sm:$0xff] %v6806_v16  ;;  %v6821_v53 = vsub.s32 2, %v6654_v2 }
 0x196   : > { %1796 = vbcast.lane.b32.xlu1 %v1766_v11, 312  ;;  %1792 = vbcast.lane.b32.xlu0 %v1766_v11, 304 }
 0x197   : > { %v1833_v16 = vrot.slane %v6657_v3, %v6821_v53 }
 0x198   : > { %v6808_v19 = vpop.permute.xlu1 %1560  ;;  %v6810_v36 = vpop.permute.xlu0 %1556 }
 0x199   : > { %9341 = vst [vmem:[#allocation52_spill] sm:$0xff] %v6808_v19  ;;  %9342 = vst [vmem:[#allocation53_spill] sm:$0xff] %v6810_v36 }
 0x19a   : > { %1804 = vbcast.lane.b32.xlu1 %v1766_v11, 328  ;;  %1800 = vbcast.lane.b32.xlu0 %v1766_v11, 320 }
 0x19c   : > { %v6812_v4 = vpop.permute.xlu1 %1571  ;;  %v6814_v5 = vpop.permute.xlu0 %1567 }
 0x19e   : > { %1812 = vbcast.lane.b32.xlu1 %v1766_v11, 344  ;;  %1808 = vbcast.lane.b32.xlu0 %v1766_v11, 336 }
 0x1a0   : > { %v6816_v7 = vpop.permute.xlu1 %1579  ;;  %v6818_v9 = vpop.permute.xlu0 %1575 }
 0x1a2   : > { %1820 = vbcast.lane.b32.xlu1 %v1766_v11, 360  ;;  %1816 = vbcast.lane.b32.xlu0 %v1766_v11, 352 }
 0x1a4   : > { %v6823_v19 = vpop.permute.xlu1 %1587  ;;  %v6825_v36 = vpop.permute.xlu0 %1583 }
 0x1a6   : > { %1828 = vbcast.lane.b32.xlu1 %v1766_v11, 376  ;;  %1824 = vbcast.lane.b32.xlu0 %v1766_v11, 368 }
 0x1a8   : > { %v6829_v0 = vpop.permute.xlu1 %1595  ;;  %v6831_v1 = vpop.permute.xlu0 %1591 }
 0x1aa   : > { %1839 = vbcast.lane.b32.xlu1 %v1833_v16, 264  ;;  %1835 = vbcast.lane.b32.xlu0 %v1833_v16, 256 }
 0x1ac   : > { %v6833_v62 = vpop.permute.xlu1 %1603  ;;  %v6835_v63 = vpop.permute.xlu0 %1599 }
 0x1ae   : > { %1847 = vbcast.lane.b32.xlu1 %v1833_v16, 280  ;;  %1843 = vbcast.lane.b32.xlu0 %v1833_v16, 272 }
 0x1b0   : > { %v6837_v60 = vpop.permute.xlu1 %1611  ;;  %v6839_v61 = vpop.permute.xlu0 %1607 }
 0x1b2   : > { %1855 = vbcast.lane.b32.xlu1 %v1833_v16, 296  ;;  %1851 = vbcast.lane.b32.xlu0 %v1833_v16, 288 }
 0x1b4   : > { %v6841_v11 = vpop.permute.xlu1 %1619  ;;  %v6843_v58 = vpop.permute.xlu0 %1615 }
 0x1b6   : > { %1863 = vbcast.lane.b32.xlu1 %v1833_v16, 312  ;;  %1859 = vbcast.lane.b32.xlu0 %v1833_v16, 304 }
 0x1b8   : > { %v6845_v59 = vpop.permute.xlu1 %1627  ;;  %v6847_v56 = vpop.permute.xlu0 %1623 }
 0x1b9   : > { %9343 = vst [vmem:[#allocation54_spill] sm:$0xff] %v6845_v59  ;;  %9344 = vst [vmem:[#allocation55_spill] sm:$0xff] %v6847_v56  ;;  %v1900_v59 = vrot.slane %v6662_v6, %v6821_v53 }
 0x1ba   : > { %1871 = vbcast.lane.b32.xlu1 %v1833_v16, 328  ;;  %1867 = vbcast.lane.b32.xlu0 %v1833_v16, 320 }
 0x1bc   : > { %v6849_v57 = vpop.permute.xlu1 %1638  ;;  %v6851_v54 = vpop.permute.xlu0 %1634 }
 0x1bd   : > { %9345 = vst [vmem:[#allocation56_spill] sm:$0xff] %v6849_v57  ;;  %9346 = vst [vmem:[#allocation57_spill] sm:$0xff] %v6851_v54 }
 0x1be   : > { %1879 = vbcast.lane.b32.xlu1 %v1833_v16, 344  ;;  %1875 = vbcast.lane.b32.xlu0 %v1833_v16, 336 }
 0x1c0   : > { %v6853_v55 = vpop.permute.xlu1 %1646  ;;  %v6855_v51 = vpop.permute.xlu0 %1642 }
 0x1c1   : > { %9347 = vst [vmem:[#allocation58_spill] sm:$0xff] %v6853_v55  ;;  %9348 = vst [vmem:[#allocation59_spill] sm:$0xff] %v6855_v51 }
 0x1c2   : > { %1887 = vbcast.lane.b32.xlu1 %v1833_v16, 360  ;;  %1883 = vbcast.lane.b32.xlu0 %v1833_v16, 352 }
 0x1c4   : > { %v6857_v52 = vpop.permute.xlu1 %1654  ;;  %v6859_v49 = vpop.permute.xlu0 %1650 }
 0x1c5   : > { %9349 = vst [vmem:[#allocation60_spill] sm:$0xff] %v6857_v52  ;;  %9350 = vst [vmem:[#allocation61_spill] sm:$0xff] %v6859_v49 }
 0x1c6   : > { %1895 = vbcast.lane.b32.xlu1 %v1833_v16, 376  ;;  %1891 = vbcast.lane.b32.xlu0 %v1833_v16, 368 }
 0x1c8   : > { %v6863_v57 = vpop.permute.xlu1 %1662  ;;  %v6865_v54 = vpop.permute.xlu0 %1658 }
 0x1c9   : > { %9351 = vst [vmem:[#allocation62_spill] sm:$0xff] %v6863_v57  ;;  %9352 = vst [vmem:[#allocation63_spill] sm:$0xff] %v6865_v54 }
 0x1ca   : > { %1906 = vbcast.lane.b32.xlu1 %v1900_v59, 264  ;;  %1902 = vbcast.lane.b32.xlu0 %v1900_v59, 256 }
 0x1cc   : > { %v6867_v55 = vpop.permute.xlu1 %1670  ;;  %v6869_v51 = vpop.permute.xlu0 %1666 }
 0x1cd   : > { %9353 = vst [vmem:[#allocation64_spill] sm:$0xff] %v6867_v55  ;;  %9354 = vst [vmem:[#allocation65_spill] sm:$0xff] %v6869_v51 }
 0x1ce   : > { %1914 = vbcast.lane.b32.xlu1 %v1900_v59, 280  ;;  %1910 = vbcast.lane.b32.xlu0 %v1900_v59, 272 }
 0x1d0   : > { %v6871_v52 = vpop.permute.xlu1 %1678  ;;  %v6873_v49 = vpop.permute.xlu0 %1674 }
 0x1d1   : > { %9355 = vst [vmem:[#allocation66_spill] sm:$0xff] %v6871_v52  ;;  %9356 = vst [vmem:[#allocation67_spill] sm:$0xff] %v6873_v49 }
 0x1d2   : > { %1922 = vbcast.lane.b32.xlu1 %v1900_v59, 296  ;;  %1918 = vbcast.lane.b32.xlu0 %v1900_v59, 288 }
 0x1d4   : > { %v6875_v16 = vpop.permute.xlu1 %1686  ;;  %v6877_v50 = vpop.permute.xlu0 %1682 }
 0x1d5   : > { %9357 = vst [vmem:[#allocation68_spill] sm:$0xff] %v6875_v16  ;;  %9358 = vst [vmem:[#allocation69_spill] sm:$0xff] %v6877_v50 }
 0x1d6   : > { %1930 = vbcast.lane.b32.xlu1 %v1900_v59, 312  ;;  %1926 = vbcast.lane.b32.xlu0 %v1900_v59, 304 }
 0x1d8   : > { %v6879_v57 = vpop.permute.xlu1 %1694  ;;  %v6881_v54 = vpop.permute.xlu0 %1690 }
 0x1d9   : > { %9359 = vst [vmem:[#allocation70_spill] sm:$0xff] %v6879_v57  ;;  %9360 = vst [vmem:[#allocation71_spill] sm:$0xff] %v6881_v54  ;;  %v1967_v57 = vrot.slane %v6666_v8, %v6821_v53 }
 0x1da   : > { %1938 = vbcast.lane.b32.xlu1 %v1900_v59, 328  ;;  %1934 = vbcast.lane.b32.xlu0 %v1900_v59, 320 }
 0x1dc   : > { %v6883_v55 = vpop.permute.xlu1 %1705  ;;  %v6885_v51 = vpop.permute.xlu0 %1701 }
 0x1dd   : > { %9361 = vst [vmem:[#allocation72_spill] sm:$0xff] %v6883_v55  ;;  %9362 = vst [vmem:[#allocation73_spill] sm:$0xff] %v6885_v51 }
 0x1de   : > { %1946 = vbcast.lane.b32.xlu1 %v1900_v59, 344  ;;  %1942 = vbcast.lane.b32.xlu0 %v1900_v59, 336 }
 0x1e0   : > { %v6887_v52 = vpop.permute.xlu1 %1713  ;;  %v6889_v49 = vpop.permute.xlu0 %1709 }
 0x1e1   : > { %9363 = vst [vmem:[#allocation74_spill] sm:$0xff] %v6887_v52  ;;  %9364 = vst [vmem:[#allocation75_spill] sm:$0xff] %v6889_v49 }
 0x1e2   : > { %1954 = vbcast.lane.b32.xlu1 %v1900_v59, 360  ;;  %1950 = vbcast.lane.b32.xlu0 %v1900_v59, 352 }
 0x1e4   : > { %v6891_v16 = vpop.permute.xlu1 %1721  ;;  %v6893_v50 = vpop.permute.xlu0 %1717 }
 0x1e5   : > { %9365 = vst [vmem:[#allocation76_spill] sm:$0xff] %v6891_v16  ;;  %9366 = vst [vmem:[#allocation77_spill] sm:$0xff] %v6893_v50 }
 0x1e6   : > { %1962 = vbcast.lane.b32.xlu1 %v1900_v59, 376  ;;  %1958 = vbcast.lane.b32.xlu0 %v1900_v59, 368 }
 0x1e8   : > { %v6897_v55 = vpop.permute.xlu1 %1729  ;;  %v6899_v51 = vpop.permute.xlu0 %1725 }
 0x1e9   : > { %9367 = vst [vmem:[#allocation78_spill] sm:$0xff] %v6897_v55  ;;  %9368 = vst [vmem:[#allocation79_spill] sm:$0xff] %v6899_v51 }
 0x1ea   : > { %1973 = vbcast.lane.b32.xlu1 %v1967_v57, 264  ;;  %1969 = vbcast.lane.b32.xlu0 %v1967_v57, 256 }
 0x1ec   : > { %v6901_v52 = vpop.permute.xlu1 %1737  ;;  %v6903_v49 = vpop.permute.xlu0 %1733 }
 0x1ed   : > { %9369 = vst [vmem:[#allocation80_spill] sm:$0xff] %v6901_v52  ;;  %9370 = vst [vmem:[#allocation81_spill] sm:$0xff] %v6903_v49 }
 0x1ee   : > { %1981 = vbcast.lane.b32.xlu1 %v1967_v57, 280  ;;  %1977 = vbcast.lane.b32.xlu0 %v1967_v57, 272 }
 0x1f0   : > { %v6905_v16 = vpop.permute.xlu1 %1745  ;;  %v6907_v50 = vpop.permute.xlu0 %1741 }
 0x1f1   : > { %9371 = vst [vmem:[#allocation82_spill] sm:$0xff] %v6905_v16  ;;  %9372 = vst [vmem:[#allocation83_spill] sm:$0xff] %v6907_v50 }
 0x1f2   : > { %1989 = vbcast.lane.b32.xlu1 %v1967_v57, 296  ;;  %1985 = vbcast.lane.b32.xlu0 %v1967_v57, 288 }
 0x1f4   : > { %v6909_v59 = vpop.permute.xlu1 %1753  ;;  %v6911_v54 = vpop.permute.xlu0 %1749 }
 0x1f5   : > { %9373 = vst [vmem:[#allocation84_spill] sm:$0xff] %v6909_v59  ;;  %9374 = vst [vmem:[#allocation85_spill] sm:$0xff] %v6911_v54 }
 0x1f6   : > { %1997 = vbcast.lane.b32.xlu1 %v1967_v57, 312  ;;  %1993 = vbcast.lane.b32.xlu0 %v1967_v57, 304 }
 0x1f8   : > { %v6913_v55 = vpop.permute.xlu1 %1761  ;;  %v6915_v51 = vpop.permute.xlu0 %1757 }
 0x1f9   : > { %9375 = vst [vmem:[#allocation86_spill] sm:$0xff] %v6913_v55  ;;  %9376 = vst [vmem:[#allocation87_spill] sm:$0xff] %v6915_v51  ;;  %v2034_v55 = vrot.slane %v6670_v10, %v6821_v53 }
 0x1fa   : > { %2005 = vbcast.lane.b32.xlu1 %v1967_v57, 328  ;;  %2001 = vbcast.lane.b32.xlu0 %v1967_v57, 320 }
 0x1fc   : > { %v6917_v52 = vpop.permute.xlu1 %1772  ;;  %v6919_v49 = vpop.permute.xlu0 %1768 }
 0x1fd   : > { %9377 = vst [vmem:[#allocation88_spill] sm:$0xff] %v6917_v52  ;;  %9378 = vst [vmem:[#allocation89_spill] sm:$0xff] %v6919_v49 }
 0x1fe   : > { %2013 = vbcast.lane.b32.xlu1 %v1967_v57, 344  ;;  %2009 = vbcast.lane.b32.xlu0 %v1967_v57, 336 }
 0x200   : > { %v6921_v16 = vpop.permute.xlu1 %1780  ;;  %v6923_v50 = vpop.permute.xlu0 %1776 }
 0x201   : > { %9379 = vst [vmem:[#allocation90_spill] sm:$0xff] %v6921_v16  ;;  %9380 = vst [vmem:[#allocation91_spill] sm:$0xff] %v6923_v50 }
 0x202   : > { %2021 = vbcast.lane.b32.xlu1 %v1967_v57, 360  ;;  %2017 = vbcast.lane.b32.xlu0 %v1967_v57, 352 }
 0x204   : > { %v6925_v59 = vpop.permute.xlu1 %1788  ;;  %v6927_v54 = vpop.permute.xlu0 %1784 }
 0x205   : > { %9381 = vst [vmem:[#allocation92_spill] sm:$0xff] %v6925_v59  ;;  %9382 = vst [vmem:[#allocation93_spill] sm:$0xff] %v6927_v54 }
 0x206   : > { %2029 = vbcast.lane.b32.xlu1 %v1967_v57, 376  ;;  %2025 = vbcast.lane.b32.xlu0 %v1967_v57, 368 }
 0x208   : > { %v6931_v52 = vpop.permute.xlu1 %1796  ;;  %v6933_v49 = vpop.permute.xlu0 %1792 }
 0x209   : > { %9383 = vst [vmem:[#allocation94_spill] sm:$0xff] %v6931_v52  ;;  %9384 = vst [vmem:[#allocation95_spill] sm:$0xff] %v6933_v49 }
 0x20a   : > { %2040 = vbcast.lane.b32.xlu1 %v2034_v55, 264  ;;  %2036 = vbcast.lane.b32.xlu0 %v2034_v55, 256 }
 0x20c   : > { %v6935_v16 = vpop.permute.xlu1 %1804  ;;  %v6937_v50 = vpop.permute.xlu0 %1800 }
 0x20d   : > { %9385 = vst [vmem:[#allocation96_spill] sm:$0xff] %v6935_v16  ;;  %9386 = vst [vmem:[#allocation97_spill] sm:$0xff] %v6937_v50 }
 0x20e   : > { %2048 = vbcast.lane.b32.xlu1 %v2034_v55, 280  ;;  %2044 = vbcast.lane.b32.xlu0 %v2034_v55, 272 }
 0x210   : > { %v6939_v59 = vpop.permute.xlu1 %1812  ;;  %v6941_v54 = vpop.permute.xlu0 %1808 }
 0x211   : > { %9387 = vst [vmem:[#allocation98_spill] sm:$0xff] %v6939_v59  ;;  %9388 = vst [vmem:[#allocation99_spill] sm:$0xff] %v6941_v54 }
 0x212   : > { %2056 = vbcast.lane.b32.xlu1 %v2034_v55, 296  ;;  %2052 = vbcast.lane.b32.xlu0 %v2034_v55, 288 }
 0x214   : > { %v6943_v57 = vpop.permute.xlu1 %1820  ;;  %v6945_v53 = vpop.permute.xlu0 %1816 }
 0x215   : > { %9389 = vst [vmem:[#allocation100_spill] sm:$0xff] %v6943_v57  ;;  %9390 = vst [vmem:[#allocation101_spill] sm:$0xff] %v6945_v53  ;;  %v6960_v53 = vsub.s32 3, %v6654_v2 }
 0x216   : > { %2064 = vbcast.lane.b32.xlu1 %v2034_v55, 312  ;;  %2060 = vbcast.lane.b32.xlu0 %v2034_v55, 304 }
 0x217   : > { %v2101_v57 = vrot.slane %v6657_v3, %v6960_v53 }
 0x218   : > { %v6947_v52 = vpop.permute.xlu1 %1828  ;;  %v6949_v49 = vpop.permute.xlu0 %1824 }
 0x219   : > { %9391 = vst [vmem:[#allocation102_spill] sm:$0xff] %v6947_v52  ;;  %9392 = vst [vmem:[#allocation103_spill] sm:$0xff] %v6949_v49 }
 0x21a   : > { %2072 = vbcast.lane.b32.xlu1 %v2034_v55, 328  ;;  %2068 = vbcast.lane.b32.xlu0 %v2034_v55, 320 }
 0x21c   : > { %v6951_v16 = vpop.permute.xlu1 %1839  ;;  %v6953_v50 = vpop.permute.xlu0 %1835 }
 0x21d   : > { %9393 = vst [vmem:[#allocation104_spill] sm:$0xff] %v6951_v16  ;;  %9394 = vst [vmem:[#allocation105_spill] sm:$0xff] %v6953_v50 }
 0x21e   : > { %2080 = vbcast.lane.b32.xlu1 %v2034_v55, 344  ;;  %2076 = vbcast.lane.b32.xlu0 %v2034_v55, 336 }
 0x220   : > { %v6955_v59 = vpop.permute.xlu1 %1847  ;;  %v6957_v54 = vpop.permute.xlu0 %1843 }
 0x221   : > { %9395 = vst [vmem:[#allocation106_spill] sm:$0xff] %v6955_v59  ;;  %9396 = vst [vmem:[#allocation107_spill] sm:$0xff] %v6957_v54 }
 0x222   : > { %2088 = vbcast.lane.b32.xlu1 %v2034_v55, 360  ;;  %2084 = vbcast.lane.b32.xlu0 %v2034_v55, 352 }
 0x224   : > { %v6962_v52 = vpop.permute.xlu1 %1855  ;;  %v6964_v49 = vpop.permute.xlu0 %1851 }
 0x225   : > { %9397 = vst [vmem:[#allocation108_spill] sm:$0xff] %v6962_v52  ;;  %9398 = vst [vmem:[#allocation109_spill] sm:$0xff] %v6964_v49 }
 0x226   : > { %2096 = vbcast.lane.b32.xlu1 %v2034_v55, 376  ;;  %2092 = vbcast.lane.b32.xlu0 %v2034_v55, 368 }
 0x228   : > { %v6968_v51 = vpop.permute.xlu1 %1863  ;;  %v6970_v50 = vpop.permute.xlu0 %1859 }
 0x229   : > { %9399 = vst [vmem:[#allocation110_spill] sm:$0xff] %v6968_v51  ;;  %9400 = vst [vmem:[#allocation111_spill] sm:$0xff] %v6970_v50 }
 0x22a   : > { %2107 = vbcast.lane.b32.xlu1 %v2101_v57, 264  ;;  %2103 = vbcast.lane.b32.xlu0 %v2101_v57, 256 }
 0x22c   : > { %v6972_v59 = vpop.permute.xlu1 %1871  ;;  %v6974_v54 = vpop.permute.xlu0 %1867 }
 0x22d   : > { %9401 = vst [vmem:[#allocation112_spill] sm:$0xff] %v6972_v59  ;;  %9402 = vst [vmem:[#allocation113_spill] sm:$0xff] %v6974_v54 }
 0x22e   : > { %2115 = vbcast.lane.b32.xlu1 %v2101_v57, 280  ;;  %2111 = vbcast.lane.b32.xlu0 %v2101_v57, 272 }
 0x230   : > { %v6976_v52 = vpop.permute.xlu1 %1879  ;;  %v6978_v49 = vpop.permute.xlu0 %1875 }
 0x231   : > { %9403 = vst [vmem:[#allocation114_spill] sm:$0xff] %v6976_v52  ;;  %9404 = vst [vmem:[#allocation115_spill] sm:$0xff] %v6978_v49 }
 0x232   : > { %2123 = vbcast.lane.b32.xlu1 %v2101_v57, 296  ;;  %2119 = vbcast.lane.b32.xlu0 %v2101_v57, 288 }
 0x234   : > { %v6980_v55 = vpop.permute.xlu1 %1887  ;;  %v6982_v16 = vpop.permute.xlu0 %1883 }
 0x235   : > { %9405 = vst [vmem:[#allocation116_spill] sm:$0xff] %v6980_v55  ;;  %9406 = vst [vmem:[#allocation117_spill] sm:$0xff] %v6982_v16 }
 0x236   : > { %2131 = vbcast.lane.b32.xlu1 %v2101_v57, 312  ;;  %2127 = vbcast.lane.b32.xlu0 %v2101_v57, 304 }
 0x238   : > { %v6984_v51 = vpop.permute.xlu1 %1895  ;;  %v6986_v50 = vpop.permute.xlu0 %1891 }
 0x239   : > { %9407 = vst [vmem:[#allocation118_spill] sm:$0xff] %v6984_v51  ;;  %9408 = vst [vmem:[#allocation119_spill] sm:$0xff] %v6986_v50  ;;  %v2168_v51 = vrot.slane %v6662_v6, %v6960_v53 }
 0x23a   : > { %2139 = vbcast.lane.b32.xlu1 %v2101_v57, 328  ;;  %2135 = vbcast.lane.b32.xlu0 %v2101_v57, 320 }
 0x23c   : > { %v6988_v59 = vpop.permute.xlu1 %1906  ;;  %v6990_v54 = vpop.permute.xlu0 %1902 }
 0x23d   : > { %9409 = vst [vmem:[#allocation120_spill] sm:$0xff] %v6988_v59  ;;  %9410 = vst [vmem:[#allocation121_spill] sm:$0xff] %v6990_v54 }
 0x23e   : > { %2147 = vbcast.lane.b32.xlu1 %v2101_v57, 344  ;;  %2143 = vbcast.lane.b32.xlu0 %v2101_v57, 336 }
 0x240   : > { %v6992_v52 = vpop.permute.xlu1 %1914  ;;  %v6994_v49 = vpop.permute.xlu0 %1910 }
 0x241   : > { %9411 = vst [vmem:[#allocation122_spill] sm:$0xff] %v6992_v52  ;;  %9412 = vst [vmem:[#allocation123_spill] sm:$0xff] %v6994_v49 }
 0x242   : > { %2155 = vbcast.lane.b32.xlu1 %v2101_v57, 360  ;;  %2151 = vbcast.lane.b32.xlu0 %v2101_v57, 352 }
 0x244   : > { %v6996_v55 = vpop.permute.xlu1 %1922  ;;  %v6998_v16 = vpop.permute.xlu0 %1918 }
 0x245   : > { %9413 = vst [vmem:[#allocation124_spill] sm:$0xff] %v6996_v55  ;;  %9414 = vst [vmem:[#allocation125_spill] sm:$0xff] %v6998_v16 }
 0x246   : > { %2163 = vbcast.lane.b32.xlu1 %v2101_v57, 376  ;;  %2159 = vbcast.lane.b32.xlu0 %v2101_v57, 368 }
 0x248   : > { %v7002_v59 = vpop.permute.xlu1 %1930  ;;  %v7004_v54 = vpop.permute.xlu0 %1926 }
 0x249   : > { %9415 = vst [vmem:[#allocation126_spill] sm:$0xff] %v7002_v59  ;;  %9416 = vst [vmem:[#allocation127_spill] sm:$0xff] %v7004_v54 }
 0x24a   : > { %2174 = vbcast.lane.b32.xlu1 %v2168_v51, 264  ;;  %2170 = vbcast.lane.b32.xlu0 %v2168_v51, 256 }
 0x24c   : > { %v7006_v52 = vpop.permute.xlu1 %1938  ;;  %v7008_v49 = vpop.permute.xlu0 %1934 }
 0x24d   : > { %9417 = vst [vmem:[#allocation128_spill] sm:$0xff] %v7006_v52  ;;  %9418 = vst [vmem:[#allocation129_spill] sm:$0xff] %v7008_v49 }
 0x24e   : > { %2182 = vbcast.lane.b32.xlu1 %v2168_v51, 280  ;;  %2178 = vbcast.lane.b32.xlu0 %v2168_v51, 272 }
 0x250   : > { %v7010_v55 = vpop.permute.xlu1 %1946  ;;  %v7012_v16 = vpop.permute.xlu0 %1942 }
 0x251   : > { %9419 = vst [vmem:[#allocation130_spill] sm:$0xff] %v7010_v55  ;;  %9420 = vst [vmem:[#allocation131_spill] sm:$0xff] %v7012_v16 }
 0x252   : > { %2190 = vbcast.lane.b32.xlu1 %v2168_v51, 296  ;;  %2186 = vbcast.lane.b32.xlu0 %v2168_v51, 288 }
 0x254   : > { %v7014_v57 = vpop.permute.xlu1 %1954  ;;  %v7016_v50 = vpop.permute.xlu0 %1950 }
 0x255   : > { %9421 = vst [vmem:[#allocation132_spill] sm:$0xff] %v7014_v57  ;;  %9422 = vst [vmem:[#allocation133_spill] sm:$0xff] %v7016_v50 }
 0x256   : > { %2198 = vbcast.lane.b32.xlu1 %v2168_v51, 312  ;;  %2194 = vbcast.lane.b32.xlu0 %v2168_v51, 304 }
 0x258   : > { %v7018_v59 = vpop.permute.xlu1 %1962  ;;  %v7020_v54 = vpop.permute.xlu0 %1958 }
 0x259   : > { %9423 = vst [vmem:[#allocation134_spill] sm:$0xff] %v7018_v59  ;;  %9424 = vst [vmem:[#allocation135_spill] sm:$0xff] %v7020_v54  ;;  %v2235_v59 = vrot.slane %v6666_v8, %v6960_v53 }
 0x25a   : > { %2206 = vbcast.lane.b32.xlu1 %v2168_v51, 328  ;;  %2202 = vbcast.lane.b32.xlu0 %v2168_v51, 320 }
 0x25c   : > { %v7022_v52 = vpop.permute.xlu1 %1973  ;;  %v7024_v49 = vpop.permute.xlu0 %1969 }
 0x25d   : > { %9425 = vst [vmem:[#allocation136_spill] sm:$0xff] %v7022_v52  ;;  %9426 = vst [vmem:[#allocation137_spill] sm:$0xff] %v7024_v49 }
 0x25e   : > { %2214 = vbcast.lane.b32.xlu1 %v2168_v51, 344  ;;  %2210 = vbcast.lane.b32.xlu0 %v2168_v51, 336 }
 0x260   : > { %v7026_v55 = vpop.permute.xlu1 %1981  ;;  %v7028_v16 = vpop.permute.xlu0 %1977 }
 0x261   : > { %9427 = vst [vmem:[#allocation138_spill] sm:$0xff] %v7026_v55  ;;  %9428 = vst [vmem:[#allocation139_spill] sm:$0xff] %v7028_v16 }
 0x262   : > { %2222 = vbcast.lane.b32.xlu1 %v2168_v51, 360  ;;  %2218 = vbcast.lane.b32.xlu0 %v2168_v51, 352 }
 0x264   : > { %v7030_v57 = vpop.permute.xlu1 %1989  ;;  %v7032_v50 = vpop.permute.xlu0 %1985 }
 0x265   : > { %9429 = vst [vmem:[#allocation140_spill] sm:$0xff] %v7030_v57  ;;  %9430 = vst [vmem:[#allocation141_spill] sm:$0xff] %v7032_v50 }
 0x266   : > { %2230 = vbcast.lane.b32.xlu1 %v2168_v51, 376  ;;  %2226 = vbcast.lane.b32.xlu0 %v2168_v51, 368 }
 0x268   : > { %v7036_v52 = vpop.permute.xlu1 %1997  ;;  %v7038_v49 = vpop.permute.xlu0 %1993 }
 0x269   : > { %9431 = vst [vmem:[#allocation142_spill] sm:$0xff] %v7036_v52  ;;  %9432 = vst [vmem:[#allocation143_spill] sm:$0xff] %v7038_v49 }
 0x26a   : > { %2241 = vbcast.lane.b32.xlu1 %v2235_v59, 264  ;;  %2237 = vbcast.lane.b32.xlu0 %v2235_v59, 256 }
 0x26c   : > { %v7040_v55 = vpop.permute.xlu1 %2005  ;;  %v7042_v16 = vpop.permute.xlu0 %2001 }
 0x26d   : > { %9433 = vst [vmem:[#allocation144_spill] sm:$0xff] %v7040_v55  ;;  %9434 = vst [vmem:[#allocation145_spill] sm:$0xff] %v7042_v16 }
 0x26e   : > { %2249 = vbcast.lane.b32.xlu1 %v2235_v59, 280  ;;  %2245 = vbcast.lane.b32.xlu0 %v2235_v59, 272 }
 0x270   : > { %v7044_v57 = vpop.permute.xlu1 %2013  ;;  %v7046_v50 = vpop.permute.xlu0 %2009 }
 0x271   : > { %9435 = vst [vmem:[#allocation146_spill] sm:$0xff] %v7044_v57  ;;  %9436 = vst [vmem:[#allocation147_spill] sm:$0xff] %v7046_v50 }
 0x272   : > { %2257 = vbcast.lane.b32.xlu1 %v2235_v59, 296  ;;  %2253 = vbcast.lane.b32.xlu0 %v2235_v59, 288 }
 0x274   : > { %v7048_v51 = vpop.permute.xlu1 %2021  ;;  %v7050_v54 = vpop.permute.xlu0 %2017 }
 0x275   : > { %9437 = vst [vmem:[#allocation148_spill] sm:$0xff] %v7048_v51  ;;  %9438 = vst [vmem:[#allocation149_spill] sm:$0xff] %v7050_v54 }
 0x276   : > { %2265 = vbcast.lane.b32.xlu1 %v2235_v59, 312  ;;  %2261 = vbcast.lane.b32.xlu0 %v2235_v59, 304 }
 0x278   : > { %v7052_v52 = vpop.permute.xlu1 %2029  ;;  %v7054_v49 = vpop.permute.xlu0 %2025 }
 0x279   : > { %9439 = vst [vmem:[#allocation150_spill] sm:$0xff] %v7052_v52  ;;  %9440 = vst [vmem:[#allocation151_spill] sm:$0xff] %v7054_v49  ;;  %v2302_v52 = vrot.slane %v6670_v10, %v6960_v53 }
 0x27a   : > { %2273 = vbcast.lane.b32.xlu1 %v2235_v59, 328  ;;  %2269 = vbcast.lane.b32.xlu0 %v2235_v59, 320 }
 0x27c   : > { %v7056_v55 = vpop.permute.xlu1 %2040  ;;  %v7058_v16 = vpop.permute.xlu0 %2036 }
 0x27d   : > { %9441 = vst [vmem:[#allocation152_spill] sm:$0xff] %v7056_v55  ;;  %9442 = vst [vmem:[#allocation153_spill] sm:$0xff] %v7058_v16 }
 0x27e   : > { %2281 = vbcast.lane.b32.xlu1 %v2235_v59, 344  ;;  %2277 = vbcast.lane.b32.xlu0 %v2235_v59, 336 }
 0x280   : > { %v7060_v57 = vpop.permute.xlu1 %2048  ;;  %v7062_v50 = vpop.permute.xlu0 %2044 }
 0x281   : > { %9443 = vst [vmem:[#allocation154_spill] sm:$0xff] %v7060_v57  ;;  %9444 = vst [vmem:[#allocation155_spill] sm:$0xff] %v7062_v50 }
 0x282   : > { %2289 = vbcast.lane.b32.xlu1 %v2235_v59, 360  ;;  %2285 = vbcast.lane.b32.xlu0 %v2235_v59, 352 }
 0x284   : > { %v7064_v51 = vpop.permute.xlu1 %2056  ;;  %v7066_v54 = vpop.permute.xlu0 %2052 }
 0x285   : > { %9445 = vst [vmem:[#allocation156_spill] sm:$0xff] %v7064_v51  ;;  %9446 = vst [vmem:[#allocation157_spill] sm:$0xff] %v7066_v54 }
 0x286   : > { %2297 = vbcast.lane.b32.xlu1 %v2235_v59, 376  ;;  %2293 = vbcast.lane.b32.xlu0 %v2235_v59, 368 }
 0x288   : > { %v7070_v55 = vpop.permute.xlu1 %2064  ;;  %v7072_v16 = vpop.permute.xlu0 %2060 }
 0x289   : > { %9447 = vst [vmem:[#allocation158_spill] sm:$0xff] %v7070_v55  ;;  %9448 = vst [vmem:[#allocation159_spill] sm:$0xff] %v7072_v16 }
 0x28a   : > { %2308 = vbcast.lane.b32.xlu1 %v2302_v52, 264  ;;  %2304 = vbcast.lane.b32.xlu0 %v2302_v52, 256 }
 0x28c   : > { %v7074_v57 = vpop.permute.xlu1 %2072  ;;  %v7076_v50 = vpop.permute.xlu0 %2068 }
 0x28d   : > { %9449 = vst [vmem:[#allocation160_spill] sm:$0xff] %v7074_v57  ;;  %9450 = vst [vmem:[#allocation161_spill] sm:$0xff] %v7076_v50 }
 0x28e   : > { %2316 = vbcast.lane.b32.xlu1 %v2302_v52, 280  ;;  %2312 = vbcast.lane.b32.xlu0 %v2302_v52, 272 }
 0x290   : > { %v7078_v51 = vpop.permute.xlu1 %2080  ;;  %v7080_v54 = vpop.permute.xlu0 %2076 }
 0x291   : > { %9451 = vst [vmem:[#allocation162_spill] sm:$0xff] %v7078_v51  ;;  %9452 = vst [vmem:[#allocation163_spill] sm:$0xff] %v7080_v54 }
 0x292   : > { %2324 = vbcast.lane.b32.xlu1 %v2302_v52, 296  ;;  %2320 = vbcast.lane.b32.xlu0 %v2302_v52, 288 }
 0x294   : > { %v7082_v59 = vpop.permute.xlu1 %2088  ;;  %v7084_v10 = vpop.permute.xlu0 %2084 }
 0x295   : > { %9453 = vst [vmem:[#allocation164_spill] sm:$0xff] %v7082_v59  ;;  %9454 = vst [vmem:[#allocation165_spill] sm:$0xff] %v7084_v10  ;;  %v7099_v59 = vsub.s32 4, %v6654_v2 }
 0x296   : > { %2332 = vbcast.lane.b32.xlu1 %v2302_v52, 312  ;;  %2328 = vbcast.lane.b32.xlu0 %v2302_v52, 304 }
 0x297   : > { %v2369_v10 = vrot.slane %v6657_v3, %v7099_v59 }
 0x298   : > { %v7086_v53 = vpop.permute.xlu1 %2096  ;;  %v7088_v55 = vpop.permute.xlu0 %2092 }
 0x299   : > { %9455 = vst [vmem:[#allocation166_spill] sm:$0xff] %v7086_v53  ;;  %9456 = vst [vmem:[#allocation167_spill] sm:$0xff] %v7088_v55 }
 0x29a   : > { %2340 = vbcast.lane.b32.xlu1 %v2302_v52, 328  ;;  %2336 = vbcast.lane.b32.xlu0 %v2302_v52, 320 }
 0x29c   : > { %v7090_v57 = vpop.permute.xlu1 %2107  ;;  %v7092_v50 = vpop.permute.xlu0 %2103 }
 0x29d   : > { %9457 = vst [vmem:[#allocation168_spill] sm:$0xff] %v7090_v57  ;;  %9458 = vst [vmem:[#allocation169_spill] sm:$0xff] %v7092_v50 }
 0x29e   : > { %2348 = vbcast.lane.b32.xlu1 %v2302_v52, 344  ;;  %2344 = vbcast.lane.b32.xlu0 %v2302_v52, 336 }
 0x2a0   : > { %v7094_v51 = vpop.permute.xlu1 %2115  ;;  %v7096_v54 = vpop.permute.xlu0 %2111 }
 0x2a1   : > { %9459 = vst [vmem:[#allocation170_spill] sm:$0xff] %v7094_v51  ;;  %9460 = vst [vmem:[#allocation171_spill] sm:$0xff] %v7096_v54 }
 0x2a2   : > { %2356 = vbcast.lane.b32.xlu1 %v2302_v52, 360  ;;  %2352 = vbcast.lane.b32.xlu0 %v2302_v52, 352 }
 0x2a4   : > { %v7101_v53 = vpop.permute.xlu1 %2123  ;;  %v7103_v55 = vpop.permute.xlu0 %2119 }
 0x2a5   : > { %9461 = vst [vmem:[#allocation172_spill] sm:$0xff] %v7101_v53  ;;  %9462 = vst [vmem:[#allocation173_spill] sm:$0xff] %v7103_v55 }
 0x2a6   : > { %2364 = vbcast.lane.b32.xlu1 %v2302_v52, 376  ;;  %2360 = vbcast.lane.b32.xlu0 %v2302_v52, 368 }
 0x2a8   : > { %v7107_v16 = vpop.permute.xlu1 %2131  ;;  %v7109_v49 = vpop.permute.xlu0 %2127 }
 0x2a9   : > { %9463 = vst [vmem:[#allocation174_spill] sm:$0xff] %v7107_v16  ;;  %9464 = vst [vmem:[#allocation175_spill] sm:$0xff] %v7109_v49 }
 0x2aa   : > { %2375 = vbcast.lane.b32.xlu1 %v2369_v10, 264  ;;  %2371 = vbcast.lane.b32.xlu0 %v2369_v10, 256 }
 0x2ac   : > { %v7111_v51 = vpop.permute.xlu1 %2139  ;;  %v7113_v54 = vpop.permute.xlu0 %2135 }
 0x2ad   : > { %9465 = vst [vmem:[#allocation176_spill] sm:$0xff] %v7111_v51  ;;  %9466 = vst [vmem:[#allocation177_spill] sm:$0xff] %v7113_v54 }
 0x2ae   : > { %2383 = vbcast.lane.b32.xlu1 %v2369_v10, 280  ;;  %2379 = vbcast.lane.b32.xlu0 %v2369_v10, 272 }
 0x2b0   : > { %v7115_v53 = vpop.permute.xlu1 %2147  ;;  %v7117_v55 = vpop.permute.xlu0 %2143 }
 0x2b1   : > { %9467 = vst [vmem:[#allocation178_spill] sm:$0xff] %v7115_v53  ;;  %9468 = vst [vmem:[#allocation179_spill] sm:$0xff] %v7117_v55 }
 0x2b2   : > { %2391 = vbcast.lane.b32.xlu1 %v2369_v10, 296  ;;  %2387 = vbcast.lane.b32.xlu0 %v2369_v10, 288 }
 0x2b4   : > { %v7119_v52 = vpop.permute.xlu1 %2155  ;;  %v7121_v3 = vpop.permute.xlu0 %2151 }
 0x2b5   : > { %9469 = vst [vmem:[#allocation180_spill] sm:$0xff] %v7119_v52  ;;  %9470 = vst [vmem:[#allocation181_spill] sm:$0xff] %v7121_v3 }
 0x2b6   : > { %2399 = vbcast.lane.b32.xlu1 %v2369_v10, 312  ;;  %2395 = vbcast.lane.b32.xlu0 %v2369_v10, 304 }
 0x2b8   : > { %v7123_v16 = vpop.permute.xlu1 %2163  ;;  %v7125_v49 = vpop.permute.xlu0 %2159 }
 0x2b9   : > { %9471 = vst [vmem:[#allocation182_spill] sm:$0xff] %v7123_v16  ;;  %9472 = vst [vmem:[#allocation183_spill] sm:$0xff] %v7125_v49  ;;  %v2436_v16 = vrot.slane %v6662_v6, %v7099_v59 }
 0x2ba   : > { %2407 = vbcast.lane.b32.xlu1 %v2369_v10, 328  ;;  %2403 = vbcast.lane.b32.xlu0 %v2369_v10, 320 }
 0x2bc   : > { %v7127_v51 = vpop.permute.xlu1 %2174  ;;  %v7129_v54 = vpop.permute.xlu0 %2170 }
 0x2bd   : > { %9473 = vst [vmem:[#allocation184_spill] sm:$0xff] %v7127_v51  ;;  %9474 = vst [vmem:[#allocation185_spill] sm:$0xff] %v7129_v54 }
 0x2be   : > { %2415 = vbcast.lane.b32.xlu1 %v2369_v10, 344  ;;  %2411 = vbcast.lane.b32.xlu0 %v2369_v10, 336 }
 0x2c0   : > { %v7131_v53 = vpop.permute.xlu1 %2182  ;;  %v7133_v55 = vpop.permute.xlu0 %2178 }
 0x2c1   : > { %9475 = vst [vmem:[#allocation186_spill] sm:$0xff] %v7131_v53  ;;  %9476 = vst [vmem:[#allocation187_spill] sm:$0xff] %v7133_v55 }
 0x2c2   : > { %2423 = vbcast.lane.b32.xlu1 %v2369_v10, 360  ;;  %2419 = vbcast.lane.b32.xlu0 %v2369_v10, 352 }
 0x2c4   : > { %v7135_v52 = vpop.permute.xlu1 %2190  ;;  %v7137_v3 = vpop.permute.xlu0 %2186 }
 0x2c5   : > { %9477 = vst [vmem:[#allocation188_spill] sm:$0xff] %v7135_v52  ;;  %9478 = vst [vmem:[#allocation189_spill] sm:$0xff] %v7137_v3 }
 0x2c6   : > { %2431 = vbcast.lane.b32.xlu1 %v2369_v10, 376  ;;  %2427 = vbcast.lane.b32.xlu0 %v2369_v10, 368 }
 0x2c8   : > { %v7141_v51 = vpop.permute.xlu1 %2198  ;;  %v7143_v54 = vpop.permute.xlu0 %2194 }
 0x2c9   : > { %9479 = vst [vmem:[#allocation190_spill] sm:$0xff] %v7141_v51  ;;  %9480 = vst [vmem:[#allocation191_spill] sm:$0xff] %v7143_v54 }
 0x2ca   : > { %2442 = vbcast.lane.b32.xlu1 %v2436_v16, 264  ;;  %2438 = vbcast.lane.b32.xlu0 %v2436_v16, 256 }
 0x2cc   : > { %v7145_v53 = vpop.permute.xlu1 %2206  ;;  %v7147_v55 = vpop.permute.xlu0 %2202 }
 0x2cd   : > { %9481 = vst [vmem:[#allocation192_spill] sm:$0xff] %v7145_v53  ;;  %9482 = vst [vmem:[#allocation193_spill] sm:$0xff] %v7147_v55 }
 0x2ce   : > { %2450 = vbcast.lane.b32.xlu1 %v2436_v16, 280  ;;  %2446 = vbcast.lane.b32.xlu0 %v2436_v16, 272 }
 0x2d0   : > { %v7149_v52 = vpop.permute.xlu1 %2214  ;;  %v7151_v3 = vpop.permute.xlu0 %2210 }
 0x2d1   : > { %9483 = vst [vmem:[#allocation194_spill] sm:$0xff] %v7149_v52  ;;  %9484 = vst [vmem:[#allocation195_spill] sm:$0xff] %v7151_v3 }
 0x2d2   : > { %2458 = vbcast.lane.b32.xlu1 %v2436_v16, 296  ;;  %2454 = vbcast.lane.b32.xlu0 %v2436_v16, 288 }
 0x2d4   : > { %v7153_v10 = vpop.permute.xlu1 %2222  ;;  %v7155_v6 = vpop.permute.xlu0 %2218 }
 0x2d5   : > { %9485 = vst [vmem:[#allocation196_spill] sm:$0xff] %v7153_v10  ;;  %9486 = vst [vmem:[#allocation197_spill] sm:$0xff] %v7155_v6 }
 0x2d6   : > { %2466 = vbcast.lane.b32.xlu1 %v2436_v16, 312  ;;  %2462 = vbcast.lane.b32.xlu0 %v2436_v16, 304 }
 0x2d8   : > { %v7157_v51 = vpop.permute.xlu1 %2230  ;;  %v7159_v54 = vpop.permute.xlu0 %2226 }
 0x2d9   : > { %9487 = vst [vmem:[#allocation198_spill] sm:$0xff] %v7157_v51  ;;  %9488 = vst [vmem:[#allocation199_spill] sm:$0xff] %v7159_v54  ;;  %v2503_v51 = vrot.slane %v6666_v8, %v7099_v59  ;;  %v5725_v54 = vld [vmem:[%s6633_s12 + $0x8] sm:$0xff]  }
 0x2da   : > { %2474 = vbcast.lane.b32.xlu1 %v2436_v16, 328  ;;  %2470 = vbcast.lane.b32.xlu0 %v2436_v16, 320  ;;  %v4708_v56 = vunpack.c.h.bf16 %v5725_v54 }
 0x2dc   : > { %v7161_v53 = vpop.permute.xlu1 %2241  ;;  %v7163_v55 = vpop.permute.xlu0 %2237 }
 0x2dd   : > { %9489 = vst [vmem:[#allocation200_spill] sm:$0xff] %v7161_v53  ;;  %9490 = vst [vmem:[#allocation201_spill] sm:$0xff] %v7163_v55 }
 0x2de   : > { %2482 = vbcast.lane.b32.xlu1 %v2436_v16, 344  ;;  %2478 = vbcast.lane.b32.xlu0 %v2436_v16, 336 }
 0x2e0   : > { %v7165_v52 = vpop.permute.xlu1 %2249  ;;  %v7167_v3 = vpop.permute.xlu0 %2245 }
 0x2e1   : > { %9491 = vst [vmem:[#allocation202_spill] sm:$0xff] %v7165_v52  ;;  %9492 = vst [vmem:[#allocation203_spill] sm:$0xff] %v7167_v3 }
 0x2e2   : > { %2490 = vbcast.lane.b32.xlu1 %v2436_v16, 360  ;;  %2486 = vbcast.lane.b32.xlu0 %v2436_v16, 352 }
 0x2e4   : > { %v7169_v10 = vpop.permute.xlu1 %2257  ;;  %v7171_v6 = vpop.permute.xlu0 %2253 }
 0x2e5   : > { %9493 = vst [vmem:[#allocation204_spill] sm:$0xff] %v7169_v10  ;;  %9494 = vst [vmem:[#allocation205_spill] sm:$0xff] %v7171_v6 }
 0x2e6   : > { %2498 = vbcast.lane.b32.xlu1 %v2436_v16, 376  ;;  %2494 = vbcast.lane.b32.xlu0 %v2436_v16, 368 }
 0x2e8   : > { %v7175_v53 = vpop.permute.xlu1 %2265  ;;  %v7177_v55 = vpop.permute.xlu0 %2261 }
 0x2e9   : > { %9495 = vst [vmem:[#allocation206_spill] sm:$0xff] %v7175_v53  ;;  %9496 = vst [vmem:[#allocation207_spill] sm:$0xff] %v7177_v55 }
 0x2ea   : > { %2509 = vbcast.lane.b32.xlu1 %v2503_v51, 264  ;;  %2505 = vbcast.lane.b32.xlu0 %v2503_v51, 256 }
 0x2ec   : > { %v7179_v52 = vpop.permute.xlu1 %2273  ;;  %v7181_v3 = vpop.permute.xlu0 %2269 }
 0x2ed   : > { %9497 = vst [vmem:[#allocation208_spill] sm:$0xff] %v7179_v52  ;;  %9498 = vst [vmem:[#allocation209_spill] sm:$0xff] %v7181_v3  ;;  %v4702_v3 = vld [vmem:[%s6633_s12] sm:$0xff]  }
 0x2ee   : > { %2517 = vbcast.lane.b32.xlu1 %v2503_v51, 280  ;;  %2513 = vbcast.lane.b32.xlu0 %v2503_v51, 272 }
 0x2f0   : > { %v7183_v10 = vpop.permute.xlu1 %2281  ;;  %v7185_v16 = vpop.permute.xlu0 %2277 }
 0x2f1   : > { %9499 = vst [vmem:[#allocation210_spill] sm:$0xff] %v7183_v10  ;;  %9500 = vst [vmem:[#allocation211_spill] sm:$0xff] %v7185_v16  ;;  %v4704_v16 = vunpack.c.h.bf16 %v4702_v3 }
 0x2f2   : > { %2525 = vbcast.lane.b32.xlu1 %v2503_v51, 296  ;;  %2521 = vbcast.lane.b32.xlu0 %v2503_v51, 288 }
 0x2f4   : > { %v7187_v8 = vpop.permute.xlu1 %2289  ;;  %v7189_v53 = vpop.permute.xlu0 %2285 }
 0x2f5   : > { %9501 = vst [vmem:[#allocation212_spill] sm:$0xff] %v7187_v8  ;;  %9502 = vst [vmem:[#allocation213_spill] sm:$0xff] %v7189_v53  ;;  %v4703_v8 = vunpack.c.l.bf16 %v4702_v3 }
 0x2f6   : > { %2533 = vbcast.lane.b32.xlu1 %v2503_v51, 312  ;;  %2529 = vbcast.lane.b32.xlu0 %v2503_v51, 304 }
 0x2f8   : > { %v7191_v55 = vpop.permute.xlu1 %2297  ;;  %v7193_v52 = vpop.permute.xlu0 %2293 }
 0x2f9   : > { %9503 = vst [vmem:[#allocation214_spill] sm:$0xff] %v7191_v55  ;;  %9504 = vst [vmem:[#allocation215_spill] sm:$0xff] %v7193_v52  ;;  %v4707_v55 = vunpack.c.l.bf16 %v5725_v54  ;;  %v3439_v52 = vmul.f32 %v4704_v16, %v6679_v15  ;;  %v5726_v15 = vld [vmem:[%s6633_s12 + $0x10] sm:$0xff]  }
 0x2fa   : > { %2541 = vbcast.lane.b32.xlu1 %v2503_v51, 328  ;;  %2537 = vbcast.lane.b32.xlu0 %v2503_v51, 320 }
 0x2fb   : > { %v3440_v57 = vmul.f32 %v4707_v55, %v6673_v12  ;;  %v4711_v12 = vunpack.c.l.bf16 %v5726_v15 }
 0x2fc   : > { %v7196_v6 = vpop.permute.xlu1 %2308  ;;  %v7198_v10 = vpop.permute.xlu0 %2304 }
 0x2fd   : > { %9505 = vst [vmem:[#allocation216_spill] sm:$0xff] %v7196_v6  ;;  %9506 = vst [vmem:[#allocation217_spill] sm:$0xff] %v7198_v10  ;;  %v3438_v6 = vmul.f32 %v4703_v8, %v6675_v13  ;;  %v3441_v8 = vmul.f32 %v4708_v56, %v6677_v14 }
 0x2fe   : > { %2549 = vbcast.lane.b32.xlu1 %v2503_v51, 344  ;;  %2545 = vbcast.lane.b32.xlu0 %v2503_v51, 336 }
 0x2ff   : > { %v3950_v3 = vadd.f32 %v3439_v52, %v3438_v6  ;;  %v5727_v6 = vld [vmem:[%s6633_s12 + $0x18] sm:$0xff]  }
 0x300   : > { %v7201_v53 = vpop.permute.xlu1 %2316  ;;  %v7203_v49 = vpop.permute.xlu0 %2312 }
 0x301   : > { %9507 = vst [vmem:[#allocation218_spill] sm:$0xff] %v7201_v53  ;;  %9508 = vst [vmem:[#allocation219_spill] sm:$0xff] %v7203_v49  ;;  %v7213_v53 = vld [vmem:[%s6640_s21 + $0x18] sm:$0xff] }
 0x302   : > { %2557 = vbcast.lane.b32.xlu1 %v2503_v51, 360  ;;  %2553 = vbcast.lane.b32.xlu0 %v2503_v51, 352  ;;  %v2570_v49 = vrot.slane %v7213_v53, %v7099_v59  ;;  %v3442_v59 = vmul.f32 %v4711_v12, %v6686_v18  ;;  %v5728_v12 = vld [vmem:[%s6633_s12 + $0x20] sm:$0xff]  }
 0x304   : > { %v7207_v50 = vpop.permute.xlu1 %2324  ;;  %v7209_v10 = vpop.permute.xlu0 %2320 }
 0x305   : > { %9509 = vst [vmem:[#allocation220_spill] sm:$0xff] %v7207_v50  ;;  %9510 = vst [vmem:[#allocation221_spill] sm:$0xff] %v7209_v10  ;;  %v3951_v50 = vadd.f32 %v3950_v3, %v3440_v57  ;;  %v4715_v57 = vunpack.c.l.bf16 %v5727_v6 }
 0x306   : > { %2565 = vbcast.lane.b32.xlu1 %v2503_v51, 376  ;;  %2561 = vbcast.lane.b32.xlu0 %v2503_v51, 368  ;;  %v4712_v51 = vunpack.c.h.bf16 %v5726_v15 }
 0x307   : > { %v3952_v52 = vadd.f32 %v3951_v50, %v3441_v8  ;;  %v4716_v50 = vunpack.c.h.bf16 %v5727_v6  ;;  %v3444_v18 = vmul.f32 %v4715_v57, %v6692_v21  ;;  %v5729_v57 = vld [vmem:[%s6633_s12 + $0x28] sm:$0xff]  }
 0x308   : > { %v7218_v16 = vpop.permute.xlu1 %2332  ;;  %v7220_v13 = vpop.permute.xlu0 %2328  ;;  %v3443_v14 = vmul.f32 %v4712_v51, %v6684_v17 }
 0x309   : > { %9511 = vst [vmem:[#allocation222_spill] sm:$0xff] %v7218_v16  ;;  %9512 = vst [vmem:[#allocation223_spill] sm:$0xff] %v7220_v13  ;;  %v3953_v56 = vadd.f32 %v3952_v52, %v3442_v59  ;;  %v3445_v17 = vmul.f32 %v4716_v50, %v6690_v20  ;;  %v4719_v52 = vunpack.c.l.bf16 %v5728_v12 }
 0x30a   : > { %2576 = vbcast.lane.b32.xlu1 %v2570_v49, 264  ;;  %2572 = vbcast.lane.b32.xlu0 %v2570_v49, 256 }
 0x30b   : > { %v3954_v8 = vadd.f32 %v3953_v56, %v3443_v14  ;;  %v4720_v14 = vunpack.c.h.bf16 %v5728_v12  ;;  %v3446_v21 = vmul.f32 %v4719_v52, %v6696_v23  ;;  %v4724_v23 = vunpack.c.h.bf16 %v5729_v57  ;;  %v7264_v52 = vld [vmem:[%s6640_s21] sm:$0xff] }
 0x30c   : > { %v7223_v54 = vpop.permute.xlu1 %2340  ;;  %v7225_v55 = vpop.permute.xlu0 %2336 }
 0x30d   : > { %9513 = vst [vmem:[#allocation224_spill] sm:$0xff] %v7223_v54  ;;  %9514 = vst [vmem:[#allocation225_spill] sm:$0xff] %v7225_v55  ;;  %v3955_v51 = vadd.f32 %v3954_v8, %v3444_v18  ;;  %v3447_v20 = vmul.f32 %v4720_v14, %v6694_v22  ;;  %v7257_v8 = vsub.s32 5, %v6654_v2  ;;  %v4723_v18 = vunpack.c.l.bf16 %v5729_v57 }
 0x30e   : > { %2584 = vbcast.lane.b32.xlu1 %v2570_v49, 280  ;;  %2580 = vbcast.lane.b32.xlu0 %v2570_v49, 272 }
 0x30f   : > { %v3956_v56 = vadd.f32 %v3955_v51, %v3445_v17  ;;  %v2637_v22 = vrot.slane %v7264_v52, %v7257_v8  ;;  %v3448_v14 = vmul.f32 %v4723_v18, %v6700_v25  ;;  %v5731_v18 = vld [vmem:[%s6633_s12 + $0x38] sm:$0xff]  }
 0x310   : > { %v7229_v16 = vpop.permute.xlu1 %2348  ;;  %v7231_v13 = vpop.permute.xlu0 %2344 }
 0x311   : > { %9515 = vst [vmem:[#allocation226_spill] sm:$0xff] %v7229_v16  ;;  %9516 = vst [vmem:[#allocation227_spill] sm:$0xff] %v7231_v13  ;;  %v3957_v50 = vadd.f32 %v3956_v56, %v3446_v21  ;;  %v5730_v56 = vld [vmem:[%s6633_s12 + $0x30] sm:$0xff]  }
 0x312   : > { %2592 = vbcast.lane.b32.xlu1 %v2570_v49, 296  ;;  %2588 = vbcast.lane.b32.xlu0 %v2570_v49, 288  ;;  %v4727_v57 = vunpack.c.l.bf16 %v5730_v56 }
 0x313   : > { %v3958_v51 = vadd.f32 %v3957_v50, %v3447_v20  ;;  %v4728_v50 = vunpack.c.h.bf16 %v5730_v56 }
 0x314   : > { %v7234_v3 = vpop.permute.xlu1 %2356  ;;  %v7236_v15 = vpop.permute.xlu0 %2352  ;;  %v3450_v25 = vmul.f32 %v4727_v57, %v6704_v27  ;;  %v5732_v57 = vld [vmem:[%s6633_s12 + $0x40] sm:$0xff]  }
 0x315   : > { %9517 = vst [vmem:[#allocation228_spill] sm:$0xff] %v7234_v3  ;;  %9518 = vst [vmem:[#allocation229_spill] sm:$0xff] %v7236_v15  ;;  %v3449_v15 = vmul.f32 %v4724_v23, %v6698_v24  ;;  %v3959_v54 = vadd.f32 %v3958_v51, %v3448_v14  ;;  %v3451_v24 = vmul.f32 %v4728_v50, %v6702_v26  ;;  %v4731_v51 = vunpack.c.l.bf16 %v5731_v18 }
 0x316   : > { %2600 = vbcast.lane.b32.xlu1 %v2570_v49, 312  ;;  %2596 = vbcast.lane.b32.xlu0 %v2570_v49, 304  ;;  %v4735_v50 = vunpack.c.l.bf16 %v5732_v57 }
 0x317   : > { %v3960_v55 = vadd.f32 %v3959_v54, %v3449_v15  ;;  %v4732_v54 = vunpack.c.h.bf16 %v5731_v18  ;;  %v3452_v27 = vmul.f32 %v4731_v51, %v6708_v29  ;;  %v5733_v51 = vld [vmem:[%s6633_s12 + $0x48] sm:$0xff]  }
 0x318   : > { %v7240_v16 = vpop.permute.xlu1 %2364  ;;  %v7242_v13 = vpop.permute.xlu0 %2360  ;;  %v3454_v29 = vmul.f32 %v4735_v50, %v6712_v31  ;;  %v7313_v31 = vld [vmem:[%s6640_s21 + $0x8] sm:$0xff] }
 0x319   : > { %9519 = vst [vmem:[#allocation230_spill] sm:$0xff] %v7240_v16  ;;  %9520 = vst [vmem:[#allocation231_spill] sm:$0xff] %v7242_v13  ;;  %v3961_v23 = vadd.f32 %v3960_v55, %v3450_v25  ;;  %v3453_v26 = vmul.f32 %v4732_v54, %v6706_v28  ;;  %v7317_v50 = vrot.slane %v7313_v31, %v7257_v8 }
 0x31a   : > { %2608 = vbcast.lane.b32.xlu1 %v2570_v49, 328  ;;  %2604 = vbcast.lane.b32.xlu0 %v2570_v49, 320 }
 0x31b   : > { %v3962_v15 = vadd.f32 %v3961_v23, %v3451_v24  ;;  %v4736_v24 = vunpack.c.h.bf16 %v5732_v57 }
 0x31c   : > { %v7245_v59 = vpop.permute.xlu1 %2375  ;;  %v7247_v6 = vpop.permute.xlu0 %2371 }
 0x31d   : > { %v3963_v55 = vadd.f32 %v3962_v15, %v3452_v27  ;;  %v3455_v54 = vmul.f32 %v4736_v24, %v6710_v30  ;;  %v4739_v27 = vunpack.c.l.bf16 %v5733_v51  ;;  %v5734_v24 = vld [vmem:[%s6633_s12 + $0x50] sm:$0xff]  }
 0x31e   : > { %2616 = vbcast.lane.b32.xlu1 %v2570_v49, 344  ;;  %2612 = vbcast.lane.b32.xlu0 %v2570_v49, 336 }
 0x31f   : > { %v3964_v23 = vadd.f32 %v3963_v55, %v3453_v26  ;;  %v4740_v26 = vunpack.c.h.bf16 %v5733_v51  ;;  %v3456_v30 = vmul.f32 %v4739_v27, %v6716_v33  ;;  %v4744_v33 = vunpack.c.h.bf16 %v5734_v24 }
 0x320   : > { %v7251_v16 = vpop.permute.xlu1 %2383  ;;  %v7253_v13 = vpop.permute.xlu0 %2379 }
 0x321   : > { %v3965_v15 = vadd.f32 %v3964_v23, %v3454_v29 }
 0x322   : > { %2624 = vbcast.lane.b32.xlu1 %v2570_v49, 360  ;;  %2620 = vbcast.lane.b32.xlu0 %v2570_v49, 352 }
 0x323   : > { %v3966_v55 = vadd.f32 %v3965_v15, %v3455_v54  ;;  %v5756_v54 = vld [vmem:[%s6633_s12 + $0x100] sm:$0xff]  }
 0x324   : > { %v7259_v12 = vpop.permute.xlu1 %2391  ;;  %v7261_v17 = vpop.permute.xlu0 %2387 }
 0x325   : > { %v3967_v51 = vadd.f32 %v3966_v55, %v3456_v30 }
 0x326   : > { %2632 = vbcast.lane.b32.xlu1 %v2570_v49, 376  ;;  %2628 = vbcast.lane.b32.xlu0 %v2570_v49, 368 }
 0x328   : > { %v7270_v21 = vpop.permute.xlu1 %2399  ;;  %v7272_v3 = vpop.permute.xlu0 %2395 }
 0x329   : > { %9521 = vst [vmem:[#allocation232_spill] sm:$0xff] %v7270_v21 }
 0x32a   : > { %2643 = vbcast.lane.b32.xlu1 %v2637_v22, 264  ;;  %2639 = vbcast.lane.b32.xlu0 %v2637_v22, 256 }
 0x32c   : > { %v7275_v49 = vpop.permute.xlu1 %2407  ;;  %v7277_v20 = vpop.permute.xlu0 %2403 }
 0x32e   : > { %2651 = vbcast.lane.b32.xlu1 %v2637_v22, 280  ;;  %2647 = vbcast.lane.b32.xlu0 %v2637_v22, 272 }
 0x330   : > { %v7281_v10 = vpop.permute.xlu1 %2415  ;;  %v7283_v21 = vpop.permute.xlu0 %2411 }
 0x331   : > { %9522 = vst [vmem:[#allocation233_spill] sm:$0xff] %v7281_v10  ;;  %9523 = vst [vmem:[#allocation234_spill] sm:$0xff] %v7283_v21 }
 0x332   : > { %2659 = vbcast.lane.b32.xlu1 %v2637_v22, 296  ;;  %2655 = vbcast.lane.b32.xlu0 %v2637_v22, 288 }
 0x334   : > { %v7286_v14 = vpop.permute.xlu1 %2423  ;;  %v7288_v56 = vpop.permute.xlu0 %2419 }
 0x336   : > { %2667 = vbcast.lane.b32.xlu1 %v2637_v22, 312  ;;  %2663 = vbcast.lane.b32.xlu0 %v2637_v22, 304 }
 0x338   : > { %v7292_v10 = vpop.permute.xlu1 %2431  ;;  %v7294_v21 = vpop.permute.xlu0 %2427 }
 0x339   : > { %9524 = vst [vmem:[#allocation235_spill] sm:$0xff] %v7292_v10 }
 0x33a   : > { %2675 = vbcast.lane.b32.xlu1 %v2637_v22, 328  ;;  %2671 = vbcast.lane.b32.xlu0 %v2637_v22, 320 }
 0x33c   : > { %v7297_v25 = vpop.permute.xlu1 %2442  ;;  %v7299_v18 = vpop.permute.xlu0 %2438 }
 0x33d   : > { %9525 = vst [vmem:[#allocation236_spill] sm:$0xff] %v7297_v25  ;;  %9526 = vst [vmem:[#allocation237_spill] sm:$0xff] %v7299_v18 }
 0x33e   : > { %2683 = vbcast.lane.b32.xlu1 %v2637_v22, 344  ;;  %2679 = vbcast.lane.b32.xlu0 %v2637_v22, 336 }
 0x340   : > { %v7303_v10 = vpop.permute.xlu1 %2450  ;;  %v7305_v28 = vpop.permute.xlu0 %2446 }
 0x341   : > { %9527 = vst [vmem:[#allocation238_spill] sm:$0xff] %v7303_v10  ;;  %9528 = vst [vmem:[#allocation239_spill] sm:$0xff] %v7305_v28  ;;  %v5757_v10 = vld [vmem:[%s6633_s12 + $0x108] sm:$0xff]   ;;  %v4831_v28 = vunpack.c.l.bf16 %v5756_v54 }
 0x342   : > { %2691 = vbcast.lane.b32.xlu1 %v2637_v22, 360  ;;  %2687 = vbcast.lane.b32.xlu0 %v2637_v22, 352  ;;  %v4835_v55 = vunpack.c.l.bf16 %v5757_v10 }
 0x344   : > { %v7308_v25 = vpop.permute.xlu1 %2458  ;;  %v7310_v57 = vpop.permute.xlu0 %2454 }
 0x345   : > { %9529 = vst [vmem:[#allocation240_spill] sm:$0xff] %v7308_v25  ;;  %9530 = vst [vmem:[#allocation241_spill] sm:$0xff] %v7310_v57  ;;  %v3457_v25 = vmul.f32 %v4740_v26, %v6714_v32  ;;  %v5735_v26 = vld [vmem:[%s6633_s12 + $0x58] sm:$0xff]  }
 0x346   : > { %2699 = vbcast.lane.b32.xlu1 %v2637_v22, 376  ;;  %2695 = vbcast.lane.b32.xlu0 %v2637_v22, 368  ;;  %v4743_v22 = vunpack.c.l.bf16 %v5734_v24 }
 0x347   : > { %v3968_v27 = vadd.f32 %v3967_v51, %v3457_v25  ;;  %v3502_v51 = vmul.f32 %v4831_v28, %v6814_v5  ;;  %v5736_v5 = vld [vmem:[%s6633_s12 + $0x60] sm:$0xff]  }
 0x348   : > { %v7321_v23 = vpop.permute.xlu1 %2466  ;;  %v7323_v29 = vpop.permute.xlu0 %2462  ;;  %v3458_v32 = vmul.f32 %v4743_v22, %v6720_v35  ;;  %v4747_v35 = vunpack.c.l.bf16 %v5735_v26  ;;  %v4836_v22 = vunpack.c.h.bf16 %v5757_v10 }
 0x349   : > { %9531 = vst [vmem:[#allocation242_spill] sm:$0xff] %v7321_v23  ;;  %9532 = vst [vmem:[#allocation243_spill] sm:$0xff] %v7323_v29  ;;  %v4832_v23 = vunpack.c.h.bf16 %v5756_v54  ;;  %v3504_v54 = vmul.f32 %v4835_v55, %v6818_v9  ;;  %v4751_v55 = vunpack.c.l.bf16 %v5736_v5 }
 0x34a   : > { %2710 = vbcast.lane.b32.xlu1 %v7317_v50, 264  ;;  %2706 = vbcast.lane.b32.xlu0 %v7317_v50, 256  ;;  %v3969_v24 = vadd.f32 %v3968_v27, %v3458_v32  ;;  %v3505_v28 = vmul.f32 %v4836_v22, %v6816_v7 }
 0x34b   : > { %v3503_v25 = vmul.f32 %v4832_v23, %v6812_v4  ;;  %v3460_v4 = vmul.f32 %v4747_v35, %v6726_v38  ;;  %v4752_v35 = vunpack.c.h.bf16 %v5736_v5 }
 0x34c   : > { %v7329_v15 = vpop.permute.xlu1 %2474  ;;  %v7331_v57 = vpop.permute.xlu0 %2470 }
 0x34d   : > { %9533 = vst [vmem:[#allocation244_spill] sm:$0xff] %v7329_v15  ;;  %9534 = vst [vmem:[#allocation245_spill] sm:$0xff] %v7331_v57  ;;  %v3459_v15 = vmul.f32 %v4744_v33, %v6718_v34  ;;  %v5758_v33 = vld [vmem:[%s6633_s12 + $0x110] sm:$0xff]   ;;  %v4019_v27 = vadd.f32 %v3503_v25, %v3502_v51  ;;  %v3463_v5 = vmul.f32 %v4752_v35, %v6728_v39 }
 0x34e   : > { %2718 = vbcast.lane.b32.xlu1 %v7317_v50, 280  ;;  %2714 = vbcast.lane.b32.xlu0 %v7317_v50, 272  ;;  %v4839_v9 = vunpack.c.l.bf16 %v5758_v33  ;;  %v4840_v38 = vunpack.c.h.bf16 %v5758_v33  ;;  %v7392_v39 = vld [vmem:[%s6640_s21 + $0x10] sm:$0xff] }
 0x34f   : > { %v3970_v34 = vadd.f32 %v3969_v24, %v3459_v15  ;;  %v4020_v10 = vadd.f32 %v4019_v27, %v3504_v54  ;;  %v5759_v54 = vld [vmem:[%s6633_s12 + $0x118] sm:$0xff]   ;;  %v5738_v35 = vld [vmem:[%s6633_s12 + $0x70] sm:$0xff]  }
 0x350   : > { %v7338_v30 = vpop.permute.xlu1 %2482  ;;  %v7340_v29 = vpop.permute.xlu0 %2478  ;;  %v3506_v24 = vmul.f32 %v4839_v9, %v6825_v36  ;;  %v4843_v36 = vunpack.c.l.bf16 %v5759_v54 }
 0x351   : > { %9535 = vst [vmem:[#allocation246_spill] sm:$0xff] %v7338_v30  ;;  %9536 = vst [vmem:[#allocation247_spill] sm:$0xff] %v7340_v29  ;;  %v4748_v29 = vunpack.c.h.bf16 %v5735_v26  ;;  %v3971_v26 = vadd.f32 %v3970_v34, %v3460_v4  ;;  %v4021_v7 = vadd.f32 %v4020_v10, %v3505_v28  ;;  %v3507_v34 = vmul.f32 %v4840_v38, %v6823_v19 }
 0x352   : > { %2726 = vbcast.lane.b32.xlu1 %v7317_v50, 296  ;;  %2722 = vbcast.lane.b32.xlu0 %v7317_v50, 288  ;;  %v4844_v10 = vunpack.c.h.bf16 %v5759_v54  ;;  %v3508_v19 = vmul.f32 %v4843_v36, %v6831_v1  ;;  %v4759_v36 = vunpack.c.l.bf16 %v5738_v35 }
 0x353   : > { %v3461_v15 = vmul.f32 %v4748_v29, %v6724_v37  ;;  %v3462_v37 = vmul.f32 %v4751_v55, %v6730_v40  ;;  %v5737_v29 = vld [vmem:[%s6633_s12 + $0x68] sm:$0xff]   ;;  %v4022_v33 = vadd.f32 %v4021_v7, %v3506_v24  ;;  %v5760_v24 = vld [vmem:[%s6633_s12 + $0x120] sm:$0xff]   ;;  %v7396_v7 = vrot.slane %v7392_v39, %v7257_v8 }
 0x354   : > { %v7348_v57 = vpop.permute.xlu1 %2490  ;;  %v7350_v30 = vpop.permute.xlu0 %2486  ;;  %v4755_v40 = vunpack.c.l.bf16 %v5737_v29  ;;  %v4756_v55 = vunpack.c.h.bf16 %v5737_v29 }
 0x355   : > { %9537 = vst [vmem:[#allocation248_spill] sm:$0xff] %v7348_v57  ;;  %9538 = vst [vmem:[#allocation249_spill] sm:$0xff] %v7350_v30  ;;  %v3972_v22 = vadd.f32 %v3971_v26, %v3461_v15  ;;  %v4023_v9 = vadd.f32 %v4022_v33, %v3507_v34 }
 0x356   : > { %2734 = vbcast.lane.b32.xlu1 %v7317_v50, 312  ;;  %2730 = vbcast.lane.b32.xlu0 %v7317_v50, 304  ;;  %v3464_v1 = vmul.f32 %v4755_v40, %v6734_v42  ;;  %v4848_v42 = vunpack.c.h.bf16 %v5760_v24 }
 0x357   : > { %v3973_v28 = vadd.f32 %v3972_v22, %v3462_v37  ;;  %v3509_v22 = vmul.f32 %v4844_v10, %v6829_v0  ;;  %v4024_v54 = vadd.f32 %v4023_v9, %v3508_v19  ;;  %v4847_v37 = vunpack.c.l.bf16 %v5760_v24  ;;  %v5761_v9 = vld [vmem:[%s6633_s12 + $0x128] sm:$0xff]  }
 0x358   : > { %v7358_v23 = vpop.permute.xlu1 %2498  ;;  %v7360_v32 = vpop.permute.xlu0 %2494  ;;  %v4760_v10 = vunpack.c.h.bf16 %v5738_v35 }
 0x359   : > { %9539 = vst [vmem:[#allocation250_spill] sm:$0xff] %v7358_v23  ;;  %9540 = vst [vmem:[#allocation251_spill] sm:$0xff] %v7360_v32  ;;  %v3974_v38 = vadd.f32 %v3973_v28, %v3463_v5  ;;  %v3510_v5 = vmul.f32 %v4847_v37, %v6835_v63  ;;  %v4025_v0 = vadd.f32 %v4024_v54, %v3509_v22  ;;  %v4851_v63 = vunpack.c.l.bf16 %v5761_v9  ;;  %v9615_v32 = vld [vmem:[#allocation105_spill] sm:$0xff] }
 0x35a   : > { %2742 = vbcast.lane.b32.xlu1 %v7317_v50, 328  ;;  %2738 = vbcast.lane.b32.xlu0 %v7317_v50, 320  ;;  %v3467_v35 = vmul.f32 %v4760_v10, %v6736_v43  ;;  %v5740_v10 = vld [vmem:[%s6633_s12 + $0x80] sm:$0xff]  }
 0x35b   : > { %v3975_v33 = vadd.f32 %v3974_v38, %v3464_v1  ;;  %v3511_v38 = vmul.f32 %v4848_v42, %v6833_v62  ;;  %v4026_v24 = vadd.f32 %v4025_v0, %v3510_v5  ;;  %v5762_v0 = vld [vmem:[%s6633_s12 + $0x130] sm:$0xff]  }
 0x35c   : > { %v7366_v25 = vpop.permute.xlu1 %2509  ;;  %v7368_v51 = vpop.permute.xlu0 %2505 }
 0x35d   : > { %9541 = vst [vmem:[#allocation252_spill] sm:$0xff] %v7366_v25  ;;  %9542 = vst [vmem:[#allocation253_spill] sm:$0xff] %v7368_v51  ;;  %v4027_v62 = vadd.f32 %v4026_v24, %v3511_v38  ;;  %v9614_v51 = vld [vmem:[#allocation104_spill] sm:$0xff] }
 0x35e   : > { %2750 = vbcast.lane.b32.xlu1 %v7317_v50, 344  ;;  %2746 = vbcast.lane.b32.xlu0 %v7317_v50, 336 }
 0x360   : > { %v7376_v27 = vpop.permute.xlu1 %2517  ;;  %v7378_v4 = vpop.permute.xlu0 %2513 }
 0x361   : > { %9543 = vst [vmem:[#allocation254_spill] sm:$0xff] %v7376_v27  ;;  %9544 = vst [vmem:[#allocation255_spill] sm:$0xff] %v7378_v4  ;;  %v5749_v4 = vld [vmem:[%s6633_s12 + $0xc8] sm:$0xff]  }
 0x362   : > { %2758 = vbcast.lane.b32.xlu1 %v7317_v50, 360  ;;  %2754 = vbcast.lane.b32.xlu0 %v7317_v50, 352 }
 0x364   : > { %v7384_v15 = vpop.permute.xlu1 %2525  ;;  %v7386_v26 = vpop.permute.xlu0 %2521 }
 0x365   : > { %9545 = vst [vmem:[#allocation256_spill] sm:$0xff] %v7384_v15  ;;  %9546 = vst [vmem:[#allocation257_spill] sm:$0xff] %v7386_v26 }
 0x366   : > { %2766 = vbcast.lane.b32.xlu1 %v7317_v50, 376  ;;  %2762 = vbcast.lane.b32.xlu0 %v7317_v50, 368  ;;  %v3465_v50 = vmul.f32 %v4756_v55, %v6732_v41  ;;  %v3466_v41 = vmul.f32 %v4759_v36, %v6738_v44  ;;  %v5739_v55 = vld [vmem:[%s6633_s12 + $0x78] sm:$0xff]   ;;  %v4852_v44 = vunpack.c.h.bf16 %v5761_v9 }
 0x367   : > { %v4763_v37 = vunpack.c.l.bf16 %v5739_v55  ;;  %v4764_v42 = vunpack.c.h.bf16 %v5739_v55 }
 0x368   : > { %v7401_v29 = vpop.permute.xlu1 %2533  ;;  %v7403_v34 = vpop.permute.xlu0 %2529  ;;  %v3976_v19 = vadd.f32 %v3975_v33, %v3465_v50  ;;  %v3512_v50 = vmul.f32 %v4851_v63, %v6839_v61  ;;  %v4855_v61 = vunpack.c.l.bf16 %v5762_v0  ;;  %v4767_v63 = vunpack.c.l.bf16 %v5740_v10 }
 0x369   : > { %9547 = vst [vmem:[#allocation258_spill] sm:$0xff] %v7401_v29  ;;  %9548 = vst [vmem:[#allocation259_spill] sm:$0xff] %v7403_v34  ;;  %v3468_v43 = vmul.f32 %v4763_v37, %v6742_v46  ;;  %v3469_v55 = vmul.f32 %v4764_v42, %v6740_v45  ;;  %v4856_v46 = vunpack.c.h.bf16 %v5762_v0  ;;  %v5741_v42 = vld [vmem:[%s6633_s12 + $0x88] sm:$0xff]   ;;  %v9606_v29 = vld [vmem:[#allocation69_spill] sm:$0xff] }
 0x36a   : > { %2777 = vbcast.lane.b32.xlu1 %v7396_v7, 264  ;;  %2773 = vbcast.lane.b32.xlu0 %v7396_v7, 256  ;;  %v3977_v54 = vadd.f32 %v3976_v19, %v3466_v41  ;;  %v3513_v19 = vmul.f32 %v4852_v44, %v6837_v60  ;;  %v4028_v9 = vadd.f32 %v4027_v62, %v3512_v50  ;;  %v4768_v44 = vunpack.c.h.bf16 %v5740_v10  ;;  %v5763_v62 = vld [vmem:[%s6633_s12 + $0x138] sm:$0xff]  }
 0x36b   : > { %v3470_v45 = vmul.f32 %v4767_v63, %v6746_v48  ;;  %v4860_v48 = vunpack.c.h.bf16 %v5763_v62 }
 0x36c   : > { %v7409_v28 = vpop.permute.xlu1 %2541  ;;  %v7411_v40 = vpop.permute.xlu0 %2537  ;;  %v3978_v5 = vadd.f32 %v3977_v54, %v3467_v35  ;;  %v3514_v35 = vmul.f32 %v4855_v61, %v6843_v58  ;;  %v4029_v60 = vadd.f32 %v4028_v9, %v3513_v19  ;;  %v4859_v58 = vunpack.c.l.bf16 %v5763_v62  ;;  %v5742_v62 = vld [vmem:[%s6633_s12 + $0x90] sm:$0xff]  }
 0x36d   : > { %9549 = vst [vmem:[#allocation260_spill] sm:$0xff] %v7409_v28  ;;  %9550 = vst [vmem:[#allocation261_spill] sm:$0xff] %v7411_v40  ;;  %v3471_v10 = vmul.f32 %v4768_v44, %v6744_v47  ;;  %v4771_v61 = vunpack.c.l.bf16 %v5741_v42  ;;  %v7472_v47 = vrot.slane %v7213_v53, %v7257_v8  ;;  %v9564_v44 = vld [vmem:[#allocation25_spill] sm:$0xff]  ;;  %v4775_v53 = vunpack.c.l.bf16 %v5742_v62  ;;  %v5770_v28 = vld [vmem:[%s6633_s12 + $0x170] sm:$0xff]  }
 0x36e   : > { %2785 = vbcast.lane.b32.xlu1 %v7396_v7, 280  ;;  %2781 = vbcast.lane.b32.xlu0 %v7396_v7, 272  ;;  %v3979_v24 = vadd.f32 %v3978_v5, %v3468_v43  ;;  %v3515_v5 = vmul.f32 %v4856_v46, %v6841_v11  ;;  %v4030_v0 = vadd.f32 %v4029_v60, %v3514_v35  ;;  %v4772_v35 = vunpack.c.h.bf16 %v5741_v42  ;;  %v5788_v40 = vld [vmem:[%s6633_s12 + $0x200] sm:$0xff]  }
 0x370   : > { %v7419_v1 = vpop.permute.xlu1 %2549  ;;  %v7421_v22 = vpop.permute.xlu0 %2545  ;;  %v3980_v50 = vadd.f32 %v3979_v24, %v3469_v55  ;;  %v9561_v55 = vld [vmem:[#allocation55_spill] sm:$0xff]  ;;  %v4031_v11 = vadd.f32 %v4030_v0, %v3515_v5 }
 0x371   : > { %9551 = vst [vmem:[#allocation262_spill] sm:$0xff] %v7419_v1  ;;  %9552 = vst [vmem:[#allocation263_spill] sm:$0xff] %v7421_v22  ;;  %v3516_v24 = vmul.f32 %v4859_v58, %v9561_v55 }
 0x372   : > { %2793 = vbcast.lane.b32.xlu1 %v7396_v7, 296  ;;  %2789 = vbcast.lane.b32.xlu0 %v7396_v7, 288  ;;  %v3981_v9 = vadd.f32 %v3980_v50, %v3470_v45  ;;  %v3472_v50 = vmul.f32 %v4771_v61, %v9564_v44  ;;  %v9565_v45 = vld [vmem:[#allocation54_spill] sm:$0xff]  ;;  %v9569_v61 = vld [vmem:[#allocation57_spill] sm:$0xff] }
 0x373   : > { %v3517_v5 = vmul.f32 %v4860_v48, %v9565_v45  ;;  %v4032_v0 = vadd.f32 %v4031_v11, %v3516_v24  ;;  %v4776_v45 = vunpack.c.h.bf16 %v5742_v62 }
 0x374   : > { %v7427_v33 = vpop.permute.xlu1 %2557  ;;  %v7429_v36 = vpop.permute.xlu0 %2553  ;;  %v3982_v60 = vadd.f32 %v3981_v9, %v3471_v10  ;;  %v9568_v10 = vld [vmem:[#allocation24_spill] sm:$0xff] }
 0x375   : > { %9553 = vst [vmem:[#allocation264_spill] sm:$0xff] %v7427_v33  ;;  %9554 = vst [vmem:[#allocation265_spill] sm:$0xff] %v7429_v36  ;;  %v3473_v9 = vmul.f32 %v4772_v35, %v9568_v10  ;;  %v4033_v48 = vadd.f32 %v4032_v0, %v3517_v5  ;;  %v9572_v35 = vld [vmem:[#allocation27_spill] sm:$0xff]  ;;  %v9573_v10 = vld [vmem:[#allocation56_spill] sm:$0xff] }
 0x376   : > { %2801 = vbcast.lane.b32.xlu1 %v7396_v7, 312  ;;  %2797 = vbcast.lane.b32.xlu0 %v7396_v7, 304  ;;  %v5769_v33 = vld [vmem:[%s6633_s12 + $0x168] sm:$0xff]  }
 0x378   : > { %v7437_v41 = vpop.permute.xlu1 %2565  ;;  %v7439_v38 = vpop.permute.xlu0 %2561 }
 0x379   : > { %9555 = vst [vmem:[#allocation266_spill] sm:$0xff] %v7437_v41  ;;  %9556 = vst [vmem:[#allocation267_spill] sm:$0xff] %v7439_v38 }
 0x37a   : > { %2809 = vbcast.lane.b32.xlu1 %v7396_v7, 328  ;;  %2805 = vbcast.lane.b32.xlu0 %v7396_v7, 320 }
 0x37c   : > { %v7445_v54 = vpop.permute.xlu1 %2576  ;;  %v7447_v37 = vpop.permute.xlu0 %2572 }
 0x37d   : > { %9557 = vst [vmem:[#allocation268_spill] sm:$0xff] %v7445_v54  ;;  %9558 = vst [vmem:[#allocation269_spill] sm:$0xff] %v7447_v37  ;;  %v5746_v54 = vld [vmem:[%s6633_s12 + $0xb0] sm:$0xff]  }
 0x37e   : > { %2817 = vbcast.lane.b32.xlu1 %v7396_v7, 344  ;;  %2813 = vbcast.lane.b32.xlu0 %v7396_v7, 336 }
 0x380   : > { %v7455_v43 = vpop.permute.xlu1 %2584  ;;  %v7457_v19 = vpop.permute.xlu0 %2580 }
 0x381   : > { %9559 = vst [vmem:[#allocation270_spill] sm:$0xff] %v7455_v43  ;;  %9560 = vst [vmem:[#allocation271_spill] sm:$0xff] %v7457_v19  ;;  %v5764_v43 = vld [vmem:[%s6633_s12 + $0x140] sm:$0xff]  }
 0x382   : > { %2825 = vbcast.lane.b32.xlu1 %v7396_v7, 360  ;;  %2821 = vbcast.lane.b32.xlu0 %v7396_v7, 352  ;;  %v4863_v58 = vunpack.c.l.bf16 %v5764_v43  ;;  %v4864_v8 = vunpack.c.h.bf16 %v5764_v43 }
 0x384   : > { %v7463_v63 = vpop.permute.xlu1 %2592  ;;  %v7465_v46 = vpop.permute.xlu0 %2588  ;;  %v3518_v44 = vmul.f32 %v4863_v58, %v9569_v61  ;;  %v9576_v61 = vld [vmem:[#allocation26_spill] sm:$0xff] }
 0x385   : > { %9562 = vst [vmem:[#allocation55_spill] sm:$0xff] %v7463_v63  ;;  %9563 = vst [vmem:[#allocation272_spill] sm:$0xff] %v7465_v46  ;;  %v3519_v63 = vmul.f32 %v4864_v8, %v9573_v10  ;;  %v3475_v62 = vmul.f32 %v4776_v45, %v9576_v61  ;;  %v9581_v61 = vld [vmem:[#allocation58_spill] sm:$0xff] }
 0x386   : > { %2833 = vbcast.lane.b32.xlu1 %v7396_v7, 376  ;;  %2829 = vbcast.lane.b32.xlu0 %v7396_v7, 368  ;;  %v3983_v7 = vadd.f32 %v3982_v60, %v3472_v50  ;;  %v3474_v60 = vmul.f32 %v4775_v53, %v9572_v35  ;;  %v5743_v50 = vld [vmem:[%s6633_s12 + $0x98] sm:$0xff]   ;;  %v4034_v43 = vadd.f32 %v4033_v48, %v3518_v44  ;;  %v9577_v35 = vld [vmem:[#allocation59_spill] sm:$0xff] }
 0x387   : > { %v4780_v10 = vunpack.c.h.bf16 %v5743_v50 }
 0x388   : > { %v7477_v55 = vpop.permute.xlu1 %2600  ;;  %v7479_v42 = vpop.permute.xlu0 %2596  ;;  %v4035_v8 = vadd.f32 %v4034_v43, %v3519_v63 }
 0x389   : > { %9566 = vst [vmem:[#allocation25_spill] sm:$0xff] %v7477_v55  ;;  %9567 = vst [vmem:[#allocation54_spill] sm:$0xff] %v7479_v42  ;;  %v3984_v55 = vadd.f32 %v3983_v7, %v3473_v9  ;;  %v5765_v42 = vld [vmem:[%s6633_s12 + $0x148] sm:$0xff]   ;;  %v4779_v7 = vunpack.c.l.bf16 %v5743_v50 }
 0x38a   : > { %2844 = vbcast.lane.b32.xlu1 %v7472_v47, 264  ;;  %2840 = vbcast.lane.b32.xlu0 %v7472_v47, 256  ;;  %v4867_v58 = vunpack.c.l.bf16 %v5765_v42  ;;  %v4868_v53 = vunpack.c.h.bf16 %v5765_v42 }
 0x38b   : > { %v3985_v9 = vadd.f32 %v3984_v55, %v3474_v60  ;;  %v9580_v55 = vld [vmem:[#allocation29_spill] sm:$0xff]  ;;  %v5744_v60 = vld [vmem:[%s6633_s12 + $0xa0] sm:$0xff]  }
 0x38c   : > { %v7485_v24 = vpop.permute.xlu1 %2608  ;;  %v7487_v11 = vpop.permute.xlu0 %2604  ;;  %v3476_v45 = vmul.f32 %v4779_v7, %v9580_v55  ;;  %v9585_v55 = vld [vmem:[#allocation61_spill] sm:$0xff] }
 0x38d   : > { %9570 = vst [vmem:[#allocation24_spill] sm:$0xff] %v7485_v24  ;;  %9571 = vst [vmem:[#allocation57_spill] sm:$0xff] %v7487_v11  ;;  %v3520_v24 = vmul.f32 %v4867_v58, %v9577_v35  ;;  %v3521_v11 = vmul.f32 %v4868_v53, %v9581_v61  ;;  %v9584_v35 = vld [vmem:[#allocation28_spill] sm:$0xff]  ;;  %v4784_v61 = vunpack.c.h.bf16 %v5744_v60 }
 0x38e   : > { %2852 = vbcast.lane.b32.xlu1 %v7472_v47, 280  ;;  %2848 = vbcast.lane.b32.xlu0 %v7472_v47, 272  ;;  %v3477_v50 = vmul.f32 %v4780_v10, %v9584_v35  ;;  %v9587_v35 = vld [vmem:[#allocation60_spill] sm:$0xff] }
 0x38f   : > { %v4036_v42 = vadd.f32 %v4035_v8, %v3520_v24 }
 0x390   : > { %v7495_v5 = vpop.permute.xlu1 %2616  ;;  %v7497_v0 = vpop.permute.xlu0 %2612 }
 0x391   : > { %9574 = vst [vmem:[#allocation27_spill] sm:$0xff] %v7495_v5  ;;  %9575 = vst [vmem:[#allocation56_spill] sm:$0xff] %v7497_v0  ;;  %v3986_v5 = vadd.f32 %v3985_v9, %v3475_v62  ;;  %v5766_v0 = vld [vmem:[%s6633_s12 + $0x150] sm:$0xff]   ;;  %v4783_v9 = vunpack.c.l.bf16 %v5744_v60  ;;  %v4037_v53 = vadd.f32 %v4036_v42, %v3521_v11 }
 0x392   : > { %2860 = vbcast.lane.b32.xlu1 %v7472_v47, 296  ;;  %2856 = vbcast.lane.b32.xlu0 %v7472_v47, 288  ;;  %v4871_v58 = vunpack.c.l.bf16 %v5766_v0  ;;  %v4872_v7 = vunpack.c.h.bf16 %v5766_v0 }
 0x393   : > { %v3987_v62 = vadd.f32 %v3986_v5, %v3476_v45  ;;  %v9586_v5 = vld [vmem:[#allocation31_spill] sm:$0xff] }
 0x394   : > { %v7503_v44 = vpop.permute.xlu1 %2624  ;;  %v7505_v48 = vpop.permute.xlu0 %2620  ;;  %v3478_v10 = vmul.f32 %v4783_v9, %v9586_v5  ;;  %v5745_v45 = vld [vmem:[%s6633_s12 + $0xa8] sm:$0xff]  }
 0x395   : > { %9578 = vst [vmem:[#allocation26_spill] sm:$0xff] %v7503_v44  ;;  %9579 = vst [vmem:[#allocation59_spill] sm:$0xff] %v7505_v48  ;;  %v3522_v44 = vmul.f32 %v4871_v58, %v9585_v55  ;;  %v3523_v48 = vmul.f32 %v4872_v7, %v9587_v35  ;;  %v9588_v58 = vld [vmem:[#allocation30_spill] sm:$0xff]  ;;  %v4787_v9 = vunpack.c.l.bf16 %v5745_v45  ;;  %v4788_v19 = vunpack.c.h.bf16 %v5745_v45 }
 0x396   : > { %2868 = vbcast.lane.b32.xlu1 %v7472_v47, 312  ;;  %2864 = vbcast.lane.b32.xlu0 %v7472_v47, 304  ;;  %v3479_v60 = vmul.f32 %v4784_v61, %v9588_v58  ;;  %v9591_v58 = vld [vmem:[#allocation33_spill] sm:$0xff] }
 0x397   : > { %v4038_v0 = vadd.f32 %v4037_v53, %v3522_v44  ;;  %v9590_v44 = vld [vmem:[#allocation63_spill] sm:$0xff] }
 0x398   : > { %v7513_v63 = vpop.permute.xlu1 %2632  ;;  %v7515_v43 = vpop.permute.xlu0 %2628 }
 0x399   : > { %9582 = vst [vmem:[#allocation29_spill] sm:$0xff] %v7513_v63  ;;  %9583 = vst [vmem:[#allocation58_spill] sm:$0xff] %v7515_v43  ;;  %v3988_v63 = vadd.f32 %v3987_v62, %v3477_v50  ;;  %v5767_v43 = vld [vmem:[%s6633_s12 + $0x158] sm:$0xff]   ;;  %v7539_v62 = vsub.s32 6, %v6654_v2  ;;  %v4039_v53 = vadd.f32 %v4038_v0, %v3523_v48 }
 0x39a   : > { %2876 = vbcast.lane.b32.xlu1 %v7472_v47, 328  ;;  %2872 = vbcast.lane.b32.xlu0 %v7472_v47, 320  ;;  %v4875_v46 = vunpack.c.l.bf16 %v5767_v43  ;;  %v4876_v7 = vunpack.c.h.bf16 %v5767_v43  ;;  %v3480_v43 = vmul.f32 %v4787_v9, %v9591_v58  ;;  %v9594_v58 = vld [vmem:[#allocation65_spill] sm:$0xff] }
 0x39b   : > { %v3989_v50 = vadd.f32 %v3988_v63, %v3478_v10  ;;  %9589 = vst [vmem:[#allocation28_spill] sm:$0xff] %v7539_v62  ;;  %v5768_v63 = vld [vmem:[%s6633_s12 + $0x160] sm:$0xff]   ;;  %v7551_v10 = vrot.slane %v7264_v52, %v7539_v62  ;;  %v4791_v52 = vunpack.c.l.bf16 %v5746_v54 }
 0x39c   : > { %v7521_v24 = vpop.permute.xlu1 %2643  ;;  %v7523_v8 = vpop.permute.xlu0 %2639  ;;  %v3524_v55 = vmul.f32 %v4875_v46, %v9590_v44  ;;  %v9592_v46 = vld [vmem:[#allocation62_spill] sm:$0xff]  ;;  %v4879_v44 = vunpack.c.l.bf16 %v5768_v63  ;;  %v4880_v9 = vunpack.c.h.bf16 %v5768_v63 }
 0x39d   : > { %v3990_v61 = vadd.f32 %v3989_v50, %v3479_v60  ;;  %v3525_v48 = vmul.f32 %v4876_v7, %v9592_v46  ;;  %v9593_v60 = vld [vmem:[#allocation32_spill] sm:$0xff]  ;;  %v4792_v46 = vunpack.c.h.bf16 %v5746_v54 }
 0x39e   : > { %2884 = vbcast.lane.b32.xlu1 %v7472_v47, 344  ;;  %2880 = vbcast.lane.b32.xlu0 %v7472_v47, 336  ;;  %v4040_v0 = vadd.f32 %v4039_v53, %v3524_v55  ;;  %v3481_v50 = vmul.f32 %v4788_v19, %v9593_v60  ;;  %v3526_v41 = vmul.f32 %v4879_v44, %v9594_v58  ;;  %v9595_v19 = vld [vmem:[#allocation35_spill] sm:$0xff]  ;;  %v9596_v60 = vld [vmem:[#allocation64_spill] sm:$0xff]  ;;  %v4883_v44 = vunpack.c.l.bf16 %v5769_v33  ;;  %v9597_v58 = vld [vmem:[#allocation34_spill] sm:$0xff] }
 0x39f   : > { %v3527_v36 = vmul.f32 %v4880_v9, %v9596_v60  ;;  %v3483_v54 = vmul.f32 %v4792_v46, %v9597_v58 }
 0x3a0   : > { %v7531_v11 = vpop.permute.xlu1 %2651  ;;  %v7533_v42 = vpop.permute.xlu0 %2647  ;;  %v4041_v7 = vadd.f32 %v4040_v0, %v3525_v48 }
 0x3a2   : > { %2892 = vbcast.lane.b32.xlu1 %v7472_v47, 360  ;;  %2888 = vbcast.lane.b32.xlu0 %v7472_v47, 352  ;;  %v4042_v63 = vadd.f32 %v4041_v7, %v3526_v41 }
 0x3a4   : > { %v7542_v5 = vpop.permute.xlu1 %2659  ;;  %v7544_v35 = vpop.permute.xlu0 %2655  ;;  %v4043_v9 = vadd.f32 %v4042_v63, %v3527_v36  ;;  %v4887_v36 = vunpack.c.l.bf16 %v5770_v28 }
 0x3a6   : > { %2900 = vbcast.lane.b32.xlu1 %v7472_v47, 376  ;;  %2896 = vbcast.lane.b32.xlu0 %v7472_v47, 368  ;;  %v3991_v47 = vadd.f32 %v3990_v61, %v3480_v43  ;;  %v3482_v61 = vmul.f32 %v4791_v52, %v9595_v19  ;;  %v5747_v43 = vld [vmem:[%s6633_s12 + $0xb8] sm:$0xff]   ;;  %v4884_v52 = vunpack.c.h.bf16 %v5769_v33  ;;  %v9598_v19 = vld [vmem:[#allocation67_spill] sm:$0xff]  ;;  %v9602_v33 = vld [vmem:[#allocation66_spill] sm:$0xff] }
 0x3a7   : > { %v3528_v1 = vmul.f32 %v4883_v44, %v9598_v19  ;;  %v4796_v60 = vunpack.c.h.bf16 %v5747_v43 }
 0x3a8   : > { %v7556_v37 = vpop.permute.xlu1 %2667  ;;  %v7558_v45 = vpop.permute.xlu0 %2663  ;;  %v3992_v38 = vadd.f32 %v3991_v47, %v3481_v50  ;;  %v4795_v47 = vunpack.c.l.bf16 %v5747_v43  ;;  %v3529_v58 = vmul.f32 %v4884_v52, %v9602_v33  ;;  %v9605_v43 = vld [vmem:[#allocation36_spill] sm:$0xff]  ;;  %v3530_v52 = vmul.f32 %v4887_v36, %v9606_v29 }
 0x3a9   : > { %v4044_v44 = vadd.f32 %v4043_v9, %v3528_v1  ;;  %v5789_v9 = vld [vmem:[%s6633_s12 + $0x208] sm:$0xff]   ;;  %v9610_v29 = vld [vmem:[#allocation68_spill] sm:$0xff] }
 0x3aa   : > { %2911 = vbcast.lane.b32.xlu1 %v7551_v10, 264  ;;  %2907 = vbcast.lane.b32.xlu0 %v7551_v10, 256  ;;  %v3993_v50 = vadd.f32 %v3992_v38, %v3482_v61  ;;  %v9601_v38 = vld [vmem:[#allocation37_spill] sm:$0xff]  ;;  %v5748_v61 = vld [vmem:[%s6633_s12 + $0xc0] sm:$0xff]  }
 0x3ab   : > { %v3484_v46 = vmul.f32 %v4795_v47, %v9601_v38  ;;  %v4799_v47 = vunpack.c.l.bf16 %v5748_v61  ;;  %v4888_v38 = vunpack.c.h.bf16 %v5770_v28  ;;  %v4045_v1 = vadd.f32 %v4044_v44, %v3529_v58 }
 0x3ac   : > { %v7564_v55 = vpop.permute.xlu1 %2675  ;;  %v7566_v53 = vpop.permute.xlu0 %2671  ;;  %v3994_v22 = vadd.f32 %v3993_v50, %v3483_v54  ;;  %v3485_v54 = vmul.f32 %v4796_v60, %v9605_v43  ;;  %v4800_v15 = vunpack.c.h.bf16 %v5748_v61  ;;  %v5771_v60 = vld [vmem:[%s6633_s12 + $0x178] sm:$0xff]   ;;  %v9609_v43 = vld [vmem:[#allocation39_spill] sm:$0xff]  ;;  %v4963_v28 = vunpack.c.l.bf16 %v5789_v9 }
 0x3ad   : > { %v3486_v27 = vmul.f32 %v4799_v47, %v9609_v43  ;;  %v3531_v58 = vmul.f32 %v4888_v38, %v9610_v29  ;;  %v4046_v44 = vadd.f32 %v4045_v1, %v3530_v52  ;;  %v4891_v36 = vunpack.c.l.bf16 %v5771_v60  ;;  %v9616_v52 = vld [vmem:[#allocation107_spill] sm:$0xff] }
 0x3ae   : > { %2919 = vbcast.lane.b32.xlu1 %v7551_v10, 280  ;;  %2915 = vbcast.lane.b32.xlu0 %v7551_v10, 272  ;;  %v3995_v50 = vadd.f32 %v3994_v22, %v3484_v46  ;;  %v4960_v22 = vunpack.c.h.bf16 %v5788_v40  ;;  %v4959_v46 = vunpack.c.l.bf16 %v5788_v40  ;;  %v4803_v47 = vunpack.c.l.bf16 %v5749_v4  ;;  %v9617_v29 = vld [vmem:[#allocation71_spill] sm:$0xff] }
 0x3af   : > { %v4964_v38 = vunpack.c.h.bf16 %v5789_v9  ;;  %v3568_v1 = vmul.f32 %v4963_v28, %v9616_v52  ;;  %v4892_v43 = vunpack.c.h.bf16 %v5771_v60  ;;  %v3532_v30 = vmul.f32 %v4891_v36, %v9617_v29  ;;  %v9620_v60 = vld [vmem:[#allocation41_spill] sm:$0xff]  ;;  %v5750_v52 = vld [vmem:[%s6633_s12 + $0xd0] sm:$0xff]   ;;  %v9622_v29 = vld [vmem:[#allocation70_spill] sm:$0xff] }
 0x3b0   : > { %v7574_v48 = vpop.permute.xlu1 %2683  ;;  %v7576_v0 = vpop.permute.xlu0 %2679  ;;  %v3996_v26 = vadd.f32 %v3995_v50, %v3485_v54  ;;  %v9613_v54 = vld [vmem:[#allocation38_spill] sm:$0xff]  ;;  %v3567_v23 = vmul.f32 %v4960_v22, %v9614_v51  ;;  %v3566_v57 = vmul.f32 %v4959_v46, %v9615_v32  ;;  %v4804_v51 = vunpack.c.h.bf16 %v5749_v4 }
 0x3b1   : > { %v3487_v50 = vmul.f32 %v4800_v15, %v9613_v54  ;;  %v5790_v15 = vld [vmem:[%s6633_s12 + $0x210] sm:$0xff]   ;;  %v5772_v22 = vld [vmem:[%s6633_s12 + $0x180] sm:$0xff]   ;;  %v7633_v9 = vrot.slane %v7313_v31, %v7539_v62  ;;  %v3488_v28 = vmul.f32 %v4803_v47, %v9620_v60  ;;  %v3533_v4 = vmul.f32 %v4892_v43, %v9622_v29  ;;  %v5791_v29 = vld [vmem:[%s6633_s12 + $0x218] sm:$0xff]  }
 0x3b2   : > { %2927 = vbcast.lane.b32.xlu1 %v7551_v10, 296  ;;  %2923 = vbcast.lane.b32.xlu0 %v7551_v10, 288  ;;  %v3997_v40 = vadd.f32 %v3996_v26, %v3486_v27  ;;  %v4088_v46 = vadd.f32 %v3567_v23, %v3566_v57  ;;  %v4967_v54 = vunpack.c.l.bf16 %v5790_v15  ;;  %v4895_v57 = vunpack.c.l.bf16 %v5772_v22 }
 0x3b3   : > { %v4807_v47 = vunpack.c.l.bf16 %v5750_v52 }
 0x3b4   : > { %v7582_v41 = vpop.permute.xlu1 %2691  ;;  %v7584_v7 = vpop.permute.xlu0 %2687  ;;  %v3998_v32 = vadd.f32 %v3997_v40, %v3487_v50  ;;  %v4089_v36 = vadd.f32 %v4088_v46, %v3568_v1  ;;  %v9626_v1 = vld [vmem:[#allocation109_spill] sm:$0xff] }
 0x3b5   : > { %9599 = vst [vmem:[#allocation61_spill] sm:$0xff] %v7582_v41  ;;  %9600 = vst [vmem:[#allocation31_spill] sm:$0xff] %v7584_v7  ;;  %v3570_v46 = vmul.f32 %v4967_v54, %v9626_v1  ;;  %v4971_v1 = vunpack.c.l.bf16 %v5791_v29  ;;  %v9699_v41 = vld [vmem:[#allocation172_spill] sm:$0xff] }
 0x3b6   : > { %2935 = vbcast.lane.b32.xlu1 %v7551_v10, 312  ;;  %2931 = vbcast.lane.b32.xlu0 %v7551_v10, 304  ;;  %v3999_v31 = vadd.f32 %v3998_v32, %v3488_v28  ;;  %v4808_v32 = vunpack.c.h.bf16 %v5750_v52  ;;  %v9635_v52 = vld [vmem:[#allocation42_spill] sm:$0xff] }
 0x3b8   : > { %v7592_v63 = vpop.permute.xlu1 %2699  ;;  %v7594_v19 = vpop.permute.xlu0 %2695 }
 0x3b9   : > { %9603 = vst [vmem:[#allocation60_spill] sm:$0xff] %v7592_v63  ;;  %9604 = vst [vmem:[#allocation30_spill] sm:$0xff] %v7594_v19  ;;  %v9668_v63 = vld [vmem:[#allocation169_spill] sm:$0xff] }
 0x3ba   : > { %2943 = vbcast.lane.b32.xlu1 %v7551_v10, 328  ;;  %2939 = vbcast.lane.b32.xlu0 %v7551_v10, 320 }
 0x3bc   : > { %v7602_v33 = vpop.permute.xlu1 %2710  ;;  %v7604_v34 = vpop.permute.xlu0 %2706 }
 0x3bd   : > { %9607 = vst [vmem:[#allocation63_spill] sm:$0xff] %v7602_v33  ;;  %9608 = vst [vmem:[#allocation33_spill] sm:$0xff] %v7604_v34 }
 0x3be   : > { %2951 = vbcast.lane.b32.xlu1 %v7551_v10, 344  ;;  %2947 = vbcast.lane.b32.xlu0 %v7551_v10, 336 }
 0x3c0   : > { %v7612_v25 = vpop.permute.xlu1 %2718  ;;  %v7614_v61 = vpop.permute.xlu0 %2714 }
 0x3c1   : > { %9611 = vst [vmem:[#allocation62_spill] sm:$0xff] %v7612_v25  ;;  %9612 = vst [vmem:[#allocation32_spill] sm:$0xff] %v7614_v61  ;;  %v4047_v25 = vadd.f32 %v4046_v44, %v3531_v58  ;;  %v9621_v58 = vld [vmem:[#allocation106_spill] sm:$0xff] }
 0x3c2   : > { %2959 = vbcast.lane.b32.xlu1 %v7551_v10, 360  ;;  %2955 = vbcast.lane.b32.xlu0 %v7551_v10, 352  ;;  %v3569_v44 = vmul.f32 %v4964_v38, %v9621_v58  ;;  %v4968_v38 = vunpack.c.h.bf16 %v5790_v15  ;;  %v9630_v15 = vld [vmem:[#allocation43_spill] sm:$0xff] }
 0x3c3   : > { %v4048_v50 = vadd.f32 %v4047_v25, %v3532_v30  ;;  %v4896_v30 = vunpack.c.h.bf16 %v5772_v22  ;;  %v9627_v25 = vld [vmem:[#allocation73_spill] sm:$0xff]  ;;  %v3490_v54 = vmul.f32 %v4807_v47, %v9630_v15 }
 0x3c4   : > { %v7624_v27 = vpop.permute.xlu1 %2726  ;;  %v7626_v26 = vpop.permute.xlu0 %2722  ;;  %v4090_v43 = vadd.f32 %v4089_v36, %v3569_v44  ;;  %v3534_v60 = vmul.f32 %v4895_v57, %v9627_v25  ;;  %v9631_v44 = vld [vmem:[#allocation108_spill] sm:$0xff]  ;;  %v5751_v57 = vld [vmem:[%s6633_s12 + $0xd8] sm:$0xff]  }
 0x3c5   : > { %9618 = vst [vmem:[#allocation65_spill] sm:$0xff] %v7624_v27  ;;  %9619 = vst [vmem:[#allocation35_spill] sm:$0xff] %v7626_v26  ;;  %v4049_v58 = vadd.f32 %v4048_v50, %v3533_v4  ;;  %v3571_v36 = vmul.f32 %v4968_v38, %v9631_v44  ;;  %v9632_v4 = vld [vmem:[#allocation72_spill] sm:$0xff]  ;;  %v4811_v47 = vunpack.c.l.bf16 %v5751_v57  ;;  %v4972_v38 = vunpack.c.h.bf16 %v5791_v29  ;;  %v9640_v29 = vld [vmem:[#allocation45_spill] sm:$0xff] }
 0x3c6   : > { %2967 = vbcast.lane.b32.xlu1 %v7551_v10, 376  ;;  %2963 = vbcast.lane.b32.xlu0 %v7551_v10, 368  ;;  %v9625_v10 = vld [vmem:[#allocation40_spill] sm:$0xff]  ;;  %v4091_v22 = vadd.f32 %v4090_v43, %v3570_v46  ;;  %v3535_v50 = vmul.f32 %v4896_v30, %v9632_v4  ;;  %v9636_v46 = vld [vmem:[#allocation111_spill] sm:$0xff]  ;;  %v5792_v4 = vld [vmem:[%s6633_s12 + $0x220] sm:$0xff]  }
 0x3c7   : > { %v3489_v27 = vmul.f32 %v4804_v51, %v9625_v10  ;;  %v5773_v10 = vld [vmem:[%s6633_s12 + $0x188] sm:$0xff]   ;;  %v4050_v25 = vadd.f32 %v4049_v58, %v3534_v60  ;;  %v3572_v43 = vmul.f32 %v4971_v1, %v9636_v46  ;;  %v3492_v1 = vmul.f32 %v4811_v47, %v9640_v29 }
 0x3c8   : > { %v7639_v23 = vpop.permute.xlu1 %2734  ;;  %v7641_v40 = vpop.permute.xlu0 %2730  ;;  %v4092_v30 = vadd.f32 %v4091_v22, %v3571_v36  ;;  %v4900_v60 = vunpack.c.h.bf16 %v5773_v10  ;;  %v9637_v58 = vld [vmem:[#allocation75_spill] sm:$0xff]  ;;  %v9641_v36 = vld [vmem:[#allocation110_spill] sm:$0xff]  ;;  %v4975_v46 = vunpack.c.l.bf16 %v5792_v4 }
 0x3c9   : > { %9623 = vst [vmem:[#allocation64_spill] sm:$0xff] %v7639_v23  ;;  %9624 = vst [vmem:[#allocation34_spill] sm:$0xff] %v7641_v40  ;;  %v4000_v28 = vadd.f32 %v3999_v31, %v3489_v27  ;;  %v3491_v31 = vmul.f32 %v4808_v32, %v9635_v52  ;;  %v4051_v44 = vadd.f32 %v4050_v25, %v3535_v50  ;;  %v5774_v52 = vld [vmem:[%s6633_s12 + $0x190] sm:$0xff]   ;;  %v9642_v50 = vld [vmem:[#allocation74_spill] sm:$0xff] }
 0x3ca   : > { %2978 = vbcast.lane.b32.xlu1 %v7633_v9, 264  ;;  %2974 = vbcast.lane.b32.xlu0 %v7633_v9, 256  ;;  %v3573_v22 = vmul.f32 %v4972_v38, %v9641_v36  ;;  %v3537_v25 = vmul.f32 %v4900_v60, %v9642_v50  ;;  %v4976_v38 = vunpack.c.h.bf16 %v5792_v4  ;;  %v5793_v50 = vld [vmem:[%s6633_s12 + $0x228] sm:$0xff]  }
 0x3cb   : > { %v4001_v40 = vadd.f32 %v4000_v28, %v3490_v54  ;;  %v4812_v28 = vunpack.c.h.bf16 %v5751_v57  ;;  %v9645_v57 = vld [vmem:[#allocation44_spill] sm:$0xff]  ;;  %v9650_v4 = vld [vmem:[#allocation47_spill] sm:$0xff] }
 0x3cc   : > { %v7649_v23 = vpop.permute.xlu1 %2742  ;;  %v7651_v51 = vpop.permute.xlu0 %2738  ;;  %v7727_v26 = vld [vmem:[%s6633_s12 + $0x308] sm:$0xff]  }
 0x3cd   : > { %9628 = vst [vmem:[#allocation67_spill] sm:$0xff] %v7649_v23  ;;  %9629 = vst [vmem:[#allocation37_spill] sm:$0xff] %v7651_v51  ;;  %v4899_v23 = vunpack.c.l.bf16 %v5773_v10  ;;  %v4002_v54 = vadd.f32 %v4001_v40, %v3491_v31  ;;  %v4093_v10 = vadd.f32 %v4092_v30, %v3572_v43  ;;  %v3493_v31 = vmul.f32 %v4812_v28, %v9645_v57  ;;  %v9646_v43 = vld [vmem:[#allocation113_spill] sm:$0xff] }
 0x3ce   : > { %2986 = vbcast.lane.b32.xlu1 %v7633_v9, 280  ;;  %2982 = vbcast.lane.b32.xlu0 %v7633_v9, 272  ;;  %v3574_v30 = vmul.f32 %v4975_v46, %v9646_v43  ;;  %v5775_v57 = vld [vmem:[%s6633_s12 + $0x198] sm:$0xff]   ;;  %v9652_v43 = vld [vmem:[#allocation76_spill] sm:$0xff] }
 0x3cf   : > { %v3536_v15 = vmul.f32 %v4899_v23, %v9637_v58  ;;  %v5752_v23 = vld [vmem:[%s6633_s12 + $0xe0] sm:$0xff]   ;;  %v4094_v60 = vadd.f32 %v4093_v10, %v3573_v22  ;;  %v9651_v10 = vld [vmem:[#allocation112_spill] sm:$0xff] }
 0x3d0   : > { %v7660_v51 = vpop.permute.xlu1 %2750  ;;  %v7662_v27 = vpop.permute.xlu0 %2746  ;;  %v4815_v47 = vunpack.c.l.bf16 %v5752_v23 }
 0x3d1   : > { %9633 = vst [vmem:[#allocation66_spill] sm:$0xff] %v7660_v51  ;;  %9634 = vst [vmem:[#allocation36_spill] sm:$0xff] %v7662_v27  ;;  %v4052_v58 = vadd.f32 %v4051_v44, %v3536_v15  ;;  %v4003_v27 = vadd.f32 %v4002_v54, %v3492_v1  ;;  %v4904_v15 = vunpack.c.h.bf16 %v5774_v52  ;;  %v9647_v44 = vld [vmem:[#allocation77_spill] sm:$0xff]  ;;  %v4816_v54 = vunpack.c.h.bf16 %v5752_v23 }
 0x3d2   : > { %2994 = vbcast.lane.b32.xlu1 %v7633_v9, 296  ;;  %2990 = vbcast.lane.b32.xlu0 %v7633_v9, 288  ;;  %v3494_v22 = vmul.f32 %v4815_v47, %v9650_v4  ;;  %v4095_v46 = vadd.f32 %v4094_v60, %v3574_v30  ;;  %v7711_v30 = vld [vmem:[%s6633_s12 + $0xf8] sm:$0xff]   ;;  %v5820_v60 = vld [vmem:[%s6633_s12 + $0x300] sm:$0xff]  }
 0x3d3   : > { %v4053_v36 = vadd.f32 %v4052_v58, %v3537_v25  ;;  %v4004_v1 = vadd.f32 %v4003_v27, %v3493_v31  ;;  %v4979_v25 = vunpack.c.l.bf16 %v5793_v50  ;;  %v7702_v58 = vld [vmem:[%s6633_s12 + $0xf0] sm:$0xff]   ;;  %v3539_v23 = vmul.f32 %v4904_v15, %v9652_v43 }
 0x3d4   : > { %v7670_v51 = vpop.permute.xlu1 %2758  ;;  %v7672_v32 = vpop.permute.xlu0 %2754  ;;  %v4907_v31 = vunpack.c.l.bf16 %v5775_v57 }
 0x3d5   : > { %9638 = vst [vmem:[#allocation69_spill] sm:$0xff] %v7670_v51  ;;  %9639 = vst [vmem:[#allocation39_spill] sm:$0xff] %v7672_v32  ;;  %v4903_v51 = vunpack.c.l.bf16 %v5774_v52  ;;  %v5753_v52 = vld [vmem:[%s6633_s12 + $0xe8] sm:$0xff]   ;;  %v4005_v47 = vadd.f32 %v4004_v1, %v3494_v22  ;;  %v4908_v22 = vunpack.c.h.bf16 %v5775_v57  ;;  %v9660_v57 = vld [vmem:[#allocation49_spill] sm:$0xff] }
 0x3d6   : > { %3002 = vbcast.lane.b32.xlu1 %v7633_v9, 312  ;;  %2998 = vbcast.lane.b32.xlu0 %v7633_v9, 304  ;;  %v4820_v4 = vunpack.c.h.bf16 %v5753_v52 }
 0x3d7   : > { %v3538_v29 = vmul.f32 %v4903_v51, %v9647_v44  ;;  %v3575_v51 = vmul.f32 %v4976_v38, %v9651_v10  ;;  %v4819_v38 = vunpack.c.l.bf16 %v5753_v52  ;;  %v9656_v10 = vld [vmem:[#allocation115_spill] sm:$0xff] }
 0x3d8   : > { %v7681_v32 = vpop.permute.xlu1 %2766  ;;  %v7683_v40 = vpop.permute.xlu0 %2762  ;;  %v9657_v52 = vld [vmem:[#allocation79_spill] sm:$0xff] }
 0x3d9   : > { %9643 = vst [vmem:[#allocation68_spill] sm:$0xff] %v7681_v32  ;;  %9644 = vst [vmem:[#allocation38_spill] sm:$0xff] %v7683_v40  ;;  %v4054_v27 = vadd.f32 %v4053_v36, %v3538_v29  ;;  %v7718_v29 = vld [vmem:[%s6633_s12 + $0x1a0] sm:$0xff]   ;;  %v4980_v36 = vunpack.c.h.bf16 %v5793_v50  ;;  %v3540_v43 = vmul.f32 %v4907_v31, %v9657_v52  ;;  %v7747_v31 = vld [vmem:[%s6633_s12 + $0x1b0] sm:$0xff]  }
 0x3da   : > { %3010 = vbcast.lane.b32.xlu1 %v7633_v9, 328  ;;  %3006 = vbcast.lane.b32.xlu0 %v7633_v9, 320 }
 0x3dc   : > { %v7691_v32 = vpop.permute.xlu1 %2777  ;;  %v7693_v28 = vpop.permute.xlu0 %2773 }
 0x3dd   : > { %9648 = vst [vmem:[#allocation104_spill] sm:$0xff] %v7691_v32  ;;  %9649 = vst [vmem:[#allocation105_spill] sm:$0xff] %v7693_v28  ;;  %v9655_v28 = vld [vmem:[#allocation46_spill] sm:$0xff] }
 0x3de   : > { %3018 = vbcast.lane.b32.xlu1 %v7633_v9, 344  ;;  %3014 = vbcast.lane.b32.xlu0 %v7633_v9, 336  ;;  %v3495_v40 = vmul.f32 %v4816_v54, %v9655_v28  ;;  %v3576_v28 = vmul.f32 %v4979_v25, %v9656_v10  ;;  %v4096_v54 = vadd.f32 %v4095_v46, %v3575_v51  ;;  %v7735_v25 = vld [vmem:[%s6633_s12 + $0x1a8] sm:$0xff]   ;;  %v5088_v51 = vunpack.c.h.bf16 %v5820_v60 }
 0x3df   : > { %v5087_v46 = vunpack.c.l.bf16 %v5820_v60  ;;  %v3496_v10 = vmul.f32 %v4819_v38, %v9660_v57  ;;  %v5091_v57 = vunpack.c.l.bf16 %v7727_v26 }
 0x3e0   : > { %v7705_v44 = vpop.permute.xlu1 %2785  ;;  %v7707_v32 = vpop.permute.xlu0 %2781  ;;  %v4006_v33 = vadd.f32 %v4005_v47, %v3495_v40  ;;  %v7744_v40 = vrot.slane %v7392_v39, %v7539_v62  ;;  %v9662_v47 = vld [vmem:[#allocation114_spill] sm:$0xff]  ;;  %v4097_v60 = vadd.f32 %v4096_v54, %v3576_v28  ;;  %v9666_v62 = vld [vmem:[#allocation48_spill] sm:$0xff]  ;;  %v7761_v54 = vld [vmem:[%s6633_s12 + $0x1b8] sm:$0xff]  }
 0x3e1   : > { %9653 = vst [vmem:[#allocation107_spill] sm:$0xff] %v7705_v44  ;;  %9654 = vst [vmem:[#allocation71_spill] sm:$0xff] %v7707_v32  ;;  %v4055_v44 = vadd.f32 %v4054_v27, %v3539_v23  ;;  %v7724_v32 = vld [vmem:[%s6633_s12 + $0x230] sm:$0xff]   ;;  %v4911_v27 = vunpack.c.l.bf16 %v7718_v29  ;;  %v3577_v52 = vmul.f32 %v4980_v36, %v9662_v47  ;;  %v9663_v23 = vld [vmem:[#allocation78_spill] sm:$0xff]  ;;  %v3497_v36 = vmul.f32 %v4820_v4, %v9666_v62 }
 0x3e2   : > { %3026 = vbcast.lane.b32.xlu1 %v7633_v9, 360  ;;  %3022 = vbcast.lane.b32.xlu0 %v7633_v9, 352  ;;  %9661 = vst [vmem:[#allocation70_spill] sm:$0xff] %v7744_v40  ;;  %v4983_v38 = vunpack.c.l.bf16 %v7724_v32  ;;  %v3541_v50 = vmul.f32 %v4908_v22, %v9663_v23  ;;  %v4007_v28 = vadd.f32 %v4006_v33, %v3496_v10  ;;  %v9667_v47 = vld [vmem:[#allocation168_spill] sm:$0xff]  ;;  %v4984_v23 = vunpack.c.h.bf16 %v7724_v32  ;;  %v9669_v33 = vld [vmem:[#allocation117_spill] sm:$0xff]  ;;  %v9670_v10 = vld [vmem:[#allocation171_spill] sm:$0xff] }
 0x3e3   : > { %v4056_v1 = vadd.f32 %v4055_v44, %v3540_v43  ;;  %v3631_v34 = vmul.f32 %v5088_v51, %v9667_v47  ;;  %v3630_v22 = vmul.f32 %v5087_v46, %v9668_v63  ;;  %v7768_v43 = vld [vmem:[%s6633_s12 + $0x1c0] sm:$0xff]   ;;  %v7774_v62 = vsub.s32 7, %v6654_v2  ;;  %v7778_v63 = vld [vmem:[%s6633_s12 + $0x238] sm:$0xff]  }
 0x3e4   : > { %v7729_v61 = vpop.permute.xlu1 %2793  ;;  %v7731_v15 = vpop.permute.xlu0 %2789  ;;  %v3578_v4 = vmul.f32 %v4983_v38, %v9669_v33  ;;  %v4098_v51 = vadd.f32 %v4097_v60, %v3577_v52  ;;  %v5092_v46 = vunpack.c.h.bf16 %v7727_v26  ;;  %v3632_v47 = vmul.f32 %v5091_v57, %v9670_v10  ;;  %v9671_v32 = vld [vmem:[#allocation81_spill] sm:$0xff]  ;;  %v7795_v33 = vld [vmem:[%s6633_s12 + $0x1c8] sm:$0xff]  }
 0x3e5   : > { %9658 = vst [vmem:[#allocation41_spill] sm:$0xff] %v7729_v61  ;;  %9659 = vst [vmem:[#allocation106_spill] sm:$0xff] %v7731_v15  ;;  %v4912_v61 = vunpack.c.h.bf16 %v7718_v29  ;;  %v7783_v29 = vld [vmem:[%s6633_s12 + $0x310] sm:$0xff]   ;;  %v3542_v44 = vmul.f32 %v4911_v27, %v9671_v32  ;;  %v4008_v60 = vadd.f32 %v4007_v28, %v3497_v36  ;;  %v4157_v10 = vadd.f32 %v3631_v34, %v3630_v22  ;;  %v9675_v27 = vld [vmem:[#allocation51_spill] sm:$0xff] }
 0x3e6   : > { %3034 = vbcast.lane.b32.xlu1 %v7633_v9, 376  ;;  %3030 = vbcast.lane.b32.xlu0 %v7633_v9, 368  ;;  %v4057_v9 = vadd.f32 %v4056_v1, %v3541_v50  ;;  %9674 = vst [vmem:[#allocation108_spill] sm:$0xff] %v7795_v33  ;;  %v9676_v1 = vunpack.c.l.bf16 %v7702_v58  ;;  %v7801_v32 = vld [vmem:[%s6633_s12 + $0x1d0] sm:$0xff]   ;;  %v5095_v2 = vunpack.c.l.bf16 %v7783_v29  ;;  %v6112_v36 = vld [vmem:[%s6640_s21] sm:$0xff]  ;;  %v7812_v34 = vld [vmem:[%s6633_s12 + $0x1d8] sm:$0xff]  }
 0x3e7   : > { %9677 = vst [vmem:[#allocation72_spill] sm:$0xff] %v7801_v32  ;;  %v7809_v28 = vrot.slane %v6112_v36, %v7774_v62  ;;  %9678 = vst [vmem:[#allocation42_spill] sm:$0xff] %v7812_v34  ;;  %v9679_v22 = vld [vmem:[#allocation116_spill] sm:$0xff] }
 0x3e8   : > { %v7755_v15 = vpop.permute.xlu1 %2801  ;;  %v7757_v39 = vpop.permute.xlu0 %2797  ;;  %v3498_v50 = vmul.f32 %v9676_v1, %v9675_v27  ;;  %v3579_v57 = vmul.f32 %v4984_v23, %v9679_v22  ;;  %v4099_v27 = vadd.f32 %v4098_v51, %v3578_v4  ;;  %v9680_v1 = vld [vmem:[#allocation170_spill] sm:$0xff]  ;;  %v4058_v19 = vadd.f32 %v4057_v9, %v3542_v44 }
 0x3e9   : > { %9664 = vst [vmem:[#allocation40_spill] sm:$0xff] %v7755_v15  ;;  %9665 = vst [vmem:[#allocation109_spill] sm:$0xff] %v7757_v39  ;;  %v4987_v15 = vunpack.c.l.bf16 %v7778_v63  ;;  %v3633_v26 = vmul.f32 %v5092_v46, %v9680_v1  ;;  %v9685_v23 = vunpack.c.h.bf16 %v7702_v58  ;;  %v7829_v9 = vld [vmem:[%s6633_s12 + $0x1e0] sm:$0xff]   ;;  %v5096_v58 = vunpack.c.h.bf16 %v7783_v29 }
 0x3ea   : > { %3045 = vbcast.lane.b32.xlu1 %v7744_v40, 264  ;;  %3041 = vbcast.lane.b32.xlu0 %v7744_v40, 256  ;;  %v4009_v51 = vadd.f32 %v4008_v60, %v3498_v50  ;;  %9686 = vst [vmem:[#allocation45_spill] sm:$0xff] %v7829_v9  ;;  %v9689_v60 = vld [vmem:[#allocation119_spill] sm:$0xff]  ;;  %v4100_v22 = vadd.f32 %v4099_v27, %v3579_v57  ;;  %v7845_v1 = vld [vmem:[%s6633_s12 + $0x240] sm:$0xff]   ;;  %v9692_v29 = vunpack.c.l.bf16 %v7735_v25  ;;  %v9705_v9 = vunpack.c.h.bf16 %v7711_v30 }
 0x3eb   : > { %v3580_v50 = vmul.f32 %v4987_v15, %v9689_v60  ;;  %v7864_v60 = vld [vmem:[%s6633_s12 + $0x1f8] sm:$0xff]  }
 0x3ec   : > { %v7788_v38 = vpop.permute.xlu1 %2809  ;;  %v7790_v52 = vpop.permute.xlu0 %2805  ;;  %9695 = vst [vmem:[#allocation77_spill] sm:$0xff] %v7864_v60 }
 0x3ed   : > { %9672 = vst [vmem:[#allocation73_spill] sm:$0xff] %v7788_v38  ;;  %9673 = vst [vmem:[#allocation43_spill] sm:$0xff] %v7790_v52  ;;  %v4158_v38 = vadd.f32 %v4157_v10, %v3632_v47  ;;  %v9681_v52 = vld [vmem:[#allocation80_spill] sm:$0xff]  ;;  %v4988_v10 = vunpack.c.h.bf16 %v7778_v63  ;;  %v9691_v63 = vld [vmem:[#allocation83_spill] sm:$0xff] }
 0x3ee   : > { %3053 = vbcast.lane.b32.xlu1 %v7744_v40, 280  ;;  %3049 = vbcast.lane.b32.xlu0 %v7744_v40, 272  ;;  %v3543_v39 = vmul.f32 %v4912_v61, %v9681_v52  ;;  %v9684_v40 = vld [vmem:[#allocation50_spill] sm:$0xff]  ;;  %v7834_v52 = vld [vmem:[%s6633_s12 + $0x1e8] sm:$0xff]   ;;  %v7849_v61 = vld [vmem:[%s6633_s12 + $0x318] sm:$0xff]   ;;  %v3544_v46 = vmul.f32 %v9692_v29, %v9691_v63  ;;  %v4991_v29 = vunpack.c.l.bf16 %v7845_v1 }
 0x3ef   : > { %v3499_v4 = vmul.f32 %v9685_v23, %v9684_v40  ;;  %9687 = vst [vmem:[#allocation110_spill] sm:$0xff] %v7834_v52  ;;  %v7841_v40 = vld [vmem:[%s6633_s12 + $0x1f0] sm:$0xff]   ;;  %v9690_v23 = vld [vmem:[#allocation173_spill] sm:$0xff]  ;;  %v4159_v44 = vadd.f32 %v4158_v38, %v3633_v26  ;;  %v4101_v38 = vadd.f32 %v4100_v22, %v3580_v50  ;;  %v7876_v26 = vld [vmem:[%s6633_s12 + $0x248] sm:$0xff]  }
 0x3f0   : > { %v7819_v36 = vpop.permute.xlu1 %2817  ;;  %v7821_v7 = vpop.permute.xlu0 %2813  ;;  %9688 = vst [vmem:[#allocation74_spill] sm:$0xff] %v7841_v40  ;;  %v3634_v47 = vmul.f32 %v5095_v2, %v9690_v23  ;;  %v4059_v18 = vadd.f32 %v4058_v19, %v3543_v39  ;;  %v9696_v19 = vld [vmem:[#allocation53_spill] sm:$0xff]  ;;  %v9697_v39 = vunpack.c.l.bf16 %v7711_v30  ;;  %v7879_v2 = vld [vmem:[%s6633_s12 + $0x250] sm:$0xff]   ;;  %v9700_v63 = vld [vmem:[#allocation82_spill] sm:$0xff] }
 0x3f1   : > { %9682 = vst [vmem:[#allocation111_spill] sm:$0xff] %v7819_v36  ;;  %9683 = vst [vmem:[#allocation75_spill] sm:$0xff] %v7821_v7  ;;  %v4010_v27 = vadd.f32 %v4009_v51, %v3499_v4  ;;  %v5099_v36 = vunpack.c.l.bf16 %v7849_v61  ;;  %v9698_v4 = vld [vmem:[#allocation118_spill] sm:$0xff]  ;;  %v9704_v22 = vld [vmem:[#allocation52_spill] sm:$0xff] }
 0x3f2   : > { %3179 = vbcast.lane.b32.xlu1 %v7809_v28, 264  ;;  %3175 = vbcast.lane.b32.xlu0 %v7809_v28, 256  ;;  %v3500_v23 = vmul.f32 %v9697_v39, %v9696_v19  ;;  %v3581_v51 = vmul.f32 %v4988_v10, %v9698_v4  ;;  %v3635_v19 = vmul.f32 %v5096_v58, %v9699_v41  ;;  %v4995_v58 = vunpack.c.l.bf16 %v7876_v26  ;;  %v7910_v30 = vld [vmem:[%s6633_s12 + $0x268] sm:$0xff]  }
 0x3f3   : > { %v4160_v39 = vadd.f32 %v4159_v44, %v3634_v47  ;;  %v4060_v7 = vadd.f32 %v4059_v18, %v3544_v46  ;;  %v7894_v41 = vmul.f32 %v9705_v9, %v9704_v22  ;;  %v4992_v18 = vunpack.c.h.bf16 %v7845_v1  ;;  %v7901_v46 = vld [vmem:[%s6633_s12 + $0x258] sm:$0xff]   ;;  %v7917_v22 = vld [vmem:[%s6633_s12 + $0x270] sm:$0xff]  }
 0x3f4   : > { %v7856_v15 = vpop.permute.xlu1 %2825  ;;  %v7858_v57 = vpop.permute.xlu0 %2821  ;;  %v7896_v44 = vadd.f32 %v4010_v27, %v3500_v23  ;;  %v5100_v9 = vunpack.c.h.bf16 %v7849_v61  ;;  %v9708_v27 = vld [vmem:[#allocation121_spill] sm:$0xff]  ;;  %v4102_v23 = vadd.f32 %v4101_v38, %v3581_v51  ;;  %v9715_v51 = vld [vmem:[#allocation120_spill] sm:$0xff] }
 0x3f5   : > { %9693 = vst [vmem:[#allocation44_spill] sm:$0xff] %v7856_v15  ;;  %9694 = vst [vmem:[#allocation113_spill] sm:$0xff] %v7858_v57  ;;  %v9701_v15 = vunpack.c.h.bf16 %v7735_v25  ;;  %v3582_v1 = vmul.f32 %v4991_v29, %v9708_v27  ;;  %v9709_v25 = vld [vmem:[#allocation175_spill] sm:$0xff]  ;;  %v4161_v52 = vadd.f32 %v4160_v39, %v3635_v19  ;;  %v9710_v47 = vld [vmem:[#allocation85_spill] sm:$0xff]  ;;  %v3583_v19 = vmul.f32 %v4992_v18, %v9715_v51 }
 0x3f6   : > { %3187 = vbcast.lane.b32.xlu1 %v7809_v28, 280  ;;  %3183 = vbcast.lane.b32.xlu0 %v7809_v28, 272  ;;  %9706 = vst [vmem:[#allocation76_spill] sm:$0xff] %v7894_v41  ;;  %9707 = vst [vmem:[#allocation46_spill] sm:$0xff] %v7896_v44  ;;  %v3636_v10 = vmul.f32 %v5099_v36, %v9709_v25  ;;  %v9711_v44 = vunpack.c.l.bf16 %v7747_v31  ;;  %v7944_v29 = vld [vmem:[%s6633_s12 + $0x280] sm:$0xff]   ;;  %v9723_v51 = vld [vmem:[#allocation123_spill] sm:$0xff] }
 0x3f7   : > { %v3545_v57 = vmul.f32 %v9701_v15, %v9700_v63  ;;  %v7907_v63 = vld [vmem:[%s6633_s12 + $0x260] sm:$0xff]   ;;  %9714 = vst [vmem:[#allocation49_spill] sm:$0xff] %v7944_v29  ;;  %v4103_v39 = vadd.f32 %v4102_v23, %v3582_v1  ;;  %v7974_v23 = vld [vmem:[%s6633_s12 + $0x298] sm:$0xff]   ;;  %v7986_v1 = vld [vmem:[%s6633_s12 + $0x328] sm:$0xff]  }
 0x3f8   : > { %v7887_v4 = vpop.permute.xlu1 %2833  ;;  %v7889_v50 = vpop.permute.xlu0 %2829  ;;  %v7921_v15 = vld [vmem:[%s6633_s12 + $0x320] sm:$0xff]   ;;  %v3546_v61 = vmul.f32 %v9711_v44, %v9710_v47  ;;  %v7941_v47 = vld [vmem:[%s6633_s12 + $0x278] sm:$0xff]   ;;  %v4162_v25 = vadd.f32 %v4161_v52, %v3636_v10  ;;  %9722 = vst [vmem:[#allocation168_spill] sm:$0xff] %v7974_v23 }
 0x3f9   : > { %9702 = vst [vmem:[#allocation47_spill] sm:$0xff] %v7887_v4  ;;  %9703 = vst [vmem:[#allocation112_spill] sm:$0xff] %v7889_v50  ;;  %v4061_v41 = vadd.f32 %v4060_v7, %v3545_v57  ;;  %v5852_v44 = vld [vmem:[%s6633_s12 + $0x400] sm:$0xff]   ;;  %v5103_v36 = vunpack.c.l.bf16 %v7921_v15  ;;  %v7951_v4 = vld [vmem:[%s6633_s12 + $0x288] sm:$0xff]   ;;  %v9719_v50 = vunpack.c.h.bf16 %v7747_v31 }
 0x3fa   : > { %3195 = vbcast.lane.b32.xlu1 %v7809_v28, 296  ;;  %3191 = vbcast.lane.b32.xlu0 %v7809_v28, 288  ;;  %9716 = vst [vmem:[#allocation114_spill] sm:$0xff] %v7951_v4  ;;  %v9717_v7 = vld [vmem:[#allocation174_spill] sm:$0xff]  ;;  %v5216_v34 = vunpack.c.h.bf16 %v5852_v44  ;;  %v5215_v32 = vunpack.c.l.bf16 %v5852_v44  ;;  %v3584_v44 = vmul.f32 %v4995_v58, %v9723_v51  ;;  %v9724_v31 = vld [vmem:[#allocation177_spill] sm:$0xff] }
 0x3fb   : > { %v3637_v57 = vmul.f32 %v5100_v9, %v9717_v7  ;;  %v4062_v40 = vadd.f32 %v4061_v41, %v3546_v61  ;;  %v7971_v41 = vld [vmem:[%s6633_s12 + $0x290] sm:$0xff]   ;;  %v5104_v61 = vunpack.c.h.bf16 %v7921_v15  ;;  %v4104_v7 = vadd.f32 %v4103_v39, %v3583_v19  ;;  %v7982_v52 = vld [vmem:[%s6633_s12 + $0x2a0] sm:$0xff]   ;;  %v9725_v9 = vld [vmem:[#allocation87_spill] sm:$0xff] }
 0x3fc   : > { %v7928_v27 = vpop.permute.xlu1 %2844  ;;  %v7930_v38 = vpop.permute.xlu0 %2840  ;;  %v9726_v15 = vunpack.c.l.bf16 %v7761_v54  ;;  %v3695_v4 = vmul.f32 %v5216_v34, %v7245_v59  ;;  %v3694_v29 = vmul.f32 %v5215_v32, %v7247_v6  ;;  %v8006_v59 = vld [vmem:[%s6633_s12 + $0x2b0] sm:$0xff]   ;;  %v5107_v6 = vunpack.c.l.bf16 %v7986_v1 }
 0x3fd   : > { %9712 = vst [vmem:[#allocation115_spill] sm:$0xff] %v7928_v27  ;;  %9713 = vst [vmem:[#allocation79_spill] sm:$0xff] %v7930_v38  ;;  %v7955_v27 = vld [vmem:[%s6633_s12 + $0x408] sm:$0xff]   ;;  %v9718_v38 = vld [vmem:[#allocation84_spill] sm:$0xff]  ;;  %v4163_v10 = vadd.f32 %v4162_v25, %v3637_v57 }
 0x3fe   : > { %3203 = vbcast.lane.b32.xlu1 %v7809_v28, 312  ;;  %3199 = vbcast.lane.b32.xlu0 %v7809_v28, 304  ;;  %v3547_v60 = vmul.f32 %v9719_v50, %v9718_v38  ;;  %v5219_v38 = vunpack.c.l.bf16 %v7955_v27  ;;  %v3638_v50 = vmul.f32 %v5103_v36, %v9724_v31  ;;  %v5220_v32 = vunpack.c.h.bf16 %v7955_v27  ;;  %v5854_v39 = vld [vmem:[%s6633_s12 + $0x410] sm:$0xff]   ;;  %v9732_v36 = vld [vmem:[#allocation86_spill] sm:$0xff] }
 0x3ff   : > { %v9730_v31 = vunpack.c.h.bf16 %v7876_v26  ;;  %v9733_v27 = vunpack.c.h.bf16 %v7761_v54  ;;  %v8034_v54 = vld [vmem:[%s6633_s12 + $0x2c0] sm:$0xff]  }
 0x400   : > { %v7960_v33 = vpop.permute.xlu1 %2852  ;;  %v7962_v18 = vpop.permute.xlu0 %2848  ;;  %v3696_v34 = vmul.f32 %v5219_v38, %v7253_v13  ;;  %v4164_v25 = vadd.f32 %v4163_v10, %v3638_v50  ;;  %9737 = vst [vmem:[#allocation116_spill] sm:$0xff] %v8034_v54  ;;  %v9740_v50 = vld [vmem:[#allocation179_spill] sm:$0xff] }
 0x401   : > { %9720 = vst [vmem:[#allocation78_spill] sm:$0xff] %v7960_v33  ;;  %9721 = vst [vmem:[#allocation48_spill] sm:$0xff] %v7962_v18  ;;  %v3548_v33 = vmul.f32 %v9726_v15, %v9725_v9  ;;  %v4063_v18 = vadd.f32 %v4062_v40, %v3547_v60  ;;  %v8003_v40 = vld [vmem:[%s6633_s12 + $0x2a8] sm:$0xff]   ;;  %v9729_v60 = vld [vmem:[#allocation122_spill] sm:$0xff]  ;;  %v4105_v15 = vadd.f32 %v4104_v7, %v3584_v44 }
 0x402   : > { %3211 = vbcast.lane.b32.xlu1 %v7809_v28, 328  ;;  %3207 = vbcast.lane.b32.xlu0 %v7809_v28, 320  ;;  %v3585_v51 = vmul.f32 %v9730_v31, %v9729_v60  ;;  %v9731_v9 = vld [vmem:[#allocation176_spill] sm:$0xff]  ;;  %v3549_v13 = vmul.f32 %v9733_v27, %v9732_v36  ;;  %v8031_v7 = vld [vmem:[%s6633_s12 + $0x2b8] sm:$0xff]   ;;  %v5223_v36 = vunpack.c.l.bf16 %v5854_v39  ;;  %v9739_v31 = vunpack.c.l.bf16 %v7879_v2 }
 0x403   : > { %v3639_v57 = vmul.f32 %v5104_v61, %v9731_v9  ;;  %v4064_v38 = vadd.f32 %v4063_v18, %v3548_v33  ;;  %9736 = vst [vmem:[#allocation51_spill] sm:$0xff] %v8031_v7  ;;  %v5108_v33 = vunpack.c.h.bf16 %v7986_v1  ;;  %v8038_v18 = vld [vmem:[%s6633_s12 + $0x330] sm:$0xff]   ;;  %v5884_v9 = vld [vmem:[%s6633_s12 + $0x500] sm:$0xff]   ;;  %v9738_v60 = vld [vmem:[#allocation125_spill] sm:$0xff]  ;;  %v3640_v1 = vmul.f32 %v5107_v6, %v9740_v50 }
 0x404   : > { %v7993_v58 = vpop.permute.xlu1 %2860  ;;  %v7995_v19 = vpop.permute.xlu0 %2856  ;;  %v3586_v27 = vmul.f32 %v9739_v31, %v9738_v60  ;;  %v4106_v10 = vadd.f32 %v4105_v15, %v3585_v51  ;;  %v9741_v61 = vld [vmem:[#allocation89_spill] sm:$0xff]  ;;  %v5111_v51 = vunpack.c.l.bf16 %v8038_v18  ;;  %v8060_v6 = vld [vmem:[%s6633_s12 + $0x508] sm:$0xff]  }
 0x405   : > { %9727 = vst [vmem:[#allocation169_spill] sm:$0xff] %v7993_v58  ;;  %9728 = vst [vmem:[#allocation117_spill] sm:$0xff] %v7995_v19  ;;  %v4226_v19 = vadd.f32 %v3695_v4, %v3694_v29  ;;  %v3697_v4 = vmul.f32 %v5220_v32, %v7251_v16  ;;  %v4165_v44 = vadd.f32 %v4164_v25, %v3639_v57  ;;  %v9742_v16 = vunpack.c.l.bf16 %v7768_v43  ;;  %v8063_v15 = vld [vmem:[%s6633_s12 + $0x2c8] sm:$0xff]   ;;  %v9748_v58 = vld [vmem:[#allocation178_spill] sm:$0xff] }
 0x406   : > { %3219 = vbcast.lane.b32.xlu1 %v7809_v28, 344  ;;  %3215 = vbcast.lane.b32.xlu0 %v7809_v28, 336  ;;  %v4065_v32 = vadd.f32 %v4064_v38, %v3549_v13  ;;  %v5224_v57 = vunpack.c.h.bf16 %v5854_v39  ;;  %v5344_v25 = vunpack.c.h.bf16 %v5884_v9  ;;  %9745 = vst [vmem:[#allocation50_spill] sm:$0xff] %v8063_v15  ;;  %v3698_v13 = vmul.f32 %v5223_v36, %v7261_v17  ;;  %v6113_v50 = vld [vmem:[%s6640_s21 + $0x8] sm:$0xff]  ;;  %v9749_v36 = vld [vmem:[#allocation88_spill] sm:$0xff] }
 0x407   : > { %v4227_v29 = vadd.f32 %v4226_v19, %v3696_v34  ;;  %v3550_v19 = vmul.f32 %v9742_v16, %v9741_v61  ;;  %v5343_v61 = vunpack.c.l.bf16 %v5884_v9  ;;  %v8070_v31 = vrot.slane %v6113_v50, %v7774_v62  ;;  %v9746_v16 = vld [vmem:[#allocation124_spill] sm:$0xff] }
 0x408   : > { %v8022_v23 = vpop.permute.xlu1 %2868  ;;  %v8024_v26 = vpop.permute.xlu0 %2864  ;;  %v9747_v39 = vunpack.c.h.bf16 %v7879_v2  ;;  %v4107_v34 = vadd.f32 %v4106_v10, %v3586_v27  ;;  %v3641_v17 = vmul.f32 %v5108_v33, %v9748_v58  ;;  %v9750_v9 = vunpack.c.h.bf16 %v7768_v43  ;;  %v8094_v33 = vld [vmem:[%s6633_s12 + $0x338] sm:$0xff]   ;;  %v8098_v27 = vld [vmem:[%s6633_s12 + $0x340] sm:$0xff]  }
 0x409   : > { %9734 = vst [vmem:[#allocation171_spill] sm:$0xff] %v8022_v23  ;;  %9735 = vst [vmem:[#allocation81_spill] sm:$0xff] %v8024_v26  ;;  %v4228_v38 = vadd.f32 %v4227_v29, %v3697_v4  ;;  %v4166_v4 = vadd.f32 %v4165_v44, %v3640_v1  ;;  %v5855_v29 = vld [vmem:[%s6633_s12 + $0x418] sm:$0xff]   ;;  %v5112_v44 = vunpack.c.h.bf16 %v8038_v18  ;;  %v3699_v43 = vmul.f32 %v5224_v57, %v7259_v12  ;;  %v8101_v1 = vld [vmem:[%s6633_s12 + $0x348] sm:$0xff]  }
 0x40a   : > { %3227 = vbcast.lane.b32.xlu1 %v7809_v28, 360  ;;  %3223 = vbcast.lane.b32.xlu0 %v7809_v28, 352  ;;  %v3587_v60 = vmul.f32 %v9747_v39, %v9746_v16  ;;  %v3759_v39 = vmul.f32 %v5344_v25, %v7521_v24  ;;  %v9753_v18 = vld [vmem:[#allocation127_spill] sm:$0xff]  ;;  %v9755_v10 = vld [vmem:[#allocation181_spill] sm:$0xff]  ;;  %v5115_v24 = vunpack.c.l.bf16 %v8094_v33 }
 0x40b   : > { %v3642_v58 = vmul.f32 %v5111_v51, %v9755_v10 }
 0x40c   : > { %v8053_v23 = vpop.permute.xlu1 %2876  ;;  %v8055_v26 = vpop.permute.xlu0 %2872  ;;  %v4108_v57 = vadd.f32 %v4107_v34, %v3587_v60  ;;  %v9758_v60 = vld [vmem:[#allocation126_spill] sm:$0xff]  ;;  %v9759_v34 = vunpack.c.h.bf16 %v7901_v46 }
 0x40d   : > { %9743 = vst [vmem:[#allocation170_spill] sm:$0xff] %v8053_v23  ;;  %9744 = vst [vmem:[#allocation80_spill] sm:$0xff] %v8055_v26  ;;  %v8082_v23 = vadd.f32 %v4065_v32, %v3550_v19  ;;  %v5347_v26 = vunpack.c.l.bf16 %v8060_v6  ;;  %v4229_v19 = vadd.f32 %v4228_v38, %v3698_v13  ;;  %v5227_v32 = vunpack.c.l.bf16 %v5855_v29 }
 0x40e   : > { %3235 = vbcast.lane.b32.xlu1 %v7809_v28, 376  ;;  %3231 = vbcast.lane.b32.xlu0 %v7809_v28, 368  ;;  %v8080_v28 = vmul.f32 %v9750_v9, %v9749_v36  ;;  %v3758_v36 = vmul.f32 %v5343_v61, %v7523_v8  ;;  %v9754_v9 = vunpack.c.l.bf16 %v7901_v46  ;;  %v4167_v13 = vadd.f32 %v4166_v4, %v3641_v17  ;;  %v8124_v17 = vld [vmem:[%s6633_s12 + $0x350] sm:$0xff]  }
 0x40f   : > { %v5348_v8 = vunpack.c.h.bf16 %v8060_v6  ;;  %v3760_v25 = vmul.f32 %v5347_v26, %v7533_v42  ;;  %v5886_v4 = vld [vmem:[%s6633_s12 + $0x510] sm:$0xff]   ;;  %v8128_v6 = vld [vmem:[%s6633_s12 + $0x358] sm:$0xff]   ;;  %v5228_v42 = vunpack.c.h.bf16 %v5855_v29  ;;  %v3700_v26 = vmul.f32 %v5227_v32, %v7272_v3 }
 0x410   : > { %v8086_v2 = vpop.permute.xlu1 %2884  ;;  %v8088_v16 = vpop.permute.xlu0 %2880  ;;  %v3588_v12 = vmul.f32 %v9754_v9, %v9753_v18  ;;  %v4230_v10 = vadd.f32 %v4229_v19, %v3699_v43  ;;  %v4295_v9 = vadd.f32 %v3759_v39, %v3758_v36  ;;  %v5916_v18 = vld [vmem:[%s6633_s12 + $0x600] sm:$0xff]   ;;  %v3589_v51 = vmul.f32 %v9759_v34, %v9758_v60  ;;  %v9764_v34 = vld [vmem:[#allocation129_spill] sm:$0xff]  ;;  %v9766_v36 = vld [vmem:[#allocation183_spill] sm:$0xff] }
 0x411   : > { %9751 = vst [vmem:[#allocation119_spill] sm:$0xff] %v8086_v2  ;;  %9752 = vst [vmem:[#allocation173_spill] sm:$0xff] %v8088_v16  ;;  %v4168_v2 = vadd.f32 %v4167_v13, %v3642_v58  ;;  %v5856_v16 = vld [vmem:[%s6633_s12 + $0x420] sm:$0xff]   ;;  %v3761_v3 = vmul.f32 %v5348_v8, %v7531_v11  ;;  %v5351_v19 = vunpack.c.l.bf16 %v5886_v4  ;;  %v5471_v58 = vunpack.c.l.bf16 %v5916_v18  ;;  %v9763_v13 = vld [vmem:[#allocation232_spill] sm:$0xff] }
 0x412   : > { %3246 = vbcast.lane.b32.xlu1 %v8070_v31, 264  ;;  %3242 = vbcast.lane.b32.xlu0 %v8070_v31, 256  ;;  %v4109_v38 = vadd.f32 %v4108_v57, %v3588_v12  ;;  %v4296_v43 = vadd.f32 %v4295_v9, %v3760_v25  ;;  %v8148_v12 = vld [vmem:[%s6633_s12 + $0x360] sm:$0xff]   ;;  %v4231_v11 = vadd.f32 %v4230_v10, %v3700_v26  ;;  %v5231_v8 = vunpack.c.l.bf16 %v5856_v16  ;;  %v5917_v25 = vld [vmem:[%s6633_s12 + $0x608] sm:$0xff]  }
 0x413   : > { %v9765_v60 = vunpack.c.l.bf16 %v7907_v63  ;;  %v5135_v57 = vunpack.c.l.bf16 %v8148_v12  ;;  %v3762_v26 = vmul.f32 %v5351_v19, %v7544_v35  ;;  %v5476_v7 = vunpack.c.h.bf16 %v5917_v25  ;;  %v9767_v35 = vld [vmem:[#allocation128_spill] sm:$0xff]  ;;  %v9769_v19 = vld [vmem:[#allocation182_spill] sm:$0xff] }
 0x414   : > { %v8115_v61 = vpop.permute.xlu1 %2892  ;;  %v8117_v50 = vpop.permute.xlu0 %2888  ;;  %v4110_v46 = vadd.f32 %v4109_v38, %v3589_v51  ;;  %v4297_v10 = vadd.f32 %v4296_v43, %v3761_v3  ;;  %v5918_v38 = vld [vmem:[%s6633_s12 + $0x610] sm:$0xff]  }
 0x415   : > { %9756 = vst [vmem:[#allocation83_spill] sm:$0xff] %v8115_v61  ;;  %9757 = vst [vmem:[#allocation53_spill] sm:$0xff] %v8117_v50  ;;  %v9760_v61 = vld [vmem:[#allocation180_spill] sm:$0xff]  ;;  %v3590_v9 = vmul.f32 %v9765_v60, %v9764_v34  ;;  %v5475_v34 = vunpack.c.l.bf16 %v5917_v25  ;;  %v5479_v60 = vunpack.c.l.bf16 %v5918_v38 }
 0x416   : > { %3254 = vbcast.lane.b32.xlu1 %v8070_v31, 280  ;;  %3250 = vbcast.lane.b32.xlu0 %v8070_v31, 272  ;;  %v3643_v50 = vmul.f32 %v5112_v44, %v9760_v61  ;;  %v5472_v44 = vunpack.c.h.bf16 %v5916_v18  ;;  %v3701_v61 = vmul.f32 %v5228_v42, %v9763_v13  ;;  %v3644_v18 = vmul.f32 %v5115_v24, %v9766_v36 }
 0x417   : > { %v5352_v42 = vunpack.c.h.bf16 %v5886_v4  ;;  %v5136_v24 = vunpack.c.h.bf16 %v8148_v12  ;;  %v9768_v4 = vunpack.c.h.bf16 %v7907_v63  ;;  %v4111_v43 = vadd.f32 %v4110_v46, %v3590_v9  ;;  %v5919_v9 = vld [vmem:[%s6633_s12 + $0x618] sm:$0xff]   ;;  %v5929_v12 = vld [vmem:[%s6633_s12 + $0x668] sm:$0xff]  }
 0x418   : > { %v8141_v32 = vpop.permute.xlu1 %2900  ;;  %v8143_v39 = vpop.permute.xlu0 %2896  ;;  %v4169_v29 = vadd.f32 %v4168_v2, %v3643_v50  ;;  %v5232_v50 = vunpack.c.h.bf16 %v5856_v16  ;;  %v3702_v2 = vmul.f32 %v5231_v8, %v7277_v20  ;;  %v4232_v51 = vadd.f32 %v4231_v11, %v3701_v61  ;;  %v5857_v16 = vld [vmem:[%s6633_s12 + $0x428] sm:$0xff]  }
 0x419   : > { %9761 = vst [vmem:[#allocation118_spill] sm:$0xff] %v8141_v32  ;;  %9762 = vst [vmem:[#allocation172_spill] sm:$0xff] %v8143_v39  ;;  %v8162_v39 = vld [vmem:[%s6633_s12 + $0x518] sm:$0xff]   ;;  %v3591_v3 = vmul.f32 %v9768_v4, %v9767_v35  ;;  %v3763_v20 = vmul.f32 %v5352_v42, %v7542_v5  ;;  %v4298_v61 = vadd.f32 %v4297_v10, %v3762_v26  ;;  %v5480_v46 = vunpack.c.h.bf16 %v5918_v38 }
 0x41a   : > { %3262 = vbcast.lane.b32.xlu1 %v8070_v31, 296  ;;  %3258 = vbcast.lane.b32.xlu0 %v8070_v31, 288  ;;  %v5355_v11 = vunpack.c.l.bf16 %v8162_v39  ;;  %v5235_v4 = vunpack.c.l.bf16 %v5857_v16  ;;  %v9771_v5 = vld [vmem:[#allocation185_spill] sm:$0xff]  ;;  %v9772_v42 = vunpack.c.l.bf16 %v8098_v27  ;;  %v5356_v10 = vunpack.c.h.bf16 %v8162_v39  ;;  %v9775_v39 = vld [vmem:[#allocation234_spill] sm:$0xff] }
 0x41c   : > { %v2912_v13 = vpop.permute.xlu1 %2911  ;;  %v2908_v32 = vpop.permute.xlu0 %2907 }
 0x41d   : > { %v3823_v15 = vmul.f32 %v5472_v44, %v2912_v13  ;;  %v3822_v54 = vmul.f32 %v5471_v58, %v2908_v32  ;;  %v9770_v32 = vunpack.c.h.bf16 %v8094_v33  ;;  %v4170_v44 = vadd.f32 %v4169_v29, %v3644_v18  ;;  %v8176_v58 = vld [vmem:[%s6633_s12 + $0x368] sm:$0xff]  }
 0x41e   : > { %3270 = vbcast.lane.b32.xlu1 %v8070_v31, 312  ;;  %3266 = vbcast.lane.b32.xlu0 %v8070_v31, 304  ;;  %v5139_v33 = vunpack.c.l.bf16 %v8176_v58  ;;  %v3703_v29 = vmul.f32 %v5232_v50, %v7275_v49  ;;  %v4233_v18 = vadd.f32 %v4232_v51, %v3702_v2  ;;  %v4299_v49 = vadd.f32 %v4298_v61, %v3763_v20  ;;  %v8193_v51 = vld [vmem:[%s6633_s12 + $0x520] sm:$0xff]   ;;  %v9776_v61 = vld [vmem:[#allocation184_spill] sm:$0xff] }
 0x41f   : > { %v3645_v36 = vmul.f32 %v9770_v32, %v9769_v19  ;;  %v4364_v63 = vadd.f32 %v3823_v15, %v3822_v54  ;;  %v3646_v54 = vmul.f32 %v9772_v42, %v9771_v5  ;;  %v5140_v15 = vunpack.c.h.bf16 %v8176_v58  ;;  %v5920_v5 = vld [vmem:[%s6633_s12 + $0x620] sm:$0xff]   ;;  %v5931_v58 = vld [vmem:[%s6633_s12 + $0x678] sm:$0xff]  }
 0x420   : > { %v2920_v8 = vpop.permute.xlu1 %2919  ;;  %v2916_v25 = vpop.permute.xlu0 %2915  ;;  %v5483_v2 = vunpack.c.l.bf16 %v5919_v9  ;;  %v3704_v42 = vmul.f32 %v5235_v4, %v9775_v39  ;;  %v4112_v20 = vadd.f32 %v4111_v43, %v3591_v3  ;;  %v5488_v3 = vunpack.c.h.bf16 %v5920_v5  ;;  %v5921_v43 = vld [vmem:[%s6633_s12 + $0x628] sm:$0xff]   ;;  %v9778_v39 = vld [vmem:[#allocation130_spill] sm:$0xff] }
 0x421   : > { %v3825_v13 = vmul.f32 %v5476_v7, %v2920_v8  ;;  %v3824_v35 = vmul.f32 %v5475_v34, %v2916_v25  ;;  %v4171_v7 = vadd.f32 %v4170_v44, %v3645_v36  ;;  %v3764_v34 = vmul.f32 %v5355_v11, %v7558_v45  ;;  %v9773_v36 = vld [vmem:[#allocation131_spill] sm:$0xff] }
 0x422   : > { %3278 = vbcast.lane.b32.xlu1 %v8070_v31, 328  ;;  %3274 = vbcast.lane.b32.xlu0 %v8070_v31, 320  ;;  %v5484_v25 = vunpack.c.h.bf16 %v5919_v9  ;;  %v9774_v44 = vunpack.c.l.bf16 %v7910_v30  ;;  %v4234_v45 = vadd.f32 %v4233_v18, %v3703_v29  ;;  %v9777_v11 = vunpack.c.h.bf16 %v8098_v27 }
 0x423   : > { %v4365_v26 = vadd.f32 %v4364_v63, %v3824_v35  ;;  %v5236_v35 = vunpack.c.h.bf16 %v5857_v16  ;;  %v5359_v16 = vunpack.c.l.bf16 %v8193_v51  ;;  %v5487_v18 = vunpack.c.l.bf16 %v5920_v5 }
 0x424   : > { %v2928_v38 = vpop.permute.xlu1 %2927  ;;  %v2924_v50 = vpop.permute.xlu0 %2923  ;;  %v3592_v63 = vmul.f32 %v9774_v44, %v9773_v36  ;;  %v9779_v27 = vunpack.c.h.bf16 %v7910_v30  ;;  %v8221_v30 = vld [vmem:[%s6633_s12 + $0x370] sm:$0xff]   ;;  %v5360_v5 = vunpack.c.h.bf16 %v8193_v51 }
 0x425   : > { %v4366_v19 = vadd.f32 %v4365_v26, %v3825_v13  ;;  %v3827_v32 = vmul.f32 %v5480_v46, %v2928_v38  ;;  %v3826_v8 = vmul.f32 %v5479_v60, %v2924_v50  ;;  %v3647_v60 = vmul.f32 %v9777_v11, %v9776_v61  ;;  %v5858_v46 = vld [vmem:[%s6633_s12 + $0x430] sm:$0xff]  }
 0x426   : > { %3286 = vbcast.lane.b32.xlu1 %v8070_v31, 344  ;;  %3282 = vbcast.lane.b32.xlu0 %v8070_v31, 336  ;;  %v4172_v13 = vadd.f32 %v4171_v7, %v3646_v54  ;;  %v3765_v26 = vmul.f32 %v5356_v10, %v7556_v37  ;;  %v4300_v38 = vadd.f32 %v4299_v49, %v3764_v34  ;;  %v9780_v7 = vld [vmem:[#allocation233_spill] sm:$0xff]  ;;  %v5239_v10 = vunpack.c.l.bf16 %v5858_v46  ;;  %v9781_v49 = vld [vmem:[#allocation187_spill] sm:$0xff] }
 0x427   : > { %v4367_v9 = vadd.f32 %v4366_v19, %v3826_v8  ;;  %v8212_v54 = vmul.f32 %v9779_v27, %v9778_v39  ;;  %v3705_v19 = vmul.f32 %v5236_v35, %v9780_v7  ;;  %v4235_v37 = vadd.f32 %v4234_v45, %v3704_v42 }
 0x428   : > { %v2936_v4 = vpop.permute.xlu1 %2935  ;;  %v2932_v29 = vpop.permute.xlu0 %2931  ;;  %v4113_v34 = vadd.f32 %v4112_v20, %v3592_v63  ;;  %v4173_v8 = vadd.f32 %v4172_v13, %v3647_v60  ;;  %v3766_v35 = vmul.f32 %v5359_v16, %v7566_v53  ;;  %v4301_v42 = vadd.f32 %v4300_v38, %v3765_v26  ;;  %v5922_v60 = vld [vmem:[%s6633_s12 + $0x630] sm:$0xff]   ;;  %v9783_v26 = vld [vmem:[#allocation186_spill] sm:$0xff] }
 0x429   : > { %v4368_v50 = vadd.f32 %v4367_v9, %v3827_v32  ;;  %v3829_v36 = vmul.f32 %v5484_v25, %v2936_v4  ;;  %v3828_v44 = vmul.f32 %v5483_v2, %v2932_v29  ;;  %v9782_v2 = vunpack.c.l.bf16 %v8101_v1  ;;  %v8226_v9 = vld [vmem:[%s6633_s12 + $0x528] sm:$0xff]   ;;  %v6114_v53 = vld [vmem:[%s6640_s21 + $0x10] sm:$0xff] }
 0x42a   : > { %3294 = vbcast.lane.b32.xlu1 %v8070_v31, 360  ;;  %3290 = vbcast.lane.b32.xlu0 %v8070_v31, 352  ;;  %v5491_v11 = vunpack.c.l.bf16 %v5921_v43  ;;  %v5492_v29 = vunpack.c.h.bf16 %v5921_v43  ;;  %v5240_v13 = vunpack.c.h.bf16 %v5858_v46  ;;  %v8234_v51 = vrot.slane %v6114_v53, %v7774_v62  ;;  %v5859_v46 = vld [vmem:[%s6633_s12 + $0x438] sm:$0xff]  }
 0x42b   : > { %v3648_v32 = vmul.f32 %v9782_v2, %v9781_v49  ;;  %v4369_v25 = vadd.f32 %v4368_v50, %v3828_v44  ;;  %v3706_v50 = vmul.f32 %v5239_v10, %v7288_v56  ;;  %v4236_v44 = vadd.f32 %v4235_v37, %v3705_v19 }
 0x42c   : > { %v2944_v45 = vpop.permute.xlu1 %2943  ;;  %v2940_v61 = vpop.permute.xlu0 %2939  ;;  %v9784_v38 = vunpack.c.h.bf16 %v8101_v1  ;;  %v3767_v56 = vmul.f32 %v5360_v5, %v7564_v55  ;;  %v4302_v43 = vadd.f32 %v4301_v42, %v3766_v35  ;;  %v5363_v39 = vunpack.c.l.bf16 %v8226_v9  ;;  %v5923_v1 = vld [vmem:[%s6633_s12 + $0x638] sm:$0xff]  }
 0x42d   : > { %v4370_v63 = vadd.f32 %v4369_v25, %v3829_v36  ;;  %v3831_v20 = vmul.f32 %v5488_v3, %v2944_v45  ;;  %v3830_v4 = vmul.f32 %v5487_v18, %v2940_v61  ;;  %v4174_v18 = vadd.f32 %v4173_v8, %v3648_v32  ;;  %v9785_v55 = vld [vmem:[#allocation133_spill] sm:$0xff] }
 0x42e   : > { %3302 = vbcast.lane.b32.xlu1 %v8070_v31, 376  ;;  %3298 = vbcast.lane.b32.xlu0 %v8070_v31, 368  ;;  %v3649_v16 = vmul.f32 %v9784_v38, %v9783_v26  ;;  %v5143_v36 = vunpack.c.l.bf16 %v8221_v30  ;;  %v5495_v7 = vunpack.c.l.bf16 %v5922_v60  ;;  %v5496_v49 = vunpack.c.h.bf16 %v5922_v60  ;;  %v9787_v42 = vld [vmem:[#allocation189_spill] sm:$0xff] }
 0x42f   : > { %v4371_v3 = vadd.f32 %v4370_v63, %v3830_v4  ;;  %v5144_v2 = vunpack.c.h.bf16 %v8221_v30  ;;  %v3707_v32 = vmul.f32 %v5240_v13, %v7286_v14  ;;  %v4237_v8 = vadd.f32 %v4236_v44, %v3706_v50  ;;  %v8257_v50 = vld [vmem:[%s6633_s12 + $0x530] sm:$0xff]   ;;  %v9832_v30 = vld [vmem:[#allocation242_spill] sm:$0xff] }
 0x430   : > { %v2952_v31 = vpop.permute.xlu1 %2951  ;;  %v2948_v27 = vpop.permute.xlu0 %2947  ;;  %v5243_v25 = vunpack.c.l.bf16 %v5859_v46  ;;  %v9786_v5 = vunpack.c.l.bf16 %v7917_v22  ;;  %v9788_v45 = vunpack.c.l.bf16 %v8124_v17  ;;  %v3768_v14 = vmul.f32 %v5363_v39, %v7576_v0  ;;  %v9789_v0 = vld [vmem:[#allocation132_spill] sm:$0xff] }
 0x431   : > { %v4372_v19 = vadd.f32 %v4371_v3, %v3831_v20  ;;  %v3833_v37 = vmul.f32 %v5492_v29, %v2952_v31  ;;  %v3832_v10 = vmul.f32 %v5491_v11, %v2948_v27  ;;  %v4175_v11 = vadd.f32 %v4174_v18, %v3649_v16  ;;  %v5924_v3 = vld [vmem:[%s6633_s12 + $0x640] sm:$0xff]   ;;  %v9791_v39 = vld [vmem:[#allocation188_spill] sm:$0xff] }
 0x432   : > { %3313 = vbcast.lane.b32.xlu1 %v8234_v51, 264  ;;  %3309 = vbcast.lane.b32.xlu0 %v8234_v51, 256  ;;  %v3594_v35 = vmul.f32 %v9786_v5, %v9785_v55  ;;  %v3650_v61 = vmul.f32 %v9788_v45, %v9787_v42  ;;  %v5364_v20 = vunpack.c.h.bf16 %v8226_v9  ;;  %v4303_v4 = vadd.f32 %v4302_v43, %v3767_v56  ;;  %v9793_v42 = vld [vmem:[#allocation235_spill] sm:$0xff] }
 0x433   : > { %v4373_v63 = vadd.f32 %v4372_v19, %v3832_v10  ;;  %v5499_v13 = vunpack.c.l.bf16 %v5923_v1  ;;  %v5500_v38 = vunpack.c.h.bf16 %v5923_v1  ;;  %v4114_v16 = vadd.f32 %v4113_v34, %v8212_v54  ;;  %v8272_v34 = vld [vmem:[%s6633_s12 + $0x378] sm:$0xff]  }
 0x434   : > { %v2960_v29 = vpop.permute.xlu1 %2959  ;;  %v2956_v60 = vpop.permute.xlu0 %2955  ;;  %v5244_v18 = vunpack.c.h.bf16 %v5859_v46  ;;  %v3708_v9 = vmul.f32 %v5243_v25, %v7294_v21  ;;  %v4238_v31 = vadd.f32 %v4237_v8, %v3707_v32  ;;  %v9790_v56 = vunpack.c.h.bf16 %v7917_v22 }
 0x435   : > { %v4374_v44 = vadd.f32 %v4373_v63, %v3833_v37  ;;  %v3835_v53 = vmul.f32 %v5496_v49, %v2960_v29  ;;  %v3834_v26 = vmul.f32 %v5495_v7, %v2956_v60  ;;  %v9792_v27 = vunpack.c.h.bf16 %v8124_v17  ;;  %v5860_v37 = vld [vmem:[%s6633_s12 + $0x440] sm:$0xff]   ;;  %v5925_v17 = vld [vmem:[%s6633_s12 + $0x648] sm:$0xff]  }
 0x436   : > { %3321 = vbcast.lane.b32.xlu1 %v8234_v51, 280  ;;  %3317 = vbcast.lane.b32.xlu0 %v8234_v51, 272  ;;  %v3595_v43 = vmul.f32 %v9790_v56, %v9789_v0  ;;  %v4176_v19 = vadd.f32 %v4175_v11, %v3650_v61  ;;  %v3769_v21 = vmul.f32 %v5364_v20, %v7574_v48  ;;  %v5367_v10 = vunpack.c.l.bf16 %v8257_v50  ;;  %v9794_v48 = vld [vmem:[#allocation70_spill] sm:$0xff]  ;;  %v9795_v63 = vld [vmem:[#allocation191_spill] sm:$0xff]  ;;  %v5926_v56 = vld [vmem:[%s6633_s12 + $0x650] sm:$0xff]  }
 0x437   : > { %v3651_v7 = vmul.f32 %v9792_v27, %v9791_v39  ;;  %v4375_v54 = vadd.f32 %v4374_v44, %v3834_v26  ;;  %v4304_v46 = vadd.f32 %v4303_v4, %v3768_v14  ;;  %v5503_v32 = vunpack.c.l.bf16 %v5924_v3 }
 0x438   : > { %v2968_v49 = vpop.permute.xlu1 %2967  ;;  %v2964_v1 = vpop.permute.xlu0 %2963  ;;  %v5504_v55 = vunpack.c.h.bf16 %v5924_v3  ;;  %v4115_v5 = vadd.f32 %v4114_v16, %v3594_v35  ;;  %v3709_v45 = vmul.f32 %v5244_v18, %v9793_v42  ;;  %v4239_v61 = vadd.f32 %v4238_v31, %v3708_v9  ;;  %v8287_v16 = vld [vmem:[%s6633_s12 + $0x538] sm:$0xff]  }
 0x439   : > { %v4376_v22 = vadd.f32 %v4375_v54, %v3835_v53  ;;  %v3837_v8 = vmul.f32 %v5500_v38, %v2968_v49  ;;  %v3836_v25 = vmul.f32 %v5499_v13, %v2964_v1  ;;  %v5247_v11 = vunpack.c.l.bf16 %v5860_v37  ;;  %v9797_v13 = vld [vmem:[#allocation31_spill] sm:$0xff] }
 0x43a   : > { %3325 = vbcast.lane.b32.xlu1 %v8234_v51, 288  ;;  %3057 = vbcast.lane.b32.xlu0 %v9794_v48, 288  ;;  %v9796_v20 = vunpack.c.l.bf16 %v8128_v6  ;;  %v4177_v4 = vadd.f32 %v4176_v19, %v3651_v7  ;;  %v5147_v29 = vunpack.c.l.bf16 %v8272_v34  ;;  %v5368_v35 = vunpack.c.h.bf16 %v8257_v50  ;;  %v9798_v7 = vld [vmem:[#allocation237_spill] sm:$0xff]  ;;  %v9799_v54 = vld [vmem:[#allocation135_spill] sm:$0xff] }
 0x43b   : > { %v4377_v60 = vadd.f32 %v4376_v22, %v3836_v25  ;;  %v3770_v44 = vmul.f32 %v5367_v10, %v9797_v13  ;;  %v4305_v53 = vadd.f32 %v4304_v46, %v3769_v21  ;;  %v5507_v3 = vunpack.c.l.bf16 %v5925_v17  ;;  %v9801_v10 = vld [vmem:[#allocation190_spill] sm:$0xff]  ;;  %v5861_v22 = vld [vmem:[%s6633_s12 + $0x448] sm:$0xff]   ;;  %v5927_v13 = vld [vmem:[%s6633_s12 + $0x658] sm:$0xff]  }
 0x43c   : > { %v3652_v14 = vmul.f32 %v9796_v20, %v9795_v63  ;;  %v2979_v26 = vpop.permute.xlu1 %2978  ;;  %v2975_v38 = vpop.permute.xlu0 %2974  ;;  %v5508_v0 = vunpack.c.h.bf16 %v5925_v17  ;;  %v5148_v39 = vunpack.c.h.bf16 %v8272_v34  ;;  %v5248_v27 = vunpack.c.h.bf16 %v5860_v37  ;;  %v9803_v37 = vld [vmem:[#allocation61_spill] sm:$0xff] }
 0x43d   : > { %v4378_v18 = vadd.f32 %v4377_v60, %v3837_v8  ;;  %v3839_v9 = vmul.f32 %v5504_v55, %v2979_v26  ;;  %v3838_v31 = vmul.f32 %v5503_v32, %v2975_v38  ;;  %v3710_v19 = vmul.f32 %v5247_v11, %v9798_v7 }
 0x43e   : > { %v4240_v50 = vadd.f32 %v4239_v61, %v3709_v45  ;;  %3329 = vbcast.lane.b32.xlu1 %v8234_v51, 296  ;;  %3061 = vbcast.lane.b32.xlu0 %v9794_v48, 296  ;;  %v9800_v21 = vunpack.c.l.bf16 %v7941_v47  ;;  %v9802_v49 = vunpack.c.h.bf16 %v8128_v6  ;;  %v4178_v32 = vadd.f32 %v4177_v4, %v3652_v14  ;;  %v9804_v6 = vld [vmem:[#allocation236_spill] sm:$0xff] }
 0x43f   : > { %v4379_v8 = vadd.f32 %v4378_v18, %v3838_v31  ;;  %v3771_v25 = vmul.f32 %v5368_v35, %v9803_v37  ;;  %v4306_v55 = vadd.f32 %v4305_v53, %v3770_v44  ;;  %v5371_v17 = vunpack.c.l.bf16 %v8287_v16  ;;  %v9805_v35 = vld [vmem:[#allocation134_spill] sm:$0xff]  ;;  %v9807_v18 = vld [vmem:[#allocation193_spill] sm:$0xff] }
 0x440   : > { %v3596_v46 = vmul.f32 %v9800_v21, %v9799_v54  ;;  %v3653_v1 = vmul.f32 %v9802_v49, %v9801_v10  ;;  %v2987_v42 = vpop.permute.xlu1 %2986  ;;  %v2983_v45 = vpop.permute.xlu0 %2982  ;;  %v5511_v61 = vunpack.c.l.bf16 %v5926_v56  ;;  %v5512_v60 = vunpack.c.h.bf16 %v5926_v56 }
 0x441   : > { %v4380_v11 = vadd.f32 %v4379_v8, %v3839_v9  ;;  %v3841_v63 = vmul.f32 %v5508_v0, %v2987_v42  ;;  %v3840_v20 = vmul.f32 %v5507_v3, %v2983_v45  ;;  %v4116_v26 = vadd.f32 %v4115_v5, %v3595_v43  ;;  %v8314_v5 = vld [vmem:[%s6633_s12 + $0x380] sm:$0xff]   ;;  %v9809_v8 = vld [vmem:[#allocation239_spill] sm:$0xff]  ;;  %v5862_v45 = vld [vmem:[%s6633_s12 + $0x450] sm:$0xff]  }
 0x442   : > { %v3711_v38 = vmul.f32 %v5248_v27, %v9804_v6  ;;  %v4241_v14 = vadd.f32 %v4240_v50, %v3710_v19  ;;  %v5251_v4 = vunpack.c.l.bf16 %v5861_v22  ;;  %3333 = vbcast.lane.b32.xlu1 %v8234_v51, 304  ;;  %3065 = vbcast.lane.b32.xlu0 %v9794_v48, 304  ;;  %v9806_v44 = vunpack.c.h.bf16 %v7941_v47  ;;  %v9808_v0 = vld [vmem:[#allocation30_spill] sm:$0xff] }
 0x443   : > { %v3654_v3 = vmul.f32 %v5135_v57, %v9807_v18  ;;  %v4179_v9 = vadd.f32 %v4178_v32, %v3653_v1  ;;  %v4381_v43 = vadd.f32 %v4380_v11, %v3840_v20  ;;  %v5372_v31 = vunpack.c.h.bf16 %v8287_v16  ;;  %v8319_v47 = vld [vmem:[%s6633_s12 + $0x540] sm:$0xff]   ;;  %v9810_v16 = vld [vmem:[#allocation192_spill] sm:$0xff] }
 0x444   : > { %v3597_v53 = vmul.f32 %v9806_v44, %v9805_v35  ;;  %v3772_v56 = vmul.f32 %v5371_v17, %v9808_v0  ;;  %v4307_v27 = vadd.f32 %v4306_v55, %v3771_v25  ;;  %v2995_v7 = vpop.permute.xlu1 %2994  ;;  %v2991_v19 = vpop.permute.xlu0 %2990  ;;  %v5515_v50 = vunpack.c.l.bf16 %v5927_v13  ;;  %v5928_v57 = vld [vmem:[%s6633_s12 + $0x660] sm:$0xff]   ;;  %v9811_v11 = vld [vmem:[#allocation60_spill] sm:$0xff]  ;;  %v9816_v0 = vld [vmem:[#allocation195_spill] sm:$0xff] }
 0x445   : > { %v4382_v54 = vadd.f32 %v4381_v43, %v3841_v63  ;;  %v3843_v21 = vmul.f32 %v5512_v60, %v2995_v7  ;;  %v3842_v10 = vmul.f32 %v5511_v61, %v2991_v19  ;;  %v5516_v49 = vunpack.c.h.bf16 %v5927_v13 }
 0x446   : > { %v4117_v1 = vadd.f32 %v4116_v26, %v3596_v46  ;;  %v5252_v32 = vunpack.c.h.bf16 %v5861_v22  ;;  %v3712_v37 = vmul.f32 %v5251_v4, %v9809_v8  ;;  %v4242_v42 = vadd.f32 %v4241_v14, %v3711_v38  ;;  %3337 = vbcast.lane.b32.xlu1 %v8234_v51, 312  ;;  %3069 = vbcast.lane.b32.xlu0 %v9794_v48, 312  ;;  %v9812_v4 = vld [vmem:[#allocation238_spill] sm:$0xff] }
 0x447   : > { %v3655_v25 = vmul.f32 %v5136_v24, %v9810_v16  ;;  %v4180_v55 = vadd.f32 %v4179_v9, %v3654_v3  ;;  %v5151_v17 = vunpack.c.l.bf16 %v8314_v5  ;;  %v4383_v61 = vadd.f32 %v4382_v54, %v3842_v10  ;;  %v9813_v3 = vld [vmem:[#allocation137_spill] sm:$0xff] }
 0x448   : > { %v3773_v46 = vmul.f32 %v5372_v31, %v9811_v11  ;;  %v4308_v22 = vadd.f32 %v4307_v27, %v3772_v56  ;;  %v5375_v63 = vunpack.c.l.bf16 %v8319_v47  ;;  %v3003_v20 = vpop.permute.xlu1 %3002  ;;  %v2999_v60 = vpop.permute.xlu0 %2998  ;;  %v5519_v13 = vunpack.c.l.bf16 %v5928_v57  ;;  %v9814_v9 = vld [vmem:[#allocation49_spill] sm:$0xff] }
 0x449   : > { %v4384_v26 = vadd.f32 %v4383_v61, %v3843_v21  ;;  %v3845_v6 = vmul.f32 %v5516_v49, %v3003_v20  ;;  %v3844_v38 = vmul.f32 %v5515_v50, %v2999_v60  ;;  %v5520_v14 = vunpack.c.h.bf16 %v5928_v57  ;;  %v9817_v50 = vld [vmem:[#allocation33_spill] sm:$0xff]  ;;  %v5930_v61 = vld [vmem:[%s6633_s12 + $0x670] sm:$0xff]   ;;  %v9821_v20 = vld [vmem:[#allocation194_spill] sm:$0xff] }
 0x44a   : > { %v5152_v24 = vunpack.c.h.bf16 %v8314_v5  ;;  %v3713_v35 = vmul.f32 %v5252_v32, %v9812_v4  ;;  %v4243_v44 = vadd.f32 %v4242_v42, %v3712_v37  ;;  %v5255_v18 = vunpack.c.l.bf16 %v5862_v45  ;;  %3341 = vbcast.lane.b32.xlu1 %v8234_v51, 320  ;;  %3073 = vbcast.lane.b32.xlu0 %v9794_v48, 320  ;;  %v8346_v32 = vld [vmem:[%s6633_s12 + $0x548] sm:$0xff]  }
 0x44b   : > { %v9815_v43 = vunpack.c.l.bf16 %v9814_v9  ;;  %v3656_v56 = vmul.f32 %v5139_v33, %v9816_v0  ;;  %v4181_v27 = vadd.f32 %v4180_v55, %v3655_v25  ;;  %v4385_v7 = vadd.f32 %v4384_v26, %v3844_v38  ;;  %v9818_v55 = vld [vmem:[#allocation241_spill] sm:$0xff] }
 0x44c   : > { %v5376_v19 = vunpack.c.h.bf16 %v8319_v47  ;;  %v3774_v54 = vmul.f32 %v5375_v63, %v9817_v50  ;;  %v4309_v21 = vadd.f32 %v4308_v22, %v3773_v46  ;;  %v3011_v10 = vpop.permute.xlu1 %3010  ;;  %v3007_v49 = vpop.permute.xlu0 %3006  ;;  %v5523_v57 = vunpack.c.l.bf16 %v5929_v12  ;;  %v9819_v46 = vld [vmem:[#allocation136_spill] sm:$0xff]  ;;  %v5863_v26 = vld [vmem:[%s6633_s12 + $0x458] sm:$0xff]  }
 0x44d   : > { %v3598_v31 = vmul.f32 %v9815_v43, %v9813_v3  ;;  %v4386_v8 = vadd.f32 %v4385_v7, %v3845_v6  ;;  %v3847_v37 = vmul.f32 %v5520_v14, %v3011_v10  ;;  %v3846_v42 = vmul.f32 %v5519_v13, %v3007_v49  ;;  %v9824_v7 = vld [vmem:[#allocation197_spill] sm:$0xff]  ;;  %v9825_v10 = vld [vmem:[#allocation32_spill] sm:$0xff] }
 0x44e   : > { %v5524_v16 = vunpack.c.h.bf16 %v5929_v12  ;;  %v4118_v33 = vadd.f32 %v4117_v1, %v3597_v53  ;;  %v5256_v25 = vunpack.c.h.bf16 %v5862_v45  ;;  %v3714_v11 = vmul.f32 %v5255_v18, %v9818_v55  ;;  %3345 = vbcast.lane.b32.xlu1 %v8234_v51, 328  ;;  %3077 = vbcast.lane.b32.xlu0 %v9794_v48, 328  ;;  %v8360_v1 = vld [vmem:[%s6633_s12 + $0x388] sm:$0xff]  }
 0x44f   : > { %v4244_v47 = vadd.f32 %v4243_v44, %v3713_v35  ;;  %v9820_v22 = vunpack.c.h.bf16 %v9814_v9  ;;  %v3657_v60 = vmul.f32 %v5140_v15, %v9821_v20  ;;  %v4182_v13 = vadd.f32 %v4181_v27, %v3656_v56  ;;  %v9822_v45 = vld [vmem:[#allocation63_spill] sm:$0xff]  ;;  %v9823_v15 = vld [vmem:[#allocation240_spill] sm:$0xff] }
 0x450   : > { %v4387_v53 = vadd.f32 %v4386_v8, %v3846_v42  ;;  %v3775_v6 = vmul.f32 %v5376_v19, %v9822_v45  ;;  %v4310_v38 = vadd.f32 %v4309_v21, %v3774_v54  ;;  %v5379_v14 = vunpack.c.l.bf16 %v8346_v32  ;;  %v3019_v12 = vpop.permute.xlu1 %3018  ;;  %v3015_v4 = vpop.permute.xlu0 %3014  ;;  %v9827_v20 = vld [vmem:[#allocation139_spill] sm:$0xff]  ;;  %v9830_v45 = vld [vmem:[#allocation196_spill] sm:$0xff] }
 0x451   : > { %v3599_v63 = vmul.f32 %v9820_v22, %v9819_v46  ;;  %v5527_v35 = vunpack.c.l.bf16 %v5930_v61  ;;  %v3849_v18 = vmul.f32 %v5524_v16, %v3019_v12  ;;  %v3848_v3 = vmul.f32 %v5523_v57, %v3015_v4  ;;  %v8375_v16 = vld [vmem:[%s6633_s12 + $0x550] sm:$0xff]   ;;  %v9826_v46 = vld [vmem:[#allocation243_spill] sm:$0xff] }
 0x452   : > { %v4388_v44 = vadd.f32 %v4387_v53, %v3847_v37  ;;  %v5528_v9 = vunpack.c.h.bf16 %v5930_v61  ;;  %v4119_v43 = vadd.f32 %v4118_v33, %v3598_v31  ;;  %v3715_v0 = vmul.f32 %v5256_v25, %v9823_v15  ;;  %3349 = vbcast.lane.b32.xlu1 %v8234_v51, 336  ;;  %3081 = vbcast.lane.b32.xlu0 %v9794_v48, 336 }
 0x453   : > { %v4245_v56 = vadd.f32 %v4244_v47, %v3714_v11  ;;  %v5259_v27 = vunpack.c.l.bf16 %v5863_v26  ;;  %v3658_v19 = vmul.f32 %v5143_v36, %v9824_v7  ;;  %v4183_v50 = vadd.f32 %v4182_v13, %v3657_v60  ;;  %v5932_v36 = vld [vmem:[%s6633_s12 + $0x680] sm:$0xff]  }
 0x454   : > { %v5155_v54 = vunpack.c.l.bf16 %v8360_v1  ;;  %v4389_v21 = vadd.f32 %v4388_v44, %v3848_v3  ;;  %v5380_v31 = vunpack.c.h.bf16 %v8346_v32  ;;  %v3776_v49 = vmul.f32 %v5379_v14, %v9825_v10  ;;  %v3027_v8 = vpop.permute.xlu1 %3026  ;;  %v3023_v37 = vpop.permute.xlu0 %3022  ;;  %v9828_v60 = vld [vmem:[#allocation114_spill] sm:$0xff] }
 0x455   : > { %v4311_v57 = vadd.f32 %v4310_v38, %v3775_v6  ;;  %v5531_v42 = vunpack.c.l.bf16 %v5931_v58  ;;  %v3851_v33 = vmul.f32 %v5528_v9, %v3027_v8  ;;  %v3850_v25 = vmul.f32 %v5527_v35, %v3023_v37  ;;  %v5864_v14 = vld [vmem:[%s6633_s12 + $0x460] sm:$0xff]   ;;  %v8404_v8 = vld [vmem:[%s6633_s12 + $0x468] sm:$0xff]  }
 0x456   : > { %v4390_v61 = vadd.f32 %v4389_v21, %v3849_v18  ;;  %v5532_v55 = vunpack.c.h.bf16 %v5931_v58  ;;  %v5156_v11 = vunpack.c.h.bf16 %v8360_v1  ;;  %v5260_v47 = vunpack.c.h.bf16 %v5863_v26  ;;  %3353 = vbcast.lane.b32.xlu1 %v8234_v51, 344  ;;  %3085 = vbcast.lane.b32.xlu0 %v9794_v48, 344  ;;  %v9831_v26 = vld [vmem:[#allocation62_spill] sm:$0xff] }
 0x457   : > { %v3716_v22 = vmul.f32 %v5259_v27, %v9826_v46  ;;  %v4246_v32 = vadd.f32 %v4245_v56, %v3715_v0  ;;  %v9829_v13 = vunpack.c.l.bf16 %v9828_v60  ;;  %v3659_v6 = vmul.f32 %v5144_v2, %v9830_v45  ;;  %v5933_v27 = vld [vmem:[%s6633_s12 + $0x688] sm:$0xff]   ;;  %v9833_v21 = vld [vmem:[#allocation138_spill] sm:$0xff]  ;;  %v9837_v45 = vld [vmem:[#allocation245_spill] sm:$0xff] }
 0x458   : > { %v4184_v38 = vadd.f32 %v4183_v50, %v3658_v19  ;;  %v4391_v12 = vadd.f32 %v4390_v61, %v3850_v25  ;;  %v3777_v4 = vmul.f32 %v5380_v31, %v9831_v26  ;;  %v4312_v35 = vadd.f32 %v4311_v57, %v3776_v49  ;;  %v3035_v18 = vpop.permute.xlu1 %3034  ;;  %v3031_v3 = vpop.permute.xlu0 %3030  ;;  %v9835_v49 = vld [vmem:[#allocation199_spill] sm:$0xff]  ;;  %v9860_v1 = vld [vmem:[#allocation142_spill] sm:$0xff] }
 0x459   : > { %v3600_v53 = vmul.f32 %v9829_v13, %v9827_v20  ;;  %v5383_v44 = vunpack.c.l.bf16 %v8375_v16  ;;  %v5535_v9 = vunpack.c.l.bf16 %v5932_v36  ;;  %v3853_v15 = vmul.f32 %v5532_v55, %v3035_v18 }
 0x45a   : > { %v4392_v58 = vadd.f32 %v4391_v12, %v3851_v33  ;;  %v3852_v0 = vmul.f32 %v5531_v42, %v3031_v3  ;;  %v5536_v56 = vunpack.c.h.bf16 %v5932_v36  ;;  %v4120_v7 = vadd.f32 %v4119_v43, %v3599_v63  ;;  %3357 = vbcast.lane.b32.xlu1 %v8234_v51, 352  ;;  %3089 = vbcast.lane.b32.xlu0 %v9794_v48, 352  ;;  %v9836_v42 = vld [vmem:[#allocation35_spill] sm:$0xff] }
 0x45b   : > { %v3717_v2 = vmul.f32 %v5260_v47, %v9832_v30  ;;  %v4247_v19 = vadd.f32 %v4246_v32, %v3716_v22  ;;  %v5263_v50 = vunpack.c.l.bf16 %v5864_v14  ;;  %v9834_v31 = vunpack.c.h.bf16 %v9828_v60  ;;  %v8409_v47 = vld [vmem:[%s6633_s12 + $0x558] sm:$0xff]  }
 0x45c   : > { %v3660_v57 = vmul.f32 %v5147_v29, %v9835_v49  ;;  %v4185_v63 = vadd.f32 %v4184_v38, %v3659_v6  ;;  %v4393_v43 = vadd.f32 %v4392_v58, %v3852_v0  ;;  %v5384_v37 = vunpack.c.h.bf16 %v8375_v16  ;;  %v3046_v25 = vpop.permute.xlu1 %3045  ;;  %v3042_v55 = vpop.permute.xlu0 %3041  ;;  %v5948_v29 = vld [vmem:[%s6633_s12 + $0x700] sm:$0xff]  }
 0x45d   : > { %v8398_v10 = vmul.f32 %v9834_v31, %v9833_v21  ;;  %v3778_v61 = vmul.f32 %v5383_v44, %v9836_v42  ;;  %v4313_v33 = vadd.f32 %v4312_v35, %v3777_v4  ;;  %v5539_v36 = vunpack.c.l.bf16 %v5933_v27  ;;  %v9838_v16 = vld [vmem:[#allocation198_spill] sm:$0xff]  ;;  %v8419_v4 = vld [vmem:[%s6633_s12 + $0x390] sm:$0xff]   ;;  %v9841_v21 = vld [vmem:[#allocation201_spill] sm:$0xff] }
 0x45e   : > { %v3855_v46 = vmul.f32 %v5536_v56, %v3046_v25  ;;  %v3854_v22 = vmul.f32 %v5535_v9, %v3042_v55  ;;  %v4394_v32 = vadd.f32 %v4393_v43, %v3853_v15  ;;  %v5540_v20 = vunpack.c.h.bf16 %v5933_v27  ;;  %3361 = vbcast.lane.b32.xlu1 %v8234_v51, 360  ;;  %3093 = vbcast.lane.b32.xlu0 %v9794_v48, 360  ;;  %v9842_v43 = vld [vmem:[#allocation247_spill] sm:$0xff]  ;;  %v9843_v42 = vld [vmem:[#allocation34_spill] sm:$0xff] }
 0x45f   : > { %v4121_v60 = vadd.f32 %v4120_v7, %v3600_v53  ;;  %v5264_v13 = vunpack.c.h.bf16 %v5864_v14  ;;  %v3718_v6 = vmul.f32 %v5263_v50, %v9837_v45  ;;  %v4248_v38 = vadd.f32 %v4247_v19, %v3717_v2  ;;  %v9839_v53 = vld [vmem:[#allocation65_spill] sm:$0xff]  ;;  %v5949_v7 = vld [vmem:[%s6633_s12 + $0x708] sm:$0xff]   ;;  %v9840_v2 = vld [vmem:[#allocation244_spill] sm:$0xff] }
 0x460   : > { %v3661_v12 = vmul.f32 %v5148_v39, %v9838_v16  ;;  %v4186_v26 = vadd.f32 %v4185_v63, %v3660_v57  ;;  %v5267_v35 = vunpack.c.l.bf16 %v8404_v8  ;;  %v4395_v44 = vadd.f32 %v4394_v32, %v3854_v22  ;;  %v3054_v9 = vpop.permute.xlu1 %3053  ;;  %v3050_v58 = vpop.permute.xlu0 %3049  ;;  %v8446_v45 = vld [vmem:[%s6640_s21 + $0x18] sm:$0xff] }
 0x461   : > { %v3779_v14 = vmul.f32 %v5384_v37, %v9839_v53  ;;  %v4314_v18 = vadd.f32 %v4313_v33, %v3778_v61  ;;  %v5387_v3 = vunpack.c.l.bf16 %v8409_v47  ;;  %v5600_v15 = vunpack.c.h.bf16 %v5948_v29  ;;  %v5866_v53 = vld [vmem:[%s6633_s12 + $0x470] sm:$0xff]  }
 0x462   : > { %v3857_v0 = vmul.f32 %v5540_v20, %v3054_v9  ;;  %v3856_v56 = vmul.f32 %v5539_v36, %v3050_v58  ;;  %v4396_v27 = vadd.f32 %v4395_v44, %v3855_v46  ;;  %v5599_v34 = vunpack.c.l.bf16 %v5948_v29  ;;  %3365 = vbcast.lane.b32.xlu1 %v8234_v51, 368  ;;  %3097 = vbcast.lane.b32.xlu0 %v9794_v48, 368  ;;  %v8437_v46 = vld [vmem:[%s6633_s12 + $0x560] sm:$0xff]  }
 0x463   : > { %v5160_v39 = vunpack.c.h.bf16 %v8419_v4  ;;  %v5159_v30 = vunpack.c.l.bf16 %v8419_v4  ;;  %v3719_v19 = vmul.f32 %v5264_v13, %v9840_v2  ;;  %v4249_v50 = vadd.f32 %v4248_v38, %v3718_v6  ;;  %v9844_v38 = vld [vmem:[#allocation28_spill] sm:$0xff] }
 0x464   : > { %v3662_v31 = vmul.f32 %v5151_v17, %v9841_v21  ;;  %v4187_v49 = vadd.f32 %v4186_v26, %v3661_v12  ;;  %v5388_v57 = vunpack.c.h.bf16 %v8409_v47  ;;  %v4397_v63 = vadd.f32 %v4396_v27, %v3856_v56  ;;  %v3180_v25 = vpop.permute.xlu1 %3179  ;;  %v3176_v55 = vpop.permute.xlu0 %3175  ;;  %v5950_v17 = vld [vmem:[%s6633_s12 + $0x710] sm:$0xff]   ;;  %v9845_v12 = vld [vmem:[#allocation141_spill] sm:$0xff] }
 0x465   : > { %v3720_v37 = vmul.f32 %v5267_v35, %v9842_v43  ;;  %v3780_v61 = vmul.f32 %v5387_v3, %v9843_v42  ;;  %v4315_v33 = vadd.f32 %v4314_v18, %v3779_v14  ;;  %v5603_v36 = vunpack.c.l.bf16 %v5949_v7  ;;  %v9848_v14 = vld [vmem:[#allocation64_spill] sm:$0xff]  ;;  %v9853_v43 = vld [vmem:[#allocation37_spill] sm:$0xff] }
 0x466   : > { %v3887_v22 = vmul.f32 %v5600_v15, %v3180_v25  ;;  %v3886_v32 = vmul.f32 %v5599_v34, %v3176_v55  ;;  %v5604_v20 = vunpack.c.h.bf16 %v5949_v7  ;;  %v8440_v29 = vadd.f32 %v4397_v63, %v3857_v0  ;;  %3369 = vbcast.lane.b32.xlu1 %v8234_v51, 376  ;;  %3101 = vbcast.lane.b32.xlu0 %v9794_v48, 376  ;;  %v9847_v51 = vld [vmem:[#allocation200_spill] sm:$0xff]  ;;  %v5951_v7 = vld [vmem:[%s6633_s12 + $0x718] sm:$0xff]   ;;  %v8479_v55 = vld [vmem:[%s6633_s12 + $0x568] sm:$0xff]  }
 0x467   : > { %v5268_v47 = vunpack.c.h.bf16 %v8404_v8  ;;  %v4250_v13 = vadd.f32 %v4249_v50, %v3719_v19  ;;  %v8450_v6 = vrot.slane %v8446_v45, %v7774_v62  ;;  %v8454_v16 = vrot.slane %v8446_v45, %v9844_v38 }
 0x468   : > { %v9846_v26 = vunpack.c.l.bf16 %v7971_v41  ;;  %v4122_v35 = vadd.f32 %v4121_v60, %v8398_v10  ;;  %v3663_v48 = vmul.f32 %v5152_v24, %v9847_v51  ;;  %v4188_v44 = vadd.f32 %v4187_v49, %v3662_v31  ;;  %v3188_v9 = vpop.permute.xlu1 %3187  ;;  %v3184_v58 = vpop.permute.xlu0 %3183  ;;  %v9849_v10 = vld [vmem:[#allocation140_spill] sm:$0xff]  ;;  %v9851_v24 = vld [vmem:[#allocation246_spill] sm:$0xff]  ;;  %v9852_v31 = vld [vmem:[#allocation203_spill] sm:$0xff] }
 0x469   : > { %v3781_v62 = vmul.f32 %v5388_v57, %v9848_v14  ;;  %v4316_v18 = vadd.f32 %v4315_v33, %v3780_v61  ;;  %v5391_v3 = vunpack.c.l.bf16 %v8437_v46  ;;  %v5607_v15 = vunpack.c.l.bf16 %v5950_v17  ;;  %v9858_v51 = vld [vmem:[#allocation202_spill] sm:$0xff]  ;;  %v5867_v14 = vld [vmem:[%s6633_s12 + $0x478] sm:$0xff]  }
 0x46a   : > { %v3602_v8 = vmul.f32 %v9846_v26, %v9845_v12  ;;  %v4433_v0 = vadd.f32 %v3887_v22, %v3886_v32  ;;  %v3889_v56 = vmul.f32 %v5604_v20, %v3188_v9  ;;  %v3888_v27 = vmul.f32 %v5603_v36, %v3184_v58  ;;  %3376 = vbcast.lane.b32.xlu1 %v8450_v6, 256 }
 0x46b   : > { %v5608_v34 = vunpack.c.h.bf16 %v5950_v17  ;;  %v9850_v60 = vunpack.c.h.bf16 %v7971_v41  ;;  %v3721_v2 = vmul.f32 %v5268_v47, %v9851_v24  ;;  %v4251_v19 = vadd.f32 %v4250_v13, %v3720_v37  ;;  %3108 = vbcast.lane.b32.xlu0 %v8454_v16, 256  ;;  %v5952_v17 = vld [vmem:[%s6633_s12 + $0x720] sm:$0xff]   ;;  %v9854_v47 = vld [vmem:[#allocation143_spill] sm:$0xff] }
 0x46c   : > { %v5271_v50 = vunpack.c.l.bf16 %v5866_v53  ;;  %v4123_v21 = vadd.f32 %v4122_v35, %v3602_v8  ;;  %v3664_v49 = vmul.f32 %v5155_v54, %v9852_v31  ;;  %v4189_v57 = vadd.f32 %v4188_v44, %v3663_v48  ;;  %v3196_v33 = vpop.permute.xlu1 %3195  ;;  %v3192_v37 = vpop.permute.xlu0 %3191  ;;  %v9855_v54 = vld [vmem:[#allocation168_spill] sm:$0xff]  ;;  %v9863_v31 = vld [vmem:[#allocation205_spill] sm:$0xff] }
 0x46d   : > { %v3603_v5 = vmul.f32 %v9850_v60, %v9849_v10  ;;  %v4434_v63 = vadd.f32 %v4433_v0, %v3888_v27  ;;  %v5392_v41 = vunpack.c.h.bf16 %v8437_v46  ;;  %v3782_v42 = vmul.f32 %v5391_v3, %v9853_v43  ;;  %v9857_v46 = vld [vmem:[#allocation249_spill] sm:$0xff] }
 0x46e   : > { %v4317_v61 = vadd.f32 %v4316_v18, %v3781_v62  ;;  %v5611_v25 = vunpack.c.l.bf16 %v5951_v7  ;;  %v3891_v22 = vmul.f32 %v5608_v34, %v3196_v33  ;;  %v3890_v32 = vmul.f32 %v5607_v15, %v3192_v37  ;;  %3380 = vbcast.lane.b32.xlu1 %v8450_v6, 264  ;;  %v9859_v18 = vld [vmem:[#allocation67_spill] sm:$0xff] }
 0x46f   : > { %v4435_v36 = vadd.f32 %v4434_v63, %v3889_v56  ;;  %v5612_v20 = vunpack.c.h.bf16 %v5951_v7  ;;  %v9856_v13 = vunpack.c.l.bf16 %v9855_v54  ;;  %v5272_v12 = vunpack.c.h.bf16 %v5866_v53  ;;  %3112 = vbcast.lane.b32.xlu0 %v8454_v16, 264  ;;  %v8495_v56 = vld [vmem:[%s6633_s12 + $0x398] sm:$0xff]  }
 0x470   : > { %v3722_v26 = vmul.f32 %v5271_v50, %v9857_v46  ;;  %v4252_v8 = vadd.f32 %v4251_v19, %v3721_v2  ;;  %v4124_v35 = vadd.f32 %v4123_v21, %v3603_v5  ;;  %v3665_v48 = vmul.f32 %v5156_v11, %v9858_v51  ;;  %v3204_v58 = vpop.permute.xlu1 %3203  ;;  %v3200_v15 = vpop.permute.xlu0 %3199  ;;  %v9862_v5 = vld [vmem:[#allocation248_spill] sm:$0xff]  ;;  %v5953_v50 = vld [vmem:[%s6633_s12 + $0x728] sm:$0xff]   ;;  %v5868_v51 = vld [vmem:[%s6633_s12 + $0x480] sm:$0xff]  }
 0x471   : > { %v3604_v38 = vmul.f32 %v9856_v13, %v9854_v47  ;;  %v4190_v44 = vadd.f32 %v4189_v57, %v3664_v49  ;;  %v4436_v62 = vadd.f32 %v4435_v36, %v3890_v32  ;;  %v3783_v3 = vmul.f32 %v5392_v41, %v9859_v18  ;;  %v8511_v36 = vld [vmem:[%s6633_s12 + $0x570] sm:$0xff]   ;;  %v9865_v47 = vld [vmem:[#allocation145_spill] sm:$0xff] }
 0x472   : > { %v4318_v9 = vadd.f32 %v4317_v61, %v3782_v42  ;;  %v5395_v53 = vunpack.c.l.bf16 %v8479_v55  ;;  %v5615_v0 = vunpack.c.l.bf16 %v5952_v17  ;;  %v3893_v34 = vmul.f32 %v5612_v20, %v3204_v58  ;;  %3384 = vbcast.lane.b32.xlu1 %v8450_v6, 272  ;;  %v9864_v42 = vld [vmem:[#allocation36_spill] sm:$0xff] }
 0x473   : > { %v4437_v27 = vadd.f32 %v4436_v62, %v3891_v22  ;;  %v3892_v7 = vmul.f32 %v5611_v25, %v3200_v15  ;;  %v5616_v10 = vunpack.c.h.bf16 %v5952_v17  ;;  %v9861_v11 = vunpack.c.h.bf16 %v9855_v54  ;;  %3116 = vbcast.lane.b32.xlu0 %v8454_v16, 272  ;;  %v9870_v62 = vld [vmem:[#allocation108_spill] sm:$0xff] }
 0x474   : > { %v3723_v24 = vmul.f32 %v5272_v12, %v9862_v5  ;;  %v4253_v2 = vadd.f32 %v4252_v8, %v3722_v26  ;;  %v5275_v19 = vunpack.c.l.bf16 %v5867_v14  ;;  %v4125_v21 = vadd.f32 %v4124_v35, %v3604_v38  ;;  %v3212_v37 = vpop.permute.xlu1 %3211  ;;  %v3208_v25 = vpop.permute.xlu0 %3207  ;;  %v9867_v38 = vld [vmem:[#allocation251_spill] sm:$0xff]  ;;  %v9868_v26 = vld [vmem:[#allocation204_spill] sm:$0xff] }
 0x475   : > { %v3605_v60 = vmul.f32 %v9861_v11, %v9860_v1  ;;  %v3666_v49 = vmul.f32 %v5159_v30, %v9863_v31  ;;  %v4191_v57 = vadd.f32 %v4190_v44, %v3665_v48  ;;  %v4438_v63 = vadd.f32 %v4437_v27, %v3892_v7  ;;  %v9869_v44 = vld [vmem:[#allocation91_spill] sm:$0xff]  ;;  %v5954_v5 = vld [vmem:[%s6633_s12 + $0x730] sm:$0xff]   ;;  %v9877_v31 = vld [vmem:[#allocation90_spill] sm:$0xff] }
 0x476   : > { %v5163_v41 = vunpack.c.l.bf16 %v8495_v56  ;;  %v5396_v43 = vunpack.c.h.bf16 %v8479_v55  ;;  %v3784_v61 = vmul.f32 %v5395_v53, %v9864_v42  ;;  %v4319_v33 = vadd.f32 %v4318_v9, %v3783_v3  ;;  %3388 = vbcast.lane.b32.xlu1 %v8450_v6, 280 }
 0x477   : > { %v4439_v22 = vadd.f32 %v4438_v63, %v3893_v34  ;;  %v3895_v32 = vmul.f32 %v5616_v10, %v3212_v37  ;;  %v3894_v20 = vmul.f32 %v5615_v0, %v3208_v25  ;;  %v5619_v17 = vunpack.c.l.bf16 %v5953_v50  ;;  %3120 = vbcast.lane.b32.xlu0 %v8454_v16, 280  ;;  %v9873_v10 = vld [vmem:[#allocation250_spill] sm:$0xff] }
 0x478   : > { %v9866_v30 = vunpack.c.l.bf16 %v7982_v52  ;;  %v5276_v13 = vunpack.c.h.bf16 %v5867_v14  ;;  %v3724_v12 = vmul.f32 %v5275_v19, %v9867_v38  ;;  %v4254_v55 = vadd.f32 %v4253_v2, %v3723_v24  ;;  %v9872_v14 = vld [vmem:[#allocation66_spill] sm:$0xff]  ;;  %v3220_v15 = vpop.permute.xlu1 %3219  ;;  %v3216_v0 = vpop.permute.xlu0 %3215  ;;  %v9874_v24 = vld [vmem:[#allocation144_spill] sm:$0xff]  ;;  %v9876_v19 = vld [vmem:[#allocation207_spill] sm:$0xff] }
 0x479   : > { %v4126_v46 = vadd.f32 %v4125_v21, %v3605_v60  ;;  %v3667_v8 = vmul.f32 %v5160_v39, %v9868_v26  ;;  %v4192_v35 = vadd.f32 %v4191_v57, %v3666_v49  ;;  %v4440_v48 = vadd.f32 %v4439_v22, %v3894_v20  ;;  %v5899_v22 = vld [vmem:[%s6633_s12 + $0x578] sm:$0xff]  }
 0x47a   : > { %v3606_v54 = vmul.f32 %v9866_v30, %v9865_v47  ;;  %v9871_v18 = vunpack.c.l.bf16 %v9870_v62  ;;  %v3785_v9 = vmul.f32 %v5396_v43, %v9872_v14  ;;  %v4320_v53 = vadd.f32 %v4319_v33, %v3784_v61  ;;  %3392 = vbcast.lane.b32.xlu1 %v8450_v6, 288  ;;  %v9879_v43 = vld [vmem:[#allocation39_spill] sm:$0xff]  ;;  %v9880_v30 = vld [vmem:[#allocation253_spill] sm:$0xff] }
 0x47b   : > { %v5399_v58 = vunpack.c.l.bf16 %v8511_v36  ;;  %v4067_v4 = vadd.f32 %v8082_v23, %v8080_v28  ;;  %v4441_v39 = vadd.f32 %v4440_v48, %v3895_v32  ;;  %v5620_v27 = vunpack.c.h.bf16 %v5953_v50  ;;  %3124 = vbcast.lane.b32.xlu0 %v8454_v16, 288 }
 0x47c   : > { %v3552_v3 = vmul.f32 %v9871_v18, %v9869_v44  ;;  %v3896_v34 = vmul.f32 %v5619_v17, %v3216_v0  ;;  %v5164_v7 = vunpack.c.h.bf16 %v8495_v56  ;;  %v3725_v1 = vmul.f32 %v5276_v13, %v9873_v10  ;;  %v8540_v56 = vld [vmem:[%s6633_s12 + $0x3a0] sm:$0xff]   ;;  %v3228_v33 = vpop.permute.xlu1 %3227  ;;  %v3224_v37 = vpop.permute.xlu0 %3223 }
 0x47d   : > { %v4255_v11 = vadd.f32 %v4254_v55, %v3724_v12  ;;  %v5279_v60 = vunpack.c.l.bf16 %v5868_v51  ;;  %v9875_v2 = vunpack.c.h.bf16 %v7982_v52  ;;  %v4127_v28 = vadd.f32 %v4126_v46, %v3606_v54  ;;  %v8548_v52 = vld [vmem:[%s6633_s12 + $0x2d0] sm:$0xff]   ;;  %v9883_v46 = vld [vmem:[#allocation206_spill] sm:$0xff] }
 0x47e   : > { %v3668_v50 = vmul.f32 %v5163_v41, %v9876_v19  ;;  %v4193_v21 = vadd.f32 %v4192_v35, %v3667_v8  ;;  %v9878_v49 = vunpack.c.h.bf16 %v9870_v62  ;;  %v5400_v63 = vunpack.c.h.bf16 %v8511_v36  ;;  %3396 = vbcast.lane.b32.xlu1 %v8450_v6, 296  ;;  %v9881_v36 = vld [vmem:[#allocation147_spill] sm:$0xff]  ;;  %v9886_v10 = vld [vmem:[#allocation146_spill] sm:$0xff]  ;;  %v9890_v19 = vld [vmem:[#allocation72_spill] sm:$0xff] }
 0x47f   : > { %v3607_v23 = vmul.f32 %v9875_v2, %v9874_v24  ;;  %v3786_v42 = vmul.f32 %v5399_v58, %v9879_v43  ;;  %v4321_v61 = vadd.f32 %v4320_v53, %v3785_v9  ;;  %v4068_v25 = vadd.f32 %v4067_v4, %v3552_v3  ;;  %3128 = vbcast.lane.b32.xlu0 %v8454_v16, 296  ;;  %v5869_v35 = vld [vmem:[%s6633_s12 + $0x488] sm:$0xff]   ;;  %v9885_v4 = vld [vmem:[#allocation252_spill] sm:$0xff]  ;;  %v9888_v24 = vld [vmem:[#allocation209_spill] sm:$0xff] }
 0x480   : > { %v3553_v57 = vmul.f32 %v9878_v49, %v9877_v31  ;;  %v3897_v41 = vmul.f32 %v5620_v27, %v3220_v15  ;;  %v4442_v32 = vadd.f32 %v4441_v39, %v3896_v34  ;;  %v5623_v20 = vunpack.c.l.bf16 %v5954_v5  ;;  %v8562_v3 = vpop.permute.xlu1 %3235  ;;  %v3232_v14 = vpop.permute.xlu0 %3231  ;;  %v9892_v31 = vld [vmem:[#allocation38_spill] sm:$0xff] }
 0x481   : > { %v5167_v17 = vunpack.c.l.bf16 %v8540_v56  ;;  %v5280_v47 = vunpack.c.h.bf16 %v5868_v51  ;;  %v3726_v54 = vmul.f32 %v5279_v60, %v9880_v30  ;;  %v4256_v13 = vadd.f32 %v4255_v11, %v3725_v1  ;;  %v9884_v51 = vld [vmem:[#allocation69_spill] sm:$0xff] }
 0x482   : > { %v9882_v38 = vunpack.c.l.bf16 %v8003_v40  ;;  %v4128_v55 = vadd.f32 %v4127_v28, %v3607_v23  ;;  %v3669_v26 = vmul.f32 %v5164_v7, %v9883_v46  ;;  %v4194_v8 = vadd.f32 %v4193_v21, %v3668_v50  ;;  %v5955_v7 = vld [vmem:[%s6633_s12 + $0x738] sm:$0xff]   ;;  %3400 = vbcast.lane.b32.xlu1 %v8450_v6, 304  ;;  %v8575_v23 = vld [vmem:[%s6633_s12 + $0x3a8] sm:$0xff]  }
 0x483   : > { %v5063_v48 = vunpack.c.l.bf16 %v8548_v52  ;;  %v3787_v44 = vmul.f32 %v5400_v63, %v9884_v51  ;;  %v4322_v62 = vadd.f32 %v4321_v61, %v3786_v42  ;;  %v5403_v18 = vunpack.c.l.bf16 %v5899_v22  ;;  %3132 = vbcast.lane.b32.xlu0 %v8454_v16, 304  ;;  %v9889_v28 = vld [vmem:[#allocation93_spill] sm:$0xff]  ;;  %v5900_v61 = vld [vmem:[%s6633_s12 + $0x580] sm:$0xff]  }
 0x484   : > { %v3608_v12 = vmul.f32 %v9882_v38, %v9881_v36  ;;  %v5064_v9 = vunpack.c.h.bf16 %v8548_v52  ;;  %v4443_v53 = vadd.f32 %v4442_v32, %v3897_v41  ;;  %v5624_v58 = vunpack.c.h.bf16 %v5954_v5  ;;  %v8581_v43 = vpop.permute.xlu1 %3246  ;;  %v8583_v42 = vpop.permute.xlu0 %3242 }
 0x485   : > { %v3898_v15 = vmul.f32 %v5623_v20, %v3224_v37  ;;  %v5168_v0 = vunpack.c.h.bf16 %v8540_v56  ;;  %v3727_v39 = vmul.f32 %v5280_v47, %v9885_v4  ;;  %v4257_v27 = vadd.f32 %v4256_v13, %v3726_v54  ;;  %v9893_v47 = vld [vmem:[#allocation255_spill] sm:$0xff]  ;;  %v9894_v54 = vld [vmem:[#allocation149_spill] sm:$0xff] }
 0x486   : > { %v5283_v34 = vunpack.c.l.bf16 %v5869_v35  ;;  %v9887_v1 = vunpack.c.h.bf16 %v8003_v40  ;;  %v4129_v60 = vadd.f32 %v4128_v55, %v3608_v12  ;;  %v3670_v5 = vmul.f32 %v5167_v17, %v9888_v24  ;;  %3404 = vbcast.lane.b32.xlu1 %v8450_v6, 312  ;;  %v5870_v12 = vld [vmem:[%s6633_s12 + $0x490] sm:$0xff]  }
 0x487   : > { %v4195_v2 = vadd.f32 %v4194_v8, %v3669_v26  ;;  %v9891_v50 = vunpack.c.l.bf16 %v9890_v19  ;;  %v5404_v56 = vunpack.c.h.bf16 %v5899_v22  ;;  %v3788_v49 = vmul.f32 %v5403_v18, %v9892_v31  ;;  %3136 = vbcast.lane.b32.xlu0 %v8454_v16, 312  ;;  %v9897_v55 = vld [vmem:[#allocation92_spill] sm:$0xff] }
 0x488   : > { %v3609_v11 = vmul.f32 %v9887_v1, %v9886_v10  ;;  %v4323_v63 = vadd.f32 %v4322_v62, %v3787_v44  ;;  %v4069_v40 = vadd.f32 %v4068_v25, %v3553_v57  ;;  %v3899_v37 = vmul.f32 %v5624_v58, %v3228_v33  ;;  %v9896_v25 = vld [vmem:[#allocation208_spill] sm:$0xff]  ;;  %v8599_v62 = vpop.permute.xlu1 %3254  ;;  %v8601_v18 = vpop.permute.xlu0 %3250  ;;  %v8604_v58 = vld [vmem:[%s6633_s12 + $0x2d8] sm:$0xff]  }
 0x489   : > { %v3554_v21 = vmul.f32 %v9891_v50, %v9889_v28  ;;  %v4444_v41 = vadd.f32 %v4443_v53, %v3898_v15  ;;  %v5627_v32 = vunpack.c.l.bf16 %v5955_v7  ;;  %v5171_v20 = vunpack.c.l.bf16 %v8575_v23  ;;  %v9899_v8 = vld [vmem:[#allocation68_spill] sm:$0xff]  ;;  %v9903_v28 = vld [vmem:[#allocation211_spill] sm:$0xff] }
 0x48a   : > { %v5284_v17 = vunpack.c.h.bf16 %v5869_v35  ;;  %v3728_v30 = vmul.f32 %v5283_v34, %v9893_v47  ;;  %v4258_v22 = vadd.f32 %v4257_v27, %v3727_v39  ;;  %v9895_v13 = vunpack.c.l.bf16 %v8006_v59  ;;  %v9900_v27 = vld [vmem:[#allocation254_spill] sm:$0xff]  ;;  %3408 = vbcast.lane.b32.xlu1 %v8450_v6, 320  ;;  %v9905_v47 = vld [vmem:[#allocation257_spill] sm:$0xff] }
 0x48b   : > { %v4130_v57 = vadd.f32 %v4129_v60, %v3609_v11  ;;  %v3671_v33 = vmul.f32 %v5168_v0, %v9896_v25  ;;  %v4196_v38 = vadd.f32 %v4195_v2, %v3670_v5  ;;  %v9898_v46 = vunpack.c.h.bf16 %v9890_v19  ;;  %v5956_v11 = vld [vmem:[%s6633_s12 + $0x740] sm:$0xff]   ;;  %3140 = vbcast.lane.b32.xlu0 %v8454_v16, 320  ;;  %v9901_v60 = vld [vmem:[#allocation148_spill] sm:$0xff] }
 0x48c   : > { %v3610_v36 = vmul.f32 %v9895_v13, %v9894_v54  ;;  %v3789_v35 = vmul.f32 %v5404_v56, %v9899_v8  ;;  %v4324_v51 = vadd.f32 %v4323_v63, %v3788_v49  ;;  %v5407_v44 = vunpack.c.l.bf16 %v5900_v61  ;;  %v8616_v19 = vld [vmem:[%s6633_s12 + $0x3b0] sm:$0xff]   ;;  %v8620_v49 = vpop.permute.xlu1 %3262  ;;  %v8622_v63 = vpop.permute.xlu0 %3258  ;;  %v9907_v54 = vld [vmem:[#allocation51_spill] sm:$0xff]  ;;  %v9909_v25 = vld [vmem:[#allocation210_spill] sm:$0xff] }
 0x48d   : > { %v3555_v26 = vmul.f32 %v9898_v46, %v9897_v55  ;;  %v4070_v53 = vadd.f32 %v4069_v40, %v3554_v21  ;;  %v4445_v15 = vadd.f32 %v4444_v41, %v3899_v37  ;;  %v5628_v0 = vunpack.c.h.bf16 %v5955_v7  ;;  %v9904_v21 = vld [vmem:[#allocation105_spill] sm:$0xff]  ;;  %v5901_v40 = vld [vmem:[%s6633_s12 + $0x588] sm:$0xff]   ;;  %v9911_v46 = vld [vmem:[#allocation42_spill] sm:$0xff] }
 0x48e   : > { %v3900_v4 = vmul.f32 %v5627_v32, %v3232_v14  ;;  %v5172_v39 = vunpack.c.h.bf16 %v8575_v23  ;;  %v3729_v34 = vmul.f32 %v5284_v17, %v9900_v27  ;;  %v4259_v10 = vadd.f32 %v4258_v22, %v3728_v30  ;;  %3412 = vbcast.lane.b32.xlu1 %v8450_v6, 328  ;;  %v9906_v22 = vld [vmem:[#allocation151_spill] sm:$0xff] }
 0x48f   : > { %v5287_v1 = vunpack.c.l.bf16 %v5870_v12  ;;  %v9902_v24 = vunpack.c.h.bf16 %v8006_v59  ;;  %v4131_v2 = vadd.f32 %v4130_v57, %v3610_v36  ;;  %v3672_v7 = vmul.f32 %v5171_v20, %v9903_v28  ;;  %3144 = vbcast.lane.b32.xlu0 %v8454_v16, 328  ;;  %v9910_v55 = vld [vmem:[#allocation95_spill] sm:$0xff] }
 0x490   : > { %v4197_v14 = vadd.f32 %v4196_v38, %v3671_v33  ;;  %v5067_v23 = vunpack.c.l.bf16 %v8604_v58  ;;  %v5408_v50 = vunpack.c.h.bf16 %v5900_v61  ;;  %v3790_v56 = vmul.f32 %v5407_v44, %v9904_v21  ;;  %v5871_v38 = vld [vmem:[%s6633_s12 + $0x498] sm:$0xff]   ;;  %v5957_v28 = vld [vmem:[%s6633_s12 + $0x748] sm:$0xff]   ;;  %v9918_v21 = vld [vmem:[#allocation94_spill] sm:$0xff] }
 0x491   : > { %v3611_v5 = vmul.f32 %v9902_v24, %v9901_v60  ;;  %v4325_v31 = vadd.f32 %v4324_v51, %v3789_v35  ;;  %v5068_v59 = vunpack.c.h.bf16 %v8604_v58  ;;  %v3901_v37 = vmul.f32 %v5628_v0, %v8562_v3  ;;  %v9913_v35 = vld [vmem:[#allocation104_spill] sm:$0xff]  ;;  %v8640_v0 = vpop.permute.xlu1 %3270 }
 0x492   : > { %v4446_v41 = vadd.f32 %v4445_v15, %v3900_v4  ;;  %v5631_v32 = vunpack.c.l.bf16 %v5956_v11  ;;  %v5175_v20 = vunpack.c.l.bf16 %v8616_v19  ;;  %v5288_v17 = vunpack.c.h.bf16 %v5870_v12  ;;  %v8642_v4 = vpop.permute.xlu0 %3266  ;;  %v9914_v60 = vld [vmem:[#allocation256_spill] sm:$0xff]  ;;  %3416 = vbcast.lane.b32.xlu1 %v8450_v6, 336 }
 0x493   : > { %v3730_v61 = vmul.f32 %v5287_v1, %v9905_v47  ;;  %v4260_v30 = vadd.f32 %v4259_v10, %v3729_v34  ;;  %v9908_v13 = vunpack.c.l.bf16 %v9907_v54  ;;  %v4132_v57 = vadd.f32 %v4131_v2, %v3611_v5  ;;  %3148 = vbcast.lane.b32.xlu0 %v8454_v16, 336 }
 0x494   : > { %v3673_v33 = vmul.f32 %v5172_v39, %v9909_v25  ;;  %v4198_v3 = vadd.f32 %v4197_v14, %v3672_v7  ;;  %v9912_v12 = vunpack.c.l.bf16 %v9911_v46  ;;  %v3791_v51 = vmul.f32 %v5408_v50, %v9913_v35  ;;  %v9915_v7 = vld [vmem:[#allocation150_spill] sm:$0xff]  ;;  %v9917_v14 = vld [vmem:[#allocation213_spill] sm:$0xff] }
 0x495   : > { %v3612_v36 = vmul.f32 %v9908_v13, %v9906_v22  ;;  %v4326_v44 = vadd.f32 %v4325_v31, %v3790_v56  ;;  %v5411_v15 = vunpack.c.l.bf16 %v5901_v40  ;;  %v4071_v27 = vadd.f32 %v4070_v53, %v3555_v26  ;;  %v8661_v47 = vpop.permute.xlu1 %3278  ;;  %v8666_v22 = vld [vmem:[%s6633_s12 + $0x2e0] sm:$0xff]  }
 0x496   : > { %v3556_v8 = vmul.f32 %v9912_v12, %v9910_v55  ;;  %v4447_v34 = vadd.f32 %v4446_v41, %v3901_v37  ;;  %v5632_v10 = vunpack.c.h.bf16 %v5956_v11  ;;  %v3902_v39 = vmul.f32 %v5631_v32, %v8583_v42  ;;  %v9920_v41 = vld [vmem:[#allocation71_spill] sm:$0xff]  ;;  %3420 = vbcast.lane.b32.xlu1 %v8450_v6, 344  ;;  %v9922_v55 = vld [vmem:[#allocation153_spill] sm:$0xff] }
 0x497   : > { %v5176_v1 = vunpack.c.h.bf16 %v8616_v19  ;;  %v3731_v24 = vmul.f32 %v5288_v17, %v9914_v60  ;;  %v4261_v5 = vadd.f32 %v4260_v30, %v3730_v61  ;;  %v5291_v2 = vunpack.c.l.bf16 %v5871_v38  ;;  %v8655_v19 = vld [vmem:[%s6633_s12 + $0x3b8] sm:$0xff]   ;;  %v8663_v61 = vpop.permute.xlu0 %3274  ;;  %3152 = vbcast.lane.b32.xlu0 %v8454_v16, 344 }
 0x498   : > { %v9916_v26 = vunpack.c.h.bf16 %v9907_v54  ;;  %v4133_v11 = vadd.f32 %v4132_v57, %v3612_v36  ;;  %v3674_v42 = vmul.f32 %v5175_v20, %v9917_v14  ;;  %v4199_v50 = vadd.f32 %v4198_v3, %v3673_v33  ;;  %v5902_v20 = vld [vmem:[%s6633_s12 + $0x590] sm:$0xff]  }
 0x499   : > { %v9919_v56 = vunpack.c.h.bf16 %v9911_v46  ;;  %v5412_v37 = vunpack.c.h.bf16 %v5901_v40  ;;  %v3792_v32 = vmul.f32 %v5411_v15, %v9920_v41  ;;  %v4327_v17 = vadd.f32 %v4326_v44, %v3791_v51  ;;  %v9921_v40 = vld [vmem:[#allocation259_spill] sm:$0xff]  ;;  %v9923_v46 = vld [vmem:[#allocation116_spill] sm:$0xff]  ;;  %v5872_v15 = vld [vmem:[%s6633_s12 + $0x4a0] sm:$0xff]   ;;  %v8681_v60 = vpop.permute.xlu1 %3286 }
 0x49a   : > { %v3613_v53 = vmul.f32 %v9916_v26, %v9915_v7  ;;  %v4072_v30 = vadd.f32 %v4071_v27, %v3556_v8  ;;  %v3903_v54 = vmul.f32 %v5632_v10, %v8581_v43  ;;  %v4448_v13 = vadd.f32 %v4447_v34, %v3902_v39  ;;  %v9925_v51 = vld [vmem:[#allocation212_spill] sm:$0xff]  ;;  %3424 = vbcast.lane.b32.xlu1 %v8450_v6, 352 }
 0x49b   : > { %v3557_v31 = vmul.f32 %v9919_v56, %v9918_v21  ;;  %v5635_v36 = vunpack.c.l.bf16 %v5957_v28  ;;  %v5179_v57 = vunpack.c.l.bf16 %v8655_v19  ;;  %v5292_v25 = vunpack.c.h.bf16 %v5871_v38  ;;  %v9926_v38 = vld [vmem:[#allocation107_spill] sm:$0xff]  ;;  %3156 = vbcast.lane.b32.xlu0 %v8454_v16, 352  ;;  %v9928_v21 = vld [vmem:[#allocation152_spill] sm:$0xff] }
 0x49c   : > { %v3732_v33 = vmul.f32 %v5291_v2, %v9921_v40  ;;  %v4262_v3 = vadd.f32 %v4261_v5, %v3731_v24  ;;  %v9924_v12 = vunpack.c.l.bf16 %v9923_v46  ;;  %v4134_v35 = vadd.f32 %v4133_v11, %v3613_v53  ;;  %v8683_v24 = vpop.permute.xlu0 %3282  ;;  %v9927_v53 = vld [vmem:[#allocation258_spill] sm:$0xff] }
 0x49d   : > { %v3675_v44 = vmul.f32 %v5176_v1, %v9925_v51  ;;  %v4200_v43 = vadd.f32 %v4199_v50, %v3674_v42  ;;  %v5071_v27 = vunpack.c.l.bf16 %v8666_v22  ;;  %v3793_v34 = vmul.f32 %v5412_v37, %v9926_v38  ;;  %v5958_v50 = vld [vmem:[%s6633_s12 + $0x750] sm:$0xff]   ;;  %v9934_v40 = vld [vmem:[#allocation106_spill] sm:$0xff]  ;;  %v9935_v38 = vld [vmem:[#allocation261_spill] sm:$0xff] }
 0x49e   : > { %v3614_v8 = vmul.f32 %v9924_v12, %v9922_v55  ;;  %v4328_v10 = vadd.f32 %v4327_v17, %v3792_v32  ;;  %v5415_v39 = vunpack.c.l.bf16 %v5902_v20  ;;  %v5072_v5 = vunpack.c.h.bf16 %v8666_v22  ;;  %v8697_v17 = vld [vmem:[%s6633_s12 + $0x3c0] sm:$0xff]   ;;  %v8703_v55 = vpop.permute.xlu1 %3294  ;;  %3428 = vbcast.lane.b32.xlu1 %v8450_v6, 360  ;;  %v5907_v22 = vld [vmem:[%s6633_s12 + $0x5b8] sm:$0xff]  }
 0x49f   : > { %v4449_v2 = vadd.f32 %v4448_v13, %v3903_v54  ;;  %v5636_v7 = vunpack.c.h.bf16 %v5957_v28  ;;  %v3904_v1 = vmul.f32 %v5635_v36, %v8601_v18  ;;  %v5180_v26 = vunpack.c.h.bf16 %v8655_v19  ;;  %v9930_v28 = vld [vmem:[#allocation215_spill] sm:$0xff]  ;;  %v9931_v19 = vld [vmem:[#allocation97_spill] sm:$0xff]  ;;  %3160 = vbcast.lane.b32.xlu0 %v8454_v16, 360 }
 0x4a0   : > { %v3733_v11 = vmul.f32 %v5292_v25, %v9927_v53  ;;  %v4263_v14 = vadd.f32 %v4262_v3, %v3732_v33  ;;  %v5295_v42 = vunpack.c.l.bf16 %v5872_v15  ;;  %v9929_v56 = vunpack.c.h.bf16 %v9923_v46  ;;  %v9932_v54 = vld [vmem:[#allocation45_spill] sm:$0xff]  ;;  %v8705_v12 = vpop.permute.xlu0 %3290 }
 0x4a1   : > { %v4135_v41 = vadd.f32 %v4134_v35, %v3614_v8  ;;  %v3676_v32 = vmul.f32 %v5179_v57, %v9930_v28  ;;  %v4201_v18 = vadd.f32 %v4200_v43, %v3675_v44  ;;  %v9933_v13 = vunpack.c.l.bf16 %v9932_v54  ;;  %v5903_v8 = vld [vmem:[%s6633_s12 + $0x598] sm:$0xff]  }
 0x4a2   : > { %v3615_v37 = vmul.f32 %v9929_v56, %v9928_v21  ;;  %v5416_v25 = vunpack.c.h.bf16 %v5902_v20  ;;  %v3794_v33 = vmul.f32 %v5415_v39, %v9934_v40  ;;  %v4329_v3 = vadd.f32 %v4328_v10, %v3793_v34  ;;  %v9936_v34 = vld [vmem:[#allocation155_spill] sm:$0xff]  ;;  %v9937_v10 = vld [vmem:[#allocation50_spill] sm:$0xff]  ;;  %v9942_v56 = vld [vmem:[#allocation41_spill] sm:$0xff]  ;;  %3432 = vbcast.lane.b32.xlu1 %v8450_v6, 368 }
 0x4a3   : > { %v3558_v36 = vmul.f32 %v9933_v13, %v9931_v19  ;;  %v4073_v46 = vadd.f32 %v4072_v30, %v3557_v31  ;;  %v3905_v57 = vmul.f32 %v5636_v7, %v8599_v62  ;;  %v4450_v35 = vadd.f32 %v4449_v2, %v3904_v1  ;;  %v9939_v21 = vld [vmem:[#allocation214_spill] sm:$0xff]  ;;  %v5873_v7 = vld [vmem:[%s6633_s12 + $0x4a8] sm:$0xff]   ;;  %v9940_v1 = vld [vmem:[#allocation96_spill] sm:$0xff]  ;;  %v8722_v19 = vpop.permute.xlu1 %3302  ;;  %3164 = vbcast.lane.b32.xlu0 %v8454_v16, 368 }
 0x4a4   : > { %v5639_v51 = vunpack.c.l.bf16 %v5958_v50  ;;  %v5183_v44 = vunpack.c.l.bf16 %v8697_v17  ;;  %v5296_v43 = vunpack.c.h.bf16 %v5872_v15  ;;  %v3734_v53 = vmul.f32 %v5295_v42, %v9935_v38  ;;  %v8724_v13 = vpop.permute.xlu0 %3298 }
 0x4a5   : > { %v4264_v20 = vadd.f32 %v4263_v14, %v3733_v11  ;;  %v9938_v39 = vunpack.c.l.bf16 %v9937_v10  ;;  %v4136_v30 = vadd.f32 %v4135_v41, %v3615_v37  ;;  %v3677_v62 = vmul.f32 %v5180_v26, %v9939_v21  ;;  %v8727_v37 = vld [vmem:[%s6633_s12 + $0x2e8] sm:$0xff]  }
 0x4a6   : > { %v4202_v2 = vadd.f32 %v4201_v18, %v3676_v32  ;;  %v9941_v15 = vunpack.c.h.bf16 %v9932_v54  ;;  %v3795_v11 = vmul.f32 %v5416_v25, %v9942_v56  ;;  %v4330_v14 = vadd.f32 %v4329_v3, %v3794_v33  ;;  %v9943_v54 = vld [vmem:[#allocation260_spill] sm:$0xff]  ;;  %v5959_v33 = vld [vmem:[%s6633_s12 + $0x758] sm:$0xff]   ;;  %v9948_v56 = vld [vmem:[#allocation263_spill] sm:$0xff]  ;;  %3436 = vbcast.lane.b32.xlu1 %v8450_v6, 376 }
 0x4a7   : > { %v3616_v31 = vmul.f32 %v9938_v39, %v9936_v34  ;;  %v5419_v28 = vunpack.c.l.bf16 %v5903_v8  ;;  %v4074_v40 = vadd.f32 %v4073_v46, %v3558_v36  ;;  %v4451_v26 = vadd.f32 %v4450_v35, %v3905_v57  ;;  %v9944_v36 = vld [vmem:[#allocation154_spill] sm:$0xff]  ;;  %v8742_v21 = vpop.permute.xlu1 %3313  ;;  %3168 = vbcast.lane.b32.xlu0 %v8454_v16, 376 }
 0x4a8   : > { %v3559_v42 = vmul.f32 %v9941_v15, %v9940_v1  ;;  %v5640_v41 = vunpack.c.h.bf16 %v5958_v50  ;;  %v3906_v32 = vmul.f32 %v5639_v51, %v8622_v63  ;;  %v5184_v18 = vunpack.c.h.bf16 %v8697_v17  ;;  %v9946_v50 = vld [vmem:[#allocation217_spill] sm:$0xff]  ;;  %v5845_v51 = vld [vmem:[%s6633_s12 + $0x3c8] sm:$0xff]   ;;  %v8744_v1 = vpop.permute.xlu0 %3309 }
 0x4a9   : > { %v3735_v38 = vmul.f32 %v5296_v43, %v9943_v54  ;;  %v4265_v34 = vadd.f32 %v4264_v20, %v3734_v53  ;;  %v5299_v25 = vunpack.c.l.bf16 %v5873_v7  ;;  %v9945_v3 = vunpack.c.h.bf16 %v9937_v10  ;;  %v9947_v53 = vld [vmem:[#allocation109_spill] sm:$0xff]  ;;  %v5904_v10 = vld [vmem:[%s6633_s12 + $0x5a0] sm:$0xff]  }
 0x4aa   : > { %v4137_v57 = vadd.f32 %v4136_v30, %v3616_v31  ;;  %v3678_v35 = vmul.f32 %v5183_v44, %v9946_v50  ;;  %v4203_v63 = vadd.f32 %v4202_v2, %v3677_v62  ;;  %v5075_v17 = vunpack.c.l.bf16 %v8727_v37 }
 0x4ab   : > { %v3617_v46 = vmul.f32 %v9945_v3, %v9944_v36  ;;  %v5420_v43 = vunpack.c.h.bf16 %v5903_v8  ;;  %v3796_v20 = vmul.f32 %v5419_v28, %v9947_v53  ;;  %v4331_v39 = vadd.f32 %v4330_v14, %v3795_v11  ;;  %v9949_v11 = vld [vmem:[#allocation157_spill] sm:$0xff]  ;;  %v9950_v36 = vld [vmem:[#allocation216_spill] sm:$0xff]  ;;  %v8761_v16 = vpop.permute.xlu1 %3321 }
 0x4ac   : > { %v5076_v15 = vunpack.c.h.bf16 %v8727_v37  ;;  %v3907_v31 = vmul.f32 %v5640_v41, %v8620_v49  ;;  %v4452_v30 = vadd.f32 %v4451_v26, %v3906_v32  ;;  %v5643_v44 = vunpack.c.l.bf16 %v5959_v33  ;;  %v5874_v49 = vld [vmem:[%s6633_s12 + $0x4b0] sm:$0xff]   ;;  %v9951_v26 = vld [vmem:[#allocation99_spill] sm:$0xff]  ;;  %v9952_v41 = vld [vmem:[#allocation110_spill] sm:$0xff]  ;;  %v8763_v53 = vpop.permute.xlu0 %3317 }
 0x4ad   : > { %v5187_v62 = vunpack.c.l.bf16 %v5845_v51  ;;  %v5300_v2 = vunpack.c.h.bf16 %v5873_v7  ;;  %v3736_v54 = vmul.f32 %v5299_v25, %v9948_v56  ;;  %v4266_v8 = vadd.f32 %v4265_v34, %v3735_v38  ;;  %v9954_v25 = vld [vmem:[#allocation40_spill] sm:$0xff] }
 0x4ae   : > { %v3618_v14 = vmul.f32 %v5063_v48, %v9949_v11  ;;  %v4138_v28 = vadd.f32 %v4137_v57, %v3617_v46  ;;  %v3679_v3 = vmul.f32 %v5184_v18, %v9950_v36  ;;  %v4204_v50 = vadd.f32 %v4203_v63, %v3678_v35  ;;  %v9955_v63 = vld [vmem:[#allocation262_spill] sm:$0xff] }
 0x4af   : > { %v9953_v7 = vunpack.c.l.bf16 %v9952_v41  ;;  %v3797_v38 = vmul.f32 %v5420_v43, %v9954_v25  ;;  %v4332_v34 = vadd.f32 %v4331_v39, %v3796_v20  ;;  %v5423_v6 = vunpack.c.l.bf16 %v5904_v10  ;;  %v5960_v43 = vld [vmem:[%s6633_s12 + $0x760] sm:$0xff]   ;;  %v9956_v20 = vld [vmem:[#allocation156_spill] sm:$0xff] }
 0x4b0   : > { %v4075_v48 = vadd.f32 %v4074_v40, %v3559_v42  ;;  %v4453_v46 = vadd.f32 %v4452_v30, %v3907_v31  ;;  %v5644_v57 = vunpack.c.h.bf16 %v5959_v33  ;;  %v3908_v18 = vmul.f32 %v5643_v44, %v8642_v4  ;;  %v5846_v40 = vld [vmem:[%s6633_s12 + $0x3d0] sm:$0xff]   ;;  %v9958_v33 = vld [vmem:[#allocation98_spill] sm:$0xff]  ;;  %v9960_v30 = vld [vmem:[#allocation43_spill] sm:$0xff] }
 0x4b1   : > { %v3560_v32 = vmul.f32 %v9953_v7, %v9951_v26  ;;  %v5188_v35 = vunpack.c.h.bf16 %v5845_v51  ;;  %v3737_v56 = vmul.f32 %v5300_v2, %v9955_v63  ;;  %v4267_v11 = vadd.f32 %v4266_v8, %v3736_v54  ;;  %v9957_v7 = vld [vmem:[#allocation219_spill] sm:$0xff]  ;;  %v8777_v54 = vpop.permute.xlu1 %3325  ;;  %v8779_v8 = vpop.permute.xlu0 %3057  ;;  %v9961_v63 = vld [vmem:[#allocation265_spill] sm:$0xff] }
 0x4b2   : > { %v5303_v36 = vunpack.c.l.bf16 %v5874_v49  ;;  %v3619_v39 = vmul.f32 %v5064_v9, %v9956_v20  ;;  %v4139_v26 = vadd.f32 %v4138_v28, %v3618_v14  ;;  %v3680_v25 = vmul.f32 %v5187_v62, %v9957_v7  ;;  %v8782_v9 = vld [vmem:[%s6633_s12 + $0x2f0] sm:$0xff]   ;;  %v5905_v14 = vld [vmem:[%s6633_s12 + $0x5a8] sm:$0xff]   ;;  %v9963_v7 = vld [vmem:[#allocation218_spill] sm:$0xff] }
 0x4b3   : > { %v4205_v42 = vadd.f32 %v4204_v50, %v3679_v3  ;;  %v9959_v4 = vunpack.c.h.bf16 %v9952_v41  ;;  %v5424_v31 = vunpack.c.h.bf16 %v5904_v10  ;;  %v3798_v44 = vmul.f32 %v5423_v6, %v9960_v30  ;;  %v9962_v6 = vld [vmem:[#allocation159_spill] sm:$0xff] }
 0x4b4   : > { %v4333_v2 = vadd.f32 %v4332_v34, %v3797_v38  ;;  %v4076_v52 = vadd.f32 %v4075_v48, %v3560_v32  ;;  %v3909_v62 = vmul.f32 %v5644_v57, %v8640_v0  ;;  %v4454_v28 = vadd.f32 %v4453_v46, %v3908_v18  ;;  %v5875_v48 = vld [vmem:[%s6633_s12 + $0x4b8] sm:$0xff]  }
 0x4b5   : > { %v3561_v51 = vmul.f32 %v9959_v4, %v9958_v33  ;;  %v5647_v3 = vunpack.c.l.bf16 %v5960_v43  ;;  %v5191_v50 = vunpack.c.l.bf16 %v5846_v40  ;;  %v5304_v41 = vunpack.c.h.bf16 %v5874_v49  ;;  %v9964_v0 = vld [vmem:[#allocation73_spill] sm:$0xff]  ;;  %v8794_v49 = vpop.permute.xlu1 %3329 }
 0x4b6   : > { %v3738_v10 = vmul.f32 %v5303_v36, %v9961_v63  ;;  %v4268_v20 = vadd.f32 %v4267_v11, %v3737_v56  ;;  %v3620_v38 = vmul.f32 %v5067_v23, %v9962_v6  ;;  %v4140_v34 = vadd.f32 %v4139_v26, %v3619_v39  ;;  %v8796_v56 = vpop.permute.xlu0 %3061  ;;  %v9965_v26 = vld [vmem:[#allocation264_spill] sm:$0xff]  ;;  %v9967_v6 = vld [vmem:[#allocation221_spill] sm:$0xff] }
 0x4b7   : > { %v3681_v33 = vmul.f32 %v5188_v35, %v9963_v7  ;;  %v4206_v32 = vadd.f32 %v4205_v42, %v3680_v25  ;;  %v3799_v46 = vmul.f32 %v5424_v31, %v9964_v0  ;;  %v4334_v57 = vadd.f32 %v4333_v2, %v3798_v44  ;;  %v5961_v31 = vld [vmem:[%s6633_s12 + $0x768] sm:$0xff]   ;;  %v9966_v44 = vld [vmem:[#allocation158_spill] sm:$0xff]  ;;  %v8807_v11 = vld [vmem:[%s6633_s12 + $0x3d8] sm:$0xff]  }
 0x4b8   : > { %v5427_v18 = vunpack.c.l.bf16 %v5905_v14  ;;  %v4455_v23 = vadd.f32 %v4454_v28, %v3909_v62  ;;  %v5648_v36 = vunpack.c.h.bf16 %v5960_v43  ;;  %v3910_v35 = vmul.f32 %v5647_v3, %v8663_v61  ;;  %v9968_v43 = vld [vmem:[#allocation100_spill] sm:$0xff]  ;;  %v9969_v62 = vld [vmem:[#allocation74_spill] sm:$0xff]  ;;  %v9971_v3 = vld [vmem:[#allocation75_spill] sm:$0xff] }
 0x4b9   : > { %v5192_v39 = vunpack.c.h.bf16 %v5846_v40  ;;  %v3739_v25 = vmul.f32 %v5304_v41, %v9965_v26  ;;  %v4269_v42 = vadd.f32 %v4268_v20, %v3738_v10  ;;  %v5307_v30 = vunpack.c.l.bf16 %v5875_v48  ;;  %v8815_v20 = vpop.permute.xlu1 %3333 }
 0x4ba   : > { %v3621_v2 = vmul.f32 %v5068_v59, %v9966_v44  ;;  %v4141_v63 = vadd.f32 %v4140_v34, %v3620_v38  ;;  %v3682_v7 = vmul.f32 %v5191_v50, %v9967_v6  ;;  %v4207_v0 = vadd.f32 %v4206_v32, %v3681_v33  ;;  %v8817_v58 = vpop.permute.xlu0 %3065  ;;  %v9972_v59 = vld [vmem:[#allocation101_spill] sm:$0xff]  ;;  %v5906_v34 = vld [vmem:[%s6633_s12 + $0x5b0] sm:$0xff]   ;;  %v9974_v6 = vld [vmem:[#allocation267_spill] sm:$0xff] }
 0x4bb   : > { %v9970_v61 = vunpack.c.h.bf16 %v9969_v62  ;;  %v5428_v28 = vunpack.c.h.bf16 %v5905_v14  ;;  %v3800_v41 = vmul.f32 %v5427_v18, %v9971_v3  ;;  %v4335_v10 = vadd.f32 %v4334_v57, %v3799_v46  ;;  %v9975_v57 = vld [vmem:[#allocation161_spill] sm:$0xff] }
 0x4bc   : > { %v9973_v50 = vunpack.c.l.bf16 %v9969_v62  ;;  %v3911_v33 = vmul.f32 %v5648_v36, %v8661_v47  ;;  %v4456_v32 = vadd.f32 %v4455_v23, %v3910_v35  ;;  %v5651_v26 = vunpack.c.l.bf16 %v5961_v31  ;;  %v9976_v62 = vld [vmem:[#allocation220_spill] sm:$0xff]  ;;  %v9977_v23 = vld [vmem:[#allocation111_spill] sm:$0xff] }
 0x4bd   : > { %v8812_v40 = vmul.f32 %v9970_v61, %v9968_v43  ;;  %v5195_v44 = vunpack.c.l.bf16 %v8807_v11  ;;  %v5308_v14 = vunpack.c.h.bf16 %v5875_v48  ;;  %v3740_v18 = vmul.f32 %v5307_v30, %v9974_v6  ;;  %v8832_v4 = vpop.permute.xlu1 %3337 }
 0x4be   : > { %v3562_v38 = vmul.f32 %v9973_v50, %v9972_v59  ;;  %v4270_v46 = vadd.f32 %v4269_v42, %v3739_v25  ;;  %v3622_v43 = vmul.f32 %v5071_v27, %v9975_v57  ;;  %v4142_v61 = vadd.f32 %v4141_v63, %v3621_v2  ;;  %v5876_v50 = vld [vmem:[%s6633_s12 + $0x4c0] sm:$0xff]   ;;  %v8834_v30 = vpop.permute.xlu0 %3069  ;;  %v6117_v63 = vld [vmem:[%s6640_s21 + $0x8] sm:$0xff] }
 0x4bf   : > { %v3683_v3 = vmul.f32 %v5192_v39, %v9976_v62  ;;  %v4208_v59 = vadd.f32 %v4207_v0, %v3682_v7  ;;  %v4077_v47 = vadd.f32 %v4076_v52, %v3561_v51  ;;  %v3801_v36 = vmul.f32 %v5428_v28, %v9977_v23  ;;  %v6116_v2 = vld [vmem:[%s6640_s21] sm:$0xff] }
 0x4c0   : > { %v4336_v35 = vadd.f32 %v4335_v10, %v3800_v41  ;;  %v5431_v48 = vunpack.c.l.bf16 %v5906_v34  ;;  %v4457_v25 = vadd.f32 %v4456_v32, %v3911_v33  ;;  %v5652_v42 = vunpack.c.h.bf16 %v5961_v31  ;;  %v9978_v51 = vld [vmem:[#allocation266_spill] sm:$0xff]  ;;  %v5962_v41 = vld [vmem:[%s6633_s12 + $0x770] sm:$0xff]   ;;  %v9980_v33 = vld [vmem:[#allocation223_spill] sm:$0xff] }
 0x4c1   : > { %v3912_v27 = vmul.f32 %v5651_v26, %v8683_v24  ;;  %v4528_v39 = vadd.f32 %v6117_v63, %v6116_v2  ;;  %v5196_v7 = vunpack.c.h.bf16 %v8807_v11  ;;  %v3741_v52 = vmul.f32 %v5308_v14, %v9978_v51  ;;  %v9979_v10 = vld [vmem:[#allocation160_spill] sm:$0xff]  ;;  %v5848_v26 = vld [vmem:[%s6633_s12 + $0x3e0] sm:$0xff]   ;;  %v9981_v11 = vld [vmem:[#allocation113_spill] sm:$0xff]  ;;  %v8848_v14 = vpop.permute.xlu1 %3341 }
 0x4c2   : > { %v4271_v0 = vadd.f32 %v4270_v46, %v3740_v18  ;;  %v5311_v28 = vunpack.c.l.bf16 %v5876_v50  ;;  %v3623_v6 = vmul.f32 %v5072_v5, %v9979_v10  ;;  %v4143_v31 = vadd.f32 %v4142_v61, %v3622_v43  ;;  %v8850_v18 = vpop.permute.xlu0 %3073  ;;  %v8853_v46 = vld [vmem:[%s6633_s12 + $0x2f8] sm:$0xff]   ;;  %v9984_v51 = vld [vmem:[#allocation222_spill] sm:$0xff] }
 0x4c3   : > { %v3684_v24 = vmul.f32 %v5195_v44, %v9980_v33  ;;  %v4209_v32 = vadd.f32 %v4208_v59, %v3683_v3  ;;  %v4078_v57 = vadd.f32 %v4077_v47, %v3562_v38  ;;  %v5432_v62 = vunpack.c.h.bf16 %v5906_v34  ;;  %v6118_v44 = vld [vmem:[%s6640_s21 + $0x10] sm:$0xff]  ;;  %v9982_v34 = vld [vmem:[#allocation269_spill] sm:$0xff] }
 0x4c4   : > { %v3802_v23 = vmul.f32 %v5431_v48, %v9981_v11  ;;  %v4337_v2 = vadd.f32 %v4336_v35, %v3801_v36  ;;  %v3913_v5 = vmul.f32 %v5652_v42, %v8681_v60  ;;  %v4458_v43 = vadd.f32 %v4457_v25, %v3912_v27  ;;  %v9983_v36 = vld [vmem:[#allocation163_spill] sm:$0xff]  ;;  %v9985_v25 = vld [vmem:[#allocation44_spill] sm:$0xff] }
 0x4c5   : > { %v5655_v61 = vunpack.c.l.bf16 %v5962_v41  ;;  %v4529_v3 = vadd.f32 %v6118_v44, %v4528_v39  ;;  %v5199_v59 = vunpack.c.l.bf16 %v5848_v26  ;;  %v5312_v38 = vunpack.c.h.bf16 %v5876_v50  ;;  %v5877_v11 = vld [vmem:[%s6633_s12 + $0x4c8] sm:$0xff]   ;;  %v8866_v50 = vpop.permute.xlu1 %3345 }
 0x4c6   : > { %v3742_v47 = vmul.f32 %v5311_v28, %v9982_v34  ;;  %v4272_v48 = vadd.f32 %v4271_v0, %v3741_v52  ;;  %v3624_v35 = vmul.f32 %v5075_v17, %v9983_v36  ;;  %v4144_v63 = vadd.f32 %v4143_v31, %v3623_v6  ;;  %v8868_v52 = vpop.permute.xlu0 %3077  ;;  %v9986_v31 = vld [vmem:[#allocation268_spill] sm:$0xff]  ;;  %v9988_v36 = vld [vmem:[#allocation225_spill] sm:$0xff] }
 0x4c7   : > { %v3685_v10 = vmul.f32 %v5196_v7, %v9984_v51  ;;  %v4210_v33 = vadd.f32 %v4209_v32, %v3684_v24  ;;  %v5083_v60 = vunpack.c.l.bf16 %v8853_v46  ;;  %v3803_v42 = vmul.f32 %v5432_v62, %v9985_v25  ;;  %v5963_v62 = vld [vmem:[%s6633_s12 + $0x778] sm:$0xff]  }
 0x4c8   : > { %v4338_v27 = vadd.f32 %v4337_v2, %v3802_v23  ;;  %v5435_v39 = vunpack.c.l.bf16 %v5907_v22  ;;  %v4459_v0 = vadd.f32 %v4458_v43, %v3913_v5  ;;  %v5656_v28 = vunpack.c.h.bf16 %v5962_v41  ;;  %v9987_v23 = vld [vmem:[#allocation162_spill] sm:$0xff]  ;;  %v5849_v41 = vld [vmem:[%s6633_s12 + $0x3e8] sm:$0xff]  }
 0x4c9   : > { %v3914_v17 = vmul.f32 %v5655_v61, %v8705_v12  ;;  %v4530_v7 = vadd.f32 %v8446_v45, %v4529_v3  ;;  %v5200_v6 = vunpack.c.h.bf16 %v5848_v26  ;;  %v3743_v24 = vmul.f32 %v5312_v38, %v9986_v31  ;;  %v9989_v43 = vld [vmem:[#allocation103_spill] sm:$0xff]  ;;  %v9990_v12 = vld [vmem:[#allocation77_spill] sm:$0xff]  ;;  %v9992_v3 = vld [vmem:[#allocation112_spill] sm:$0xff] }
 0x4ca   : > { %v4273_v32 = vadd.f32 %v4272_v48, %v3742_v47  ;;  %v5315_v44 = vunpack.c.l.bf16 %v5877_v11  ;;  %v3625_v2 = vmul.f32 %v5076_v15, %v9987_v23  ;;  %v4145_v34 = vadd.f32 %v4144_v63, %v3624_v35  ;;  %v8883_v47 = vpop.permute.xlu1 %3349  ;;  %v8885_v48 = vpop.permute.xlu0 %3081  ;;  %v5908_v15 = vld [vmem:[%s6633_s12 + $0x5c0] sm:$0xff]   ;;  %v9993_v31 = vld [vmem:[#allocation271_spill] sm:$0xff] }
 0x4cb   : > { %v3686_v51 = vmul.f32 %v5199_v59, %v9988_v36  ;;  %v4211_v5 = vadd.f32 %v4210_v33, %v3685_v10  ;;  %v9991_v61 = vunpack.c.l.bf16 %v9990_v12  ;;  %v5436_v26 = vunpack.c.h.bf16 %v5907_v22  ;;  %4531 = vadd.xlane.f32.xlu0 %v4530_v7 }
 0x4cc   : > { %v3804_v38 = vmul.f32 %v5435_v39, %v9992_v3  ;;  %v4339_v25 = vadd.f32 %v4338_v27, %v3803_v42  ;;  %v4079_v37 = vadd.f32 %v4078_v57, %v8812_v40  ;;  %v3915_v59 = vmul.f32 %v5656_v28, %v8703_v55  ;;  %v9994_v39 = vld [vmem:[#allocation165_spill] sm:$0xff]  ;;  %v5878_v40 = vld [vmem:[%s6633_s12 + $0x4d0] sm:$0xff]   ;;  %v9997_v57 = vld [vmem:[#allocation102_spill] sm:$0xff] }
 0x4cd   : > { %v3564_v45 = vmul.f32 %v9991_v61, %v9989_v43  ;;  %v4460_v35 = vadd.f32 %v4459_v0, %v3914_v17  ;;  %v5659_v63 = vunpack.c.l.bf16 %v5963_v62  ;;  %v5203_v10 = vunpack.c.l.bf16 %v5849_v41  ;;  %v9996_v43 = vld [vmem:[#allocation224_spill] sm:$0xff]  ;;  %v9999_v28 = vld [vmem:[#allocation47_spill] sm:$0xff] }
 0x4ce   : > { %v5316_v33 = vunpack.c.h.bf16 %v5877_v11  ;;  %v3744_v22 = vmul.f32 %v5315_v44, %v9993_v31  ;;  %v4274_v23 = vadd.f32 %v4273_v32, %v3743_v24  ;;  %v9995_v42 = vunpack.c.l.bf16 %v8782_v9  ;;  %v8900_v24 = vpop.permute.xlu1 %3353  ;;  %v8902_v32 = vpop.permute.xlu0 %3085 }
 0x4cf   : > { %v4146_v36 = vadd.f32 %v4145_v34, %v3625_v2  ;;  %v3687_v61 = vmul.f32 %v5200_v6, %v9996_v43  ;;  %v4212_v3 = vadd.f32 %v4211_v5, %v3686_v51  ;;  %v9998_v55 = vunpack.c.h.bf16 %v9990_v12  ;;  %v10000_v5 = vld [vmem:[#allocation270_spill] sm:$0xff] }
 0x4d0   : > { %v3626_v27 = vmul.f32 %v9995_v42, %v9994_v39  ;;  %v3805_v17 = vmul.f32 %v5436_v26, %v9999_v28  ;;  %v4340_v11 = vadd.f32 %v4339_v25, %v3804_v38  ;;  %v5439_v7 = vunpack.c.l.bf16 %v5908_v15  ;;  %v5964_v42 = vld [vmem:[%s6633_s12 + $0x780] sm:$0xff]   ;;  %v10001_v26 = vld [vmem:[#allocation164_spill] sm:$0xff] }
 0x4d1   : > { %v3565_v0 = vmul.f32 %v9998_v55, %v9997_v57  ;;  %v4080_v44 = vadd.f32 %v4079_v37, %v3564_v45  ;;  %v4461_v2 = vadd.f32 %v4460_v35, %v3915_v59  ;;  %v5660_v34 = vunpack.c.h.bf16 %v5963_v62  ;;  %v10003_v57 = vld [vmem:[#allocation227_spill] sm:$0xff]  ;;  %v5850_v45 = vld [vmem:[%s6633_s12 + $0x3f0] sm:$0xff]  }
 0x4d2   : > { %v3916_v6 = vmul.f32 %v5659_v63, %v8724_v13  ;;  %v5204_v51 = vunpack.c.h.bf16 %v5849_v41  ;;  %v3745_v31 = vmul.f32 %v5316_v33, %v10000_v5  ;;  %v4275_v12 = vadd.f32 %v4274_v23, %v3744_v22  ;;  %v10004_v13 = vld [vmem:[#allocation79_spill] sm:$0xff]  ;;  %v8914_v35 = vpop.permute.xlu1 %3357  ;;  %v8916_v63 = vpop.permute.xlu0 %3089 }
 0x4d3   : > { %v5319_v39 = vunpack.c.l.bf16 %v5878_v40  ;;  %v10002_v38 = vunpack.c.h.bf16 %v8782_v9  ;;  %v4147_v43 = vadd.f32 %v4146_v36, %v3626_v27  ;;  %v3688_v55 = vmul.f32 %v5203_v10, %v10003_v57  ;;  %v5909_v22 = vld [vmem:[%s6633_s12 + $0x5c8] sm:$0xff]   ;;  %v10009_v57 = vld [vmem:[#allocation46_spill] sm:$0xff] }
 0x4d4   : > { %v4213_v28 = vadd.f32 %v4212_v3, %v3687_v61  ;;  %v5084_v62 = vunpack.c.h.bf16 %v8853_v46  ;;  %v5440_v37 = vunpack.c.h.bf16 %v5908_v15  ;;  %v3806_v41 = vmul.f32 %v5439_v7, %v10004_v13  ;;  %v10005_v61 = vld [vmem:[#allocation272_spill] sm:$0xff]  ;;  %v10006_v15 = vld [vmem:[#allocation167_spill] sm:$0xff]  ;;  %v10007_v7 = vld [vmem:[#allocation226_spill] sm:$0xff] }
 0x4d5   : > { %v3627_v25 = vmul.f32 %v10002_v38, %v10001_v26  ;;  %v4341_v59 = vadd.f32 %v4340_v11, %v3805_v17  ;;  %v4081_v33 = vadd.f32 %v4080_v44, %v3565_v0  ;;  %v3917_v9 = vmul.f32 %v5660_v34, %v8722_v19  ;;  %v5879_v0 = vld [vmem:[%s6633_s12 + $0x4d8] sm:$0xff]   ;;  %v10008_v44 = vld [vmem:[#allocation76_spill] sm:$0xff] }
 0x4d6   : > { %v4462_v23 = vadd.f32 %v4461_v2, %v3916_v6  ;;  %v5663_v27 = vunpack.c.l.bf16 %v5964_v42  ;;  %v5207_v10 = vunpack.c.l.bf16 %v5850_v45  ;;  %v5320_v36 = vunpack.c.h.bf16 %v5878_v40  ;;  %v10011_v2 = vld [vmem:[#allocation115_spill] sm:$0xff] }
 0x4d7   : > { %v3746_v3 = vmul.f32 %v5319_v39, %v10005_v61  ;;  %v4276_v5 = vadd.f32 %v4275_v12, %v3745_v31  ;;  %v3628_v17 = vmul.f32 %v5083_v60, %v10006_v15  ;;  %v4148_v11 = vadd.f32 %v4147_v43, %v3627_v25  ;;  %v8931_v31 = vpop.permute.xlu1 %3361  ;;  %v8933_v12 = vpop.permute.xlu0 %3093  ;;  %v10012_v43 = vld [vmem:[#allocation55_spill] sm:$0xff]  ;;  %v10014_v15 = vld [vmem:[#allocation229_spill] sm:$0xff] }
 0x4d8   : > { %v3689_v26 = vmul.f32 %v5204_v51, %v10007_v7  ;;  %v4214_v38 = vadd.f32 %v4213_v28, %v3688_v55  ;;  %v8928_v19 = vadd.f32 %v10009_v57, %v10008_v44  ;;  %v3807_v34 = vmul.f32 %v5440_v37, %v10011_v2  ;;  %v5965_v37 = vld [vmem:[%s6633_s12 + $0x788] sm:$0xff]   ;;  %v5851_v57 = vld [vmem:[%s6633_s12 + $0x3f8] sm:$0xff]  }
 0x4d9   : > { %v4342_v40 = vadd.f32 %v4341_v59, %v3806_v41  ;;  %v5443_v6 = vunpack.c.l.bf16 %v5909_v22  ;;  %v4082_v46 = vrot.slane %v4081_v33, 4  ;;  %v5664_v60 = vunpack.c.h.bf16 %v5964_v42  ;;  %v10013_v41 = vld [vmem:[#allocation166_spill] sm:$0xff]  ;;  %v5967_v42 = vld [vmem:[%s6633_s12 + $0x798] sm:$0xff]  }
 0x4da   : > { %10010 = vst [vmem:[#allocation82_spill] sm:$0xff] %v8928_v19  ;;  %v3918_v51 = vmul.f32 %v5663_v27, %v8744_v1  ;;  %v4463_v39 = vadd.f32 %v4462_v23, %v3917_v9  ;;  %v5208_v25 = vunpack.c.h.bf16 %v5850_v45  ;;  %v3747_v55 = vmul.f32 %v5320_v36, %v10012_v43  ;;  %v10015_v1 = vld [vmem:[#allocation48_spill] sm:$0xff] }
 0x4db   : > { %v4277_v28 = vadd.f32 %v4276_v5, %v3746_v3  ;;  %v5323_v13 = vunpack.c.l.bf16 %v5879_v0  ;;  %v3629_v59 = vmul.f32 %v5084_v62, %v10013_v41  ;;  %v4149_v61 = vadd.f32 %v4148_v11, %v3628_v17  ;;  %v8943_v23 = vpop.permute.xlu1 %3365  ;;  %v8945_v27 = vpop.permute.xlu0 %3097  ;;  %v8950_v62 = vld [vmem:[%s6633_s12 + $0x4e0] sm:$0xff]   ;;  %v5910_v3 = vld [vmem:[%s6633_s12 + $0x5d0] sm:$0xff]   ;;  %v8959_v41 = vld [vmem:[%s6633_s12 + $0x4e8] sm:$0xff]  }
 0x4dc   : > { %v3690_v7 = vmul.f32 %v5207_v10, %v10014_v15  ;;  %v4215_v44 = vadd.f32 %v4214_v38, %v3689_v26  ;;  %v5444_v2 = vunpack.c.h.bf16 %v5909_v22  ;;  %v3808_v9 = vmul.f32 %v5443_v6, %v10015_v1  ;;  %v10017_v26 = vld [vmem:[#allocation54_spill] sm:$0xff]  ;;  %v10019_v6 = vld [vmem:[#allocation228_spill] sm:$0xff] }
 0x4dd   : > { %v4343_v45 = vadd.f32 %v4342_v40, %v3807_v34  ;;  %v8947_v36 = vadd.f32 %v4082_v46, %v4081_v33  ;;  %v3919_v10 = vmul.f32 %v5664_v60, %v8742_v21  ;;  %v4464_v5 = vadd.f32 %v4463_v39, %v3918_v51  ;;  %v8963_v21 = vld [vmem:[%s6633_s12 + $0x4f0] sm:$0xff]   ;;  %v10020_v60 = vld [vmem:[#allocation78_spill] sm:$0xff] }
 0x4de   : > { %v5667_v17 = vunpack.c.l.bf16 %v5965_v37  ;;  %v5211_v11 = vunpack.c.l.bf16 %v5851_v57  ;;  %v5324_v22 = vunpack.c.h.bf16 %v5879_v0  ;;  %v3748_v38 = vmul.f32 %v5323_v13, %v10017_v26  ;;  %v5934_v26 = vld [vmem:[%s6633_s12 + $0x690] sm:$0xff]  }
 0x4df   : > { %10016 = vst [vmem:[#allocation52_spill] sm:$0xff] %v8947_v36  ;;  %v4278_v34 = vadd.f32 %v4277_v28, %v3747_v55  ;;  %v8955_v40 = vadd.f32 %v4149_v61, %v3629_v59  ;;  %v3691_v43 = vmul.f32 %v5208_v25, %v10019_v6  ;;  %v4216_v33 = vadd.f32 %v4215_v44, %v3690_v7  ;;  %v8966_v13 = vpop.permute.xlu1 %3369  ;;  %v8968_v55 = vpop.permute.xlu0 %3101  ;;  %v8972_v28 = vld [vmem:[%s6633_s12 + $0x4f8] sm:$0xff]   ;;  %v10022_v6 = vld [vmem:[#allocation231_spill] sm:$0xff]  ;;  %v9001_v36 = vld [vmem:[%s6633_s12 + $0x5e0] sm:$0xff]  }
 0x4e0   : > { %v5212_v46 = vunpack.c.h.bf16 %v5851_v57  ;;  %v5327_v15 = vunpack.c.l.bf16 %v8950_v62  ;;  %v3809_v0 = vmul.f32 %v5444_v2, %v10020_v60  ;;  %v4344_v51 = vadd.f32 %v4343_v45, %v3808_v9  ;;  %v10021_v44 = vld [vmem:[#allocation25_spill] sm:$0xff]  ;;  %v5966_v45 = vld [vmem:[%s6633_s12 + $0x790] sm:$0xff]  }
 0x4e1   : > { %10018 = vst [vmem:[#allocation121_spill] sm:$0xff] %v8955_v40  ;;  %v5447_v39 = vunpack.c.l.bf16 %v5910_v3  ;;  %v5328_v25 = vunpack.c.h.bf16 %v8950_v62  ;;  %v5668_v59 = vunpack.c.h.bf16 %v5965_v37  ;;  %v3920_v61 = vmul.f32 %v5667_v17, %v8763_v53  ;;  %v10024_v37 = vld [vmem:[#allocation230_spill] sm:$0xff]  ;;  %v10026_v53 = vld [vmem:[#allocation57_spill] sm:$0xff] }
 0x4e2   : > { %v4465_v7 = vadd.f32 %v4464_v5, %v3919_v10  ;;  %v3749_v57 = vmul.f32 %v5324_v22, %v10021_v44  ;;  %v4279_v1 = vadd.f32 %v4278_v34, %v3748_v38  ;;  %v3692_v60 = vmul.f32 %v5211_v11, %v10022_v6  ;;  %v10023_v5 = vld [vmem:[#allocation117_spill] sm:$0xff]  ;;  %v5936_v40 = vld [vmem:[%s6633_s12 + $0x6a0] sm:$0xff]  }
 0x4e3   : > { %v4217_v62 = vadd.f32 %v4216_v33, %v3691_v43  ;;  %v5448_v10 = vunpack.c.h.bf16 %v5910_v3  ;;  %v3810_v17 = vmul.f32 %v5447_v39, %v10023_v5  ;;  %v4345_v22 = vadd.f32 %v4344_v51, %v3809_v0  ;;  %v5911_v38 = vld [vmem:[%s6633_s12 + $0x5d8] sm:$0xff]   ;;  %v8986_v34 = vpop.permute.xlu1 %3376  ;;  %v8988_v44 = vpop.permute.xlu0 %3108  ;;  %v5968_v0 = vld [vmem:[%s6633_s12 + $0x7a0] sm:$0xff]  }
 0x4e4   : > { %v3921_v11 = vmul.f32 %v5668_v59, %v8761_v16  ;;  %v4466_v43 = vadd.f32 %v4465_v7, %v3920_v61  ;;  %v5671_v33 = vunpack.c.l.bf16 %v5966_v45  ;;  %v5543_v6 = vunpack.c.l.bf16 %v5934_v26  ;;  %v5935_v51 = vld [vmem:[%s6633_s12 + $0x698] sm:$0xff]  }
 0x4e5   : > { %v8993_v2 = vmul.f32 %v5212_v46, %v10024_v37  ;;  %v3750_v3 = vmul.f32 %v5327_v15, %v10026_v53  ;;  %v4280_v9 = vadd.f32 %v4279_v1, %v3749_v57  ;;  %v8998_v39 = vadd.f32 %v4217_v62, %v3692_v60  ;;  %v10028_v61 = vld [vmem:[#allocation169_spill] sm:$0xff] }
 0x4e6   : > { %v5451_v5 = vunpack.c.l.bf16 %v5911_v38  ;;  %v5672_v16 = vunpack.c.h.bf16 %v5966_v45  ;;  %v5544_v59 = vunpack.c.h.bf16 %v5934_v26  ;;  %v3811_v7 = vmul.f32 %v5448_v10, %v10028_v61  ;;  %v10029_v45 = vld [vmem:[#allocation24_spill] sm:$0xff] }
 0x4e7   : > { %10025 = vst [vmem:[#allocation175_spill] sm:$0xff] %v8993_v2  ;;  %10027 = vst [vmem:[#allocation85_spill] sm:$0xff] %v8998_v39  ;;  %v4346_v46 = vadd.f32 %v4345_v22, %v3810_v17  ;;  %v5452_v37 = vunpack.c.h.bf16 %v5911_v38  ;;  %v5675_v19 = vunpack.c.l.bf16 %v5967_v42  ;;  %v9004_v15 = vpop.permute.xlu1 %3380  ;;  %v9006_v57 = vpop.permute.xlu0 %3112  ;;  %v3922_v1 = vmul.f32 %v5671_v33, %v8777_v54  ;;  %v9016_v22 = vld [vmem:[%s6633_s12 + $0x5e8] sm:$0xff]  }
 0x4e8   : > { %v4467_v60 = vadd.f32 %v4466_v43, %v3921_v11  ;;  %v3858_v62 = vmul.f32 %v5543_v6, %v8779_v8  ;;  %v5547_v53 = vunpack.c.l.bf16 %v5935_v51  ;;  %v3751_v26 = vmul.f32 %v5328_v25, %v10029_v45  ;;  %v10030_v43 = vld [vmem:[#allocation81_spill] sm:$0xff] }
 0x4e9   : > { %v4281_v39 = vadd.f32 %v4280_v9, %v3750_v3  ;;  %v5455_v17 = vunpack.c.l.bf16 %v9001_v36  ;;  %v3923_v38 = vmul.f32 %v5672_v16, %v8794_v49  ;;  %v3859_v54 = vmul.f32 %v5544_v59, %v8796_v56  ;;  %v5969_v16 = vld [vmem:[%s6633_s12 + $0x7a8] sm:$0xff]  }
 0x4ea   : > { %v5676_v11 = vunpack.c.h.bf16 %v5967_v42  ;;  %v5548_v8 = vunpack.c.h.bf16 %v5935_v51  ;;  %v3812_v33 = vmul.f32 %v5451_v5, %v10030_v43  ;;  %v4347_v6 = vadd.f32 %v4346_v46, %v3811_v7  ;;  %v5937_v56 = vld [vmem:[%s6633_s12 + $0x6a8] sm:$0xff]  }
 0x4eb   : > { %v5679_v61 = vunpack.c.l.bf16 %v5968_v0  ;;  %v5551_v25 = vunpack.c.l.bf16 %v5936_v40  ;;  %v9021_v9 = vpop.permute.xlu1 %3384  ;;  %v9023_v3 = vpop.permute.xlu0 %3116  ;;  %v4468_v45 = vadd.f32 %v4467_v60, %v3922_v1  ;;  %v4399_v10 = vadd.f32 %v8440_v29, %v3858_v62  ;;  %v10031_v60 = vld [vmem:[#allocation171_spill] sm:$0xff] }
 0x4ec   : > { %v3924_v2 = vmul.f32 %v5675_v19, %v8815_v20  ;;  %v3860_v49 = vmul.f32 %v5547_v53, %v8817_v58  ;;  %v5459_v51 = vunpack.c.l.bf16 %v9016_v22  ;;  %v5680_v5 = vunpack.c.h.bf16 %v5968_v0 }
 0x4ed   : > { %v5552_v59 = vunpack.c.h.bf16 %v5936_v40  ;;  %v4469_v7 = vadd.f32 %v4468_v45, %v3923_v38  ;;  %v4400_v46 = vadd.f32 %v4399_v10, %v3859_v54  ;;  %v3925_v1 = vmul.f32 %v5676_v11, %v8832_v4  ;;  %v5970_v10 = vld [vmem:[%s6633_s12 + $0x7b0] sm:$0xff]  }
 0x4ee   : > { %v3861_v29 = vmul.f32 %v5548_v8, %v8834_v30  ;;  %v3813_v20 = vmul.f32 %v5452_v37, %v10031_v60  ;;  %v4348_v19 = vadd.f32 %v4347_v6, %v3812_v33  ;;  %v5683_v58 = vunpack.c.l.bf16 %v5969_v16  ;;  %v5938_v54 = vld [vmem:[%s6633_s12 + $0x6b0] sm:$0xff]  }
 0x4ef   : > { %v5555_v62 = vunpack.c.l.bf16 %v5937_v56  ;;  %v9035_v53 = vpop.permute.xlu1 %3388  ;;  %v9037_v43 = vpop.permute.xlu0 %3120  ;;  %v4470_v42 = vadd.f32 %v4469_v7, %v3924_v2  ;;  %v4401_v0 = vadd.f32 %v4400_v46, %v3860_v49  ;;  %v3926_v40 = vmul.f32 %v5679_v61, %v8848_v14  ;;  %v10032_v4 = vld [vmem:[#allocation56_spill] sm:$0xff] }
 0x4f0   : > { %v3862_v38 = vmul.f32 %v5551_v25, %v8850_v18  ;;  %v10033_v30 = vunpack.c.l.bf16 %v8959_v41  ;;  %v4282_v37 = vadd.f32 %v4281_v39, %v3751_v26  ;;  %v5684_v8 = vunpack.c.h.bf16 %v5969_v16  ;;  %v10034_v14 = vld [vmem:[#allocation80_spill] sm:$0xff] }
 0x4f1   : > { %v5556_v33 = vunpack.c.h.bf16 %v5937_v56  ;;  %v4471_v6 = vadd.f32 %v4470_v42, %v3925_v1  ;;  %v4402_v45 = vadd.f32 %v4401_v0, %v3861_v29  ;;  %v3927_v2 = vmul.f32 %v5680_v5, %v8866_v50  ;;  %v5971_v42 = vld [vmem:[%s6633_s12 + $0x7b8] sm:$0xff]   ;;  %v10035_v5 = vld [vmem:[#allocation27_spill] sm:$0xff] }
 0x4f2   : > { %v3752_v11 = vmul.f32 %v10033_v30, %v10032_v4  ;;  %v3863_v49 = vmul.f32 %v5552_v59, %v8868_v52  ;;  %v3814_v61 = vmul.f32 %v5455_v17, %v10034_v14  ;;  %v4349_v18 = vadd.f32 %v4348_v19, %v3813_v20  ;;  %v5939_v50 = vld [vmem:[%s6633_s12 + $0x6b8] sm:$0xff]   ;;  %v9061_v20 = vld [vmem:[%s6633_s12 + $0x5f0] sm:$0xff]  }
 0x4f3   : > { %v5687_v25 = vunpack.c.l.bf16 %v5970_v10  ;;  %v5559_v7 = vunpack.c.l.bf16 %v5938_v54  ;;  %v9049_v46 = vpop.permute.xlu1 %3392  ;;  %v9051_v60 = vpop.permute.xlu0 %3124  ;;  %v4472_v39 = vadd.f32 %v4471_v6, %v3926_v40  ;;  %v4403_v26 = vadd.f32 %v4402_v45, %v3862_v38 }
 0x4f4   : > { %v3928_v16 = vmul.f32 %v5683_v58, %v8883_v47  ;;  %v3864_v56 = vmul.f32 %v5555_v62, %v8885_v48  ;;  %v10036_v52 = vunpack.c.h.bf16 %v8959_v41  ;;  %v4283_v59 = vadd.f32 %v4282_v37, %v3752_v11  ;;  %v10037_v48 = vld [vmem:[#allocation170_spill] sm:$0xff] }
 0x4f5   : > { %v5688_v1 = vunpack.c.h.bf16 %v5970_v10  ;;  %v5560_v29 = vunpack.c.h.bf16 %v5938_v54  ;;  %v4473_v19 = vadd.f32 %v4472_v39, %v3927_v2  ;;  %v4404_v0 = vadd.f32 %v4403_v26, %v3863_v49 }
 0x4f6   : > { %v3753_v17 = vmul.f32 %v10036_v52, %v10035_v5  ;;  %v3929_v40 = vmul.f32 %v5684_v8, %v8900_v24  ;;  %v3865_v47 = vmul.f32 %v5556_v33, %v8902_v32  ;;  %v10038_v58 = vunpack.c.h.bf16 %v9001_v36  ;;  %v5972_v24 = vld [vmem:[%s6633_s12 + $0x7c0] sm:$0xff]   ;;  %v5941_v5 = vld [vmem:[%s6633_s12 + $0x6c8] sm:$0xff]  }
 0x4f7   : > { %v4350_v38 = vadd.f32 %v4349_v18, %v3814_v61  ;;  %v5691_v41 = vunpack.c.l.bf16 %v5971_v42  ;;  %v5563_v4 = vunpack.c.l.bf16 %v5939_v50  ;;  %v9068_v30 = vpop.permute.xlu1 %3396  ;;  %v9070_v10 = vpop.permute.xlu0 %3128  ;;  %v4474_v54 = vadd.f32 %v4473_v19, %v3928_v16  ;;  %v5940_v8 = vld [vmem:[%s6633_s12 + $0x6c0] sm:$0xff]   ;;  %v10039_v18 = vld [vmem:[#allocation173_spill] sm:$0xff] }
 0x4f8   : > { %v3815_v62 = vmul.f32 %v10038_v58, %v10037_v48  ;;  %v4405_v11 = vadd.f32 %v4404_v0, %v3864_v56  ;;  %v3930_v37 = vmul.f32 %v5687_v25, %v8914_v35  ;;  %v3866_v6 = vmul.f32 %v5559_v7, %v8916_v63 }
 0x4f9   : > { %v5464_v32 = vunpack.c.h.bf16 %v9061_v20  ;;  %v5463_v36 = vunpack.c.l.bf16 %v9061_v20  ;;  %v5692_v33 = vunpack.c.h.bf16 %v5971_v42  ;;  %v5564_v45 = vunpack.c.h.bf16 %v5939_v50 }
 0x4fa   : > { %v4475_v2 = vadd.f32 %v4474_v54, %v3929_v40  ;;  %v4406_v49 = vadd.f32 %v4405_v11, %v3865_v47  ;;  %v3931_v14 = vmul.f32 %v5688_v1, %v8931_v31  ;;  %v3867_v61 = vmul.f32 %v5560_v29, %v8933_v12  ;;  %v5973_v31 = vld [vmem:[%s6633_s12 + $0x7c8] sm:$0xff]  }
 0x4fb   : > { %v3816_v35 = vmul.f32 %v5459_v51, %v10039_v18  ;;  %v4351_v63 = vadd.f32 %v4350_v38, %v3815_v62  ;;  %v5695_v25 = vunpack.c.l.bf16 %v5972_v24  ;;  %v5567_v7 = vunpack.c.l.bf16 %v5940_v8  ;;  %v9083_v39 = vpop.permute.xlu1 %3400  ;;  %v9085_v26 = vpop.permute.xlu0 %3132  ;;  %v10040_v12 = vld [vmem:[#allocation59_spill] sm:$0xff] }
 0x4fc   : > { %v4476_v16 = vadd.f32 %v4475_v2, %v3930_v37  ;;  %v4407_v56 = vadd.f32 %v4406_v49, %v3866_v6  ;;  %v3932_v42 = vmul.f32 %v5691_v41, %v8943_v23  ;;  %v3868_v50 = vmul.f32 %v5563_v4, %v8945_v27  ;;  %v10042_v23 = vld [vmem:[#allocation119_spill] sm:$0xff]  ;;  %v5974_v37 = vld [vmem:[%s6633_s12 + $0x7d0] sm:$0xff]   ;;  %v10044_v6 = vld [vmem:[#allocation26_spill] sm:$0xff] }
 0x4fd   : > { %v10041_v52 = vunpack.c.l.bf16 %v8963_v21  ;;  %v4284_v51 = vadd.f32 %v4283_v59, %v3753_v17  ;;  %v5696_v29 = vunpack.c.h.bf16 %v5972_v24  ;;  %v5568_v19 = vunpack.c.h.bf16 %v5940_v8  ;;  %v9111_v2 = vld [vmem:[%s6633_s12 + $0x5f8] sm:$0xff]  }
 0x4fe   : > { %v4477_v0 = vadd.f32 %v4476_v16, %v3931_v14  ;;  %v4408_v40 = vadd.f32 %v4407_v56, %v3867_v61  ;;  %v3933_v47 = vmul.f32 %v5692_v33, %v8966_v13  ;;  %v3869_v48 = vmul.f32 %v5564_v45, %v8968_v55  ;;  %v5942_v55 = vld [vmem:[%s6633_s12 + $0x6d0] sm:$0xff]  }
 0x4ff   : > { %v3754_v1 = vmul.f32 %v10041_v52, %v10040_v12  ;;  %v10043_v27 = vunpack.c.h.bf16 %v9016_v22  ;;  %v4352_v62 = vadd.f32 %v4351_v63, %v3816_v35  ;;  %v5699_v38 = vunpack.c.l.bf16 %v5973_v31  ;;  %v9099_v4 = vpop.permute.xlu1 %3404  ;;  %v9101_v17 = vpop.permute.xlu0 %3136 }
 0x500   : > { %v5571_v41 = vunpack.c.l.bf16 %v5941_v5  ;;  %v4478_v59 = vadd.f32 %v4477_v0, %v3932_v42  ;;  %v4409_v54 = vadd.f32 %v4408_v40, %v3868_v50  ;;  %v3934_v11 = vmul.f32 %v5695_v25, %v8986_v34 }
 0x501   : > { %v3817_v58 = vmul.f32 %v10043_v27, %v10042_v23  ;;  %v3870_v13 = vmul.f32 %v5567_v7, %v8988_v44  ;;  %v10045_v22 = vunpack.c.h.bf16 %v8963_v21  ;;  %v4285_v8 = vadd.f32 %v4284_v51, %v3754_v1  ;;  %v10046_v44 = vld [vmem:[#allocation53_spill] sm:$0xff] }
 0x502   : > { %v5700_v33 = vunpack.c.h.bf16 %v5973_v31  ;;  %v5572_v45 = vunpack.c.h.bf16 %v5941_v5  ;;  %v4479_v49 = vadd.f32 %v4478_v59, %v3933_v47  ;;  %v4410_v14 = vadd.f32 %v4409_v54, %v3869_v48  ;;  %v5975_v31 = vld [vmem:[%s6633_s12 + $0x7d8] sm:$0xff]  }
 0x503   : > { %v3755_v24 = vmul.f32 %v10045_v22, %v10044_v6  ;;  %v3935_v61 = vmul.f32 %v5696_v29, %v9004_v15  ;;  %v3871_v34 = vmul.f32 %v5568_v19, %v9006_v57  ;;  %v3818_v18 = vmul.f32 %v5463_v36, %v10046_v44  ;;  %v9116_v21 = vpop.permute.xlu1 %3408  ;;  %v9118_v7 = vpop.permute.xlu0 %3140  ;;  %v5943_v5 = vld [vmem:[%s6633_s12 + $0x6d8] sm:$0xff]   ;;  %v10047_v19 = vld [vmem:[#allocation83_spill] sm:$0xff] }
 0x504   : > { %v4353_v35 = vadd.f32 %v4352_v62, %v3817_v58  ;;  %v5703_v63 = vunpack.c.l.bf16 %v5974_v37  ;;  %v5575_v25 = vunpack.c.l.bf16 %v5942_v55  ;;  %v4480_v16 = vadd.f32 %v4479_v49, %v3934_v11  ;;  %v10051_v44 = vld [vmem:[#allocation29_spill] sm:$0xff] }
 0x505   : > { %v4411_v56 = vadd.f32 %v4410_v14, %v3870_v13  ;;  %v3936_v42 = vmul.f32 %v5699_v38, %v9021_v9  ;;  %v3872_v50 = vmul.f32 %v5571_v41, %v9023_v3  ;;  %v5468_v15 = vunpack.c.h.bf16 %v9111_v2  ;;  %v5976_v38 = vld [vmem:[%s6633_s12 + $0x7e0] sm:$0xff]  }
 0x506   : > { %v5467_v57 = vunpack.c.l.bf16 %v9111_v2  ;;  %v5704_v36 = vunpack.c.h.bf16 %v5974_v37  ;;  %v5576_v12 = vunpack.c.h.bf16 %v5942_v55  ;;  %v4481_v52 = vadd.f32 %v4480_v16, %v3935_v61  ;;  %v5944_v41 = vld [vmem:[%s6633_s12 + $0x6e0] sm:$0xff]   ;;  %v5977_v61 = vld [vmem:[%s6633_s12 + $0x7e8] sm:$0xff]  }
 0x507   : > { %v4412_v1 = vadd.f32 %v4411_v56, %v3871_v34  ;;  %v3937_v51 = vmul.f32 %v5700_v33, %v9035_v53  ;;  %v3873_v29 = vmul.f32 %v5572_v45, %v9037_v43  ;;  %v3819_v9 = vmul.f32 %v5464_v32, %v10047_v19  ;;  %v3413_v47 = vpop.permute.xlu1 %3412  ;;  %v3145_v48 = vpop.permute.xlu0 %3144  ;;  %v10048_v53 = vld [vmem:[#allocation58_spill] sm:$0xff]  ;;  %v5945_v34 = vld [vmem:[%s6633_s12 + $0x6e8] sm:$0xff]  }
 0x508   : > { %v4354_v3 = vadd.f32 %v4353_v35, %v3818_v18  ;;  %v5707_v0 = vunpack.c.l.bf16 %v5975_v31  ;;  %v5579_v40 = vunpack.c.l.bf16 %v5943_v5  ;;  %v4482_v23 = vadd.f32 %v4481_v52, %v3936_v42  ;;  %v10054_v19 = vld [vmem:[#allocation175_spill] sm:$0xff] }
 0x509   : > { %v4413_v27 = vadd.f32 %v4412_v1, %v3872_v50  ;;  %v3938_v58 = vmul.f32 %v5703_v63, %v9049_v46  ;;  %v3874_v62 = vmul.f32 %v5575_v25, %v9051_v60  ;;  %v10049_v43 = vunpack.c.l.bf16 %v8972_v28  ;;  %v10050_v46 = vld [vmem:[#allocation172_spill] sm:$0xff] }
 0x50a   : > { %v4286_v54 = vadd.f32 %v4285_v8, %v3755_v24  ;;  %v5708_v20 = vunpack.c.h.bf16 %v5975_v31  ;;  %v5580_v32 = vunpack.c.h.bf16 %v5943_v5  ;;  %v4483_v11 = vadd.f32 %v4482_v23, %v3937_v51  ;;  %v5978_v51 = vld [vmem:[%s6633_s12 + $0x7f0] sm:$0xff]  }
 0x50b   : > { %v3756_v59 = vmul.f32 %v10049_v43, %v10048_v53  ;;  %v4414_v13 = vadd.f32 %v4413_v27, %v3873_v29  ;;  %v3939_v37 = vmul.f32 %v5704_v36, %v9068_v30  ;;  %v3875_v55 = vmul.f32 %v5576_v12, %v9070_v10  ;;  %v3417_v45 = vpop.permute.xlu1 %3416  ;;  %v3149_v2 = vpop.permute.xlu0 %3148  ;;  %v5946_v29 = vld [vmem:[%s6633_s12 + $0x6f0] sm:$0xff]  }
 0x50c   : > { %v3820_v6 = vmul.f32 %v5467_v57, %v10050_v46  ;;  %v4355_v60 = vadd.f32 %v4354_v3, %v3819_v9  ;;  %v5711_v22 = vunpack.c.l.bf16 %v5976_v38  ;;  %v5583_v33 = vunpack.c.l.bf16 %v5944_v41  ;;  %v10055_v9 = vld [vmem:[#allocation85_spill] sm:$0xff] }
 0x50d   : > { %v4484_v49 = vadd.f32 %v4483_v11, %v3938_v58  ;;  %v4415_v14 = vadd.f32 %v4414_v13, %v3874_v62  ;;  %v3940_v24 = vmul.f32 %v5707_v0, %v9083_v39  ;;  %v3876_v8 = vmul.f32 %v5579_v40, %v9085_v26  ;;  %v10053_v39 = vld [vmem:[#allocation118_spill] sm:$0xff]  ;;  %v10056_v58 = vld [vmem:[#allocation121_spill] sm:$0xff] }
 0x50e   : > { %v10052_v30 = vunpack.c.h.bf16 %v8972_v28  ;;  %v4287_v10 = vadd.f32 %v4286_v54, %v3756_v59  ;;  %v5712_v35 = vunpack.c.h.bf16 %v5976_v38  ;;  %v5584_v63 = vunpack.c.h.bf16 %v5944_v41  ;;  %v5947_v11 = vld [vmem:[%s6633_s12 + $0x6f8] sm:$0xff]  }
 0x50f   : > { %v4485_v25 = vadd.f32 %v4484_v49, %v3939_v37  ;;  %v4416_v16 = vadd.f32 %v4415_v14, %v3875_v55  ;;  %v3941_v56 = vmul.f32 %v5708_v20, %v9099_v4  ;;  %v3877_v42 = vmul.f32 %v5580_v32, %v9101_v17  ;;  %v3421_v57 = vpop.permute.xlu1 %3420  ;;  %v3153_v36 = vpop.permute.xlu0 %3152  ;;  %v5979_v32 = vld [vmem:[%s6633_s12 + $0x7f8] sm:$0xff]  }
 0x510   : > { %v3757_v18 = vmul.f32 %v10052_v30, %v10051_v44  ;;  %v3821_v50 = vmul.f32 %v5468_v15, %v10053_v39  ;;  %v4356_v26 = vadd.f32 %v4355_v60, %v3820_v6  ;;  %v5715_v31 = vunpack.c.l.bf16 %v5977_v61  ;;  %v10057_v44 = vld [vmem:[#allocation82_spill] sm:$0xff] }
 0x511   : > { %v5587_v5 = vunpack.c.l.bf16 %v5945_v34  ;;  %v4486_v28 = vadd.f32 %v4485_v25, %v3940_v24  ;;  %v4417_v12 = vadd.f32 %v4416_v16, %v3876_v8  ;;  %v3942_v52 = vmul.f32 %v5711_v22, %v9116_v21 }
 0x512   : > { %v3878_v1 = vmul.f32 %v5583_v33, %v9118_v7  ;;  %v4219_v4 = vadd.f32 %v10055_v9, %v10054_v19  ;;  %v4288_v3 = vadd.f32 %v4287_v10, %v3757_v18  ;;  %v5716_v17 = vunpack.c.h.bf16 %v5977_v61  ;;  %v10059_v10 = vld [vmem:[#allocation52_spill] sm:$0xff] }
 0x513   : > { %v5588_v15 = vunpack.c.h.bf16 %v5945_v34  ;;  %v4487_v0 = vadd.f32 %v4486_v28, %v3941_v56  ;;  %v4418_v40 = vadd.f32 %v4417_v12, %v3877_v42  ;;  %v3943_v23 = vmul.f32 %v5712_v35, %v3413_v47  ;;  %v3425_v21 = vpop.permute.xlu1 %3424  ;;  %v3157_v7 = vpop.permute.xlu0 %3156 }
 0x514   : > { %v3879_v27 = vmul.f32 %v5584_v63, %v3145_v48  ;;  %v4151_v62 = vrot.slane %v10056_v58, 4  ;;  %v4357_v38 = vadd.f32 %v4356_v26, %v3821_v50  ;;  %v5719_v41 = vunpack.c.l.bf16 %v5978_v51 }
 0x515   : > { %v5591_v53 = vunpack.c.l.bf16 %v5946_v29  ;;  %v4488_v43 = vadd.f32 %v4487_v0, %v3942_v52  ;;  %v4419_v59 = vadd.f32 %v4418_v40, %v3878_v1  ;;  %v3944_v54 = vmul.f32 %v5715_v31, %v3417_v45 }
 0x516   : > { %v3880_v20 = vmul.f32 %v5587_v5, %v3149_v2  ;;  %v4220_v13 = vrot.slane %v4219_v4, 4  ;;  %v4289_v37 = vrot.slane %v4288_v3, 4  ;;  %v5720_v55 = vunpack.c.h.bf16 %v5978_v51 }
 0x517   : > { %v5592_v46 = vunpack.c.h.bf16 %v5946_v29  ;;  %v4489_v6 = vadd.f32 %v4488_v43, %v3943_v23  ;;  %v4420_v47 = vadd.f32 %v4419_v59, %v3879_v27  ;;  %v3945_v48 = vmul.f32 %v5716_v17, %v3421_v57  ;;  %v3429_v49 = vpop.permute.xlu1 %3428  ;;  %v3161_v14 = vpop.permute.xlu0 %3160 }
 0x518   : > { %v3881_v60 = vmul.f32 %v5588_v15, %v3153_v36  ;;  %v4152_v22 = vadd.f32 %v4151_v62, %v10056_v58  ;;  %v4358_v33 = vrot.slane %v4357_v38, 4  ;;  %v5723_v24 = vunpack.c.l.bf16 %v5979_v32 }
 0x519   : > { %v5595_v8 = vunpack.c.l.bf16 %v5947_v11  ;;  %v4490_v61 = vadd.f32 %v4489_v6, %v3944_v54  ;;  %v4421_v45 = vadd.f32 %v4420_v47, %v3880_v20  ;;  %v3946_v2 = vmul.f32 %v5719_v41, %v3425_v21 }
 0x51a   : > { %v3882_v34 = vmul.f32 %v5591_v53, %v3157_v7  ;;  %v10058_v30 = vrot.slane %v10057_v44, 4  ;;  %v4084_v35 = vrot.slane %v10059_v10, 2  ;;  %v4221_v63 = vadd.f32 %v4220_v13, %v4219_v4 }
 0x51b   : > { %v4290_v25 = vadd.f32 %v4289_v37, %v4288_v3  ;;  %v4491_v16 = vadd.f32 %v4490_v61, %v3945_v48  ;;  %v4422_v56 = vadd.f32 %v4421_v45, %v3881_v60  ;;  %v3947_v42 = vmul.f32 %v5720_v55, %v3429_v49  ;;  %v3433_v31 = vpop.permute.xlu1 %3432  ;;  %v3165_v5 = vpop.permute.xlu0 %3164 }
 0x51c   : > { %v4014_v18 = vadd.f32 %v10058_v30, %v10057_v44  ;;  %v3883_v39 = vmul.f32 %v5592_v46, %v3161_v14  ;;  %v4153_v50 = vrot.slane %v4152_v22, 2  ;;  %v4359_v26 = vadd.f32 %v4358_v33, %v4357_v38 }
 0x51d   : > { %v5724_v57 = vunpack.c.h.bf16 %v5979_v32  ;;  %v5596_v36 = vunpack.c.h.bf16 %v5947_v11  ;;  %v4492_v28 = vadd.f32 %v4491_v16, %v3946_v2  ;;  %v4423_v12 = vadd.f32 %v4422_v56, %v3882_v34 }
 0x51e   : > { %v3948_v52 = vmul.f32 %v5723_v24, %v3433_v31  ;;  %v3884_v1 = vmul.f32 %v5595_v8, %v3165_v5  ;;  %v4015_v51 = vrot.slane %v4014_v18, 2  ;;  %v4222_v29 = vrot.slane %v4221_v63, 2 }
 0x51f   : > { %v4291_v19 = vrot.slane %v4290_v25, 2  ;;  %v4493_v9 = vadd.f32 %v4492_v28, %v3947_v42  ;;  %v4424_v4 = vadd.f32 %v4423_v12, %v3883_v39  ;;  %v4085_v3 = vadd.f32 %v4084_v35, %v10059_v10  ;;  %v3437_v0 = vpop.permute.xlu1 %3436  ;;  %v3169_v40 = vpop.permute.xlu0 %3168  ;;  %v4527_v39 = vld [vmem:[#allocation3] sm:$0xff] }
 0x520   : > { %v4154_v17 = vadd.f32 %v4153_v50, %v4152_v22  ;;  %v4360_v15 = vrot.slane %v4359_v26, 2  ;;  %v3949_v58 = vmul.f32 %v5724_v57, %v3437_v0  ;;  %v3885_v62 = vmul.f32 %v5596_v36, %v3169_v40 }
 0x521   : > { %v4494_v23 = vadd.f32 %v4493_v9, %v3948_v52  ;;  %v4425_v27 = vadd.f32 %v4424_v4, %v3884_v1  ;;  %v4016_v38 = vadd.f32 %v4015_v51, %v4014_v18  ;;  %v4223_v21 = vadd.f32 %v4222_v29, %v4221_v63  ;;  %v1293_v63 = vld [vmem:[#allocation2] sm:$0xff] }
 0x522   : > { %v4292_v41 = vadd.f32 %v4291_v19, %v4290_v25  ;;  %v4086_v43 = vrot.slane %v4085_v3, 1  ;;  %v4361_v59 = vadd.f32 %v4360_v15, %v4359_v26  ;;  %v4155_v54 = vrot.slane %v4154_v17, 1 }
 0x523   : > { %v4495_v7 = vadd.f32 %v4494_v23, %v3949_v58  ;;  %v4426_v53 = vadd.f32 %v4425_v27, %v3885_v62  ;;  %v4017_v11 = vrot.slane %v4016_v38, 1  ;;  %v4224_v13 = vrot.slane %v4223_v21, 1 }
 0x524   : > { %v4293_v37 = vrot.slane %v4292_v41, 1  ;;  %v4087_v6 = vadd.f32 %v4086_v43, %v4085_v3  ;;  %v4362_v47 = vrot.slane %v4361_v59, 1  ;;  %v4156_v48 = vadd.f32 %v4155_v54, %v4154_v17 }
 0x525   : > { %v4496_v20 = vrot.slane %v4495_v7, 4  ;;  %v4427_v32 = vrot.slane %v4426_v53, 4  ;;  %v4018_v33 = vadd.f32 %v4017_v11, %v4016_v38  ;;  %v4225_v49 = vadd.f32 %v4224_v13, %v4223_v21 }
 0x526   : > { %v4294_v14 = vadd.f32 %v4293_v37, %v4292_v41  ;;  %v4363_v45 = vadd.f32 %v4362_v47, %v4361_v59 }
 0x527   : > { %v4497_v55 = vadd.f32 %v4496_v20, %v4495_v7  ;;  %v4428_v46 = vadd.f32 %v4427_v32, %v4426_v53  ;;  %v4511_v61 = vsel %vm4510_vm1, %v4087_v6, %v4018_v33 }
 0x528   : > { %v4513_v2 = vsel %vm4512_vm2, %v4156_v48, %v4511_v61 }
 0x529   : > { %v4498_v60 = vrot.slane %v4497_v55, 2  ;;  %v4429_v22 = vrot.slane %v4428_v46, 2  ;;  %v4515_v30 = vsel %vm4514_vm3, %v4225_v49, %v4513_v2 }
 0x52a   : > { %v4517_v18 = vsel %vm4516_vm4, %v4294_v14, %v4515_v30 }
 0x52b   : > { %v4499_v24 = vadd.f32 %v4498_v60, %v4497_v55  ;;  %v4430_v8 = vadd.f32 %v4429_v22, %v4428_v46  ;;  %v4519_v25 = vsel %vm4518_vm5, %v4363_v45, %v4517_v18 }
 0x52d   : > { %v4500_v34 = vrot.slane %v4499_v24, 1  ;;  %v4431_v44 = vrot.slane %v4430_v8, 1 }
 0x52f   : > { %v4501_v10 = vadd.f32 %v4500_v34, %v4499_v24  ;;  %v4432_v35 = vadd.f32 %v4431_v44, %v4430_v8 }
 0x531   : > { %v4521_v16 = vsel %vm4520_vm6, %v4432_v35, %v4519_v25 }
 0x532   : > { %v4523_v56 = vsel %vm4522_vm7, %v4501_v10, %v4521_v16 }
 0x533   : > { %v4525_v42 = vadd.f32 %v4523_v56, %v1293_v63 }
 0x535   : > { %4526 = vst [vmem:[#allocation2] sm:$0xff] %v4525_v42 }
 0x558   : > { %v4532_v50 = vpop.xlane.xlu0 %4531 }
 0x559   : > { %v4533_v26 = vadd.f32 %v4532_v50, %v4527_v39 }
 0x55b   : > { %4535 = vst.msk [vmem:[#allocation3] sm:$0xff] %vm258_vm0, %v4533_v26 }
 0x55c PF: > { %v6336_v5 = vmov 0   ;;  %v4541_v28 = vld [vmem:[#allocation2] sm:$0xff]  ;;  %s4697_s3 = sshll.u32 %s6320_s30, 7  ;;  %s4564_s1 = sshll.u32 %s243_s29, 4  ;;  %s9175_s1 = int_to_ptr.vmem [resolvable:$true] %s4564_s1 }
 0x55d   : > { %6119 = vset.pattern.permute.xlu0 %v6336_v5  ;;  %s10060_s8 = sld [smem:[#allocation274_spill]]  ;;  %s4551_s19 = scalar_lea.sflag [#allocation8], %s241_s9 }
 0x55e   : > { %s6192_s16 = scalar_lea.vmem %s9175_s1, 128  ;;  %p10061_p13 = scmp.ne.s32.totalorder %s9303_s25, 0 }
 0x55f   : > { %p6193_p9 = scmp.ne.s32.totalorder %s9175_s1, %s6192_s16  ;;  %s6337_s30 = smov [#allocation11]  }
 0x560   : > { %s6196_s11 = sshll.u32 %s6337_s30, 4  ;;  %s6197_s11 = int_to_ptr.vmem [resolvable:$false] %s6196_s11 }
 0x561   : > { %p6194_p4 = pnand %p6193_p9, %p10061_p13  ;;  %s6198_s12 = scalar_lea.vmem %s6197_s11, 256 }
 0x562   : > { %v4539_v31 = vld [vmem:[#allocation3] sm:$0xff]  ;;  %p6199_p7 = scmp.lt.s32.totalorder %s9175_s1, %s6197_s11  ;;  %p6200_p11 = scmp.lt.s32.totalorder %s6198_s12, %s6192_s16 }
 0x563   : > { %v4540_v57 = vmax.f32 %v4539_v31, 1e-09  ;;  %s9173_s18 = scalar_lea.hbm %s10060_s8, %s4697_s3  ;;  %p6195_p10 = pneg %p6194_p4 }
 0x564   : > { %p6201_p2 = por %p6200_p11, %p6199_p7 }
 0x565   : > { %4544 = vperm.xlu0 %6119, %v4540_v57  }
 0x566   : > { %p6202_p5 = pnand %p6201_p2, %p6195_p10 }
 0x5e4   : > { %v4545_v36 = vpop.permute.xlu0 %4544 }
 0x5e5   : > { %6120 = vrcp.f32 %v4545_v36 }
 0x5ef   : > { %v6121_v12 = vpop.eup %6120 }
 0x5f0   : > { %v4548_v52 = vmul.f32 %v6121_v12, %v4541_v28 }
 0x5f2   : > { %4549 = vst [vmem:[%s243_s29] sm:$0xff] %v4548_v52 }
 0x5f3   : > { %6205 = shalt.err (!%p6202_p5)
}
 0x5f4   : > { %s6206_s10 = scalar_lea.hbm %s9173_s18, 128  ;;  %s6210_s21 = scalar_lea.hbm %s10060_s8, 256 }
 0x5f5   : > { %p6207_p12 = scmp.ne.s32.totalorder %s9173_s18, %s6206_s10  ;;  %p6211_p6 = scmp.lt.u32.totalorder %s9173_s18, %s10060_s8 }
 0x5f6   : > { %p6212_p0 = scmp.lt.u32.totalorder %s6210_s21, %s6206_s10  ;;  %p6214_p9 = scmp.lt.u32.totalorder %s6206_s10, %s9173_s18 }
 0x5f7   : > { %p6208_p3 = pnand %p6207_p12, %p10061_p13 }
 0x5f8   : > { %p6213_p8 = por %p6212_p0, %p6211_p6 }
 0x5f9   : > { %p6209_p1 = pneg %p6208_p3 }
 0x5fa   : > { %p6215_p4 = por %p6214_p9, %p6213_p8 }
 0x5fc   : > { %p6216_p10 = pnand %p6215_p4, %p6209_p1 }
 0x5fe   : > { %6219 = shalt.err (!%p6216_p10)
}
 0x5ff   : > { %5988 = dma.vmem_to_hbm [thread:$0]  (%p10061_p13), %s9175_s1, 128, %s9173_s18, %s4551_s19  }
 0x600 PF: > { %s4576_s15 = sand.u32 1, %s6284_s22   ;;  %p10062_p7 = scmp.ne.s32.totalorder %s9304_s20, 0 }
 0x601   : > { %p10063_p11 = scmp.ge.s32.totalorder %s6328_s5, 2  ;;  %s4577_s29 = scalar_lea.sflag [#allocation8], %s4576_s15 }
 0x603   : > { %p6002_p2 = pnand %p10063_p11, %p10062_p7 }
 0x605   : > { %6279 = dma.done.wait (!%p6002_p2), %s4577_s29, 128  }
 0x606   : > { %6281 = vsyncadd (!%p6002_p2), %s4577_s29, 4294967168  ;;  %s26_s5 = sadd.s32 1, %s6328_s5   ;;  %s10064_s3 = sld [smem:[#allocation23_spill]] }
 0x607   : > { %p23_p5 = scmp.ge.s32.totalorder %s26_s5, 4   ;;  %s10065_s1 = sld [smem:[#allocation20_spill]] }
 0x608   : > { %s10066_s29 = sld [smem:[#allocation22_spill]]  ;;  %s10067_s6 = sld [smem:[#allocation21_spill]] }
 0x609   : > { %s10068_s22 = smov %s6288_s23  ;;  %s10069_s23 = smov %s6292_s24 }
 0x60a   : > { %s10070_s24 = smov %s6560_s27  ;;  %s10071_s25 = smov %s6300_s26 }
 0x60b   : > { %s10072_s26 = smov %s6304_s0  ;;  %s10074_s27 = smov %s6312_s28 }
 0x60c   : > { %s10073_s0 = smov %s10064_s3  ;;  %s10076_s30 = smov %s6324_s4 }
 0x60d   : > { %s10075_s28 = smov %s10065_s1  ;;  %25 = sbr.rel (!%p23_p5) target bundleno = 24 (0x18), region = 98 }
 0x60e   : > { %s10077_s4 = smov %s10067_s6 }
 0x614   :  { %4582 = vsyncpa [#allocation7], 1 }
 0x615   :  { %4584 = vsyncpa [#allocation7 + $0x1], 1 }
 0x616   :  { %4585 = vsyncpa [#allocation10], 1 }
 0x617   :  { %4587 = vsyncpa [#allocation10 + $0x1], 1 }
 0x618   :  { %4588 = vsyncpa [#allocation8], 1 }
 0x619   :  { %4590 = vsyncpa [#allocation8 + $0x1], 1 }

</bundles_post_ra>
